<compile_context>
chip_gen: v5e
topology: v5e:2x2
jax: 0.10.0
libtpu: 0.0.40
codegen_flags: <defaults>
</compile_context>

<pallas_src>
import jax
import jax.numpy as jnp
from jax.experimental import pallas as pl
from jax.experimental.pallas import tpu as pltpu


def attention_walk_tile_kernel(probs_ref, target_ref, adj_ref, left_ref,
                               right_ref, out_ref):
    """One (tr, tc) node tile, all W walk-window slices.

    probs_ref : (W, 1) f32 in SMEM  -- num_of_walks * N * softmax(attention)
    target_ref: (W, tr, tc) bf16 block of the target tensor
    adj_ref   : (tr, tc) bf16 block of the no-edge indicator matrix
    left_ref  : (tr, D2) f32 block of left_factors
    right_ref : (D2, tc) f32 block of right_factors
    out_ref   : (1, 8, 128) lane-dense per-row-stripe partial sum (resident
                accumulator across the column grid axis)
    """
    j = pl.program_id(1)
    num_w = target_ref.shape[0]
    tr, tc = adj_ref.shape

    # Factor matmul for this tile on the MXU (recomputed per tile; free vs.
    # streaming precomputed logits from HBM).
    logits = jnp.dot(left_ref[...].astype(jnp.float32),
                     right_ref[...].astype(jnp.float32),
                     preferred_element_type=jnp.float32)          # (tr, tc)

    # Stable log-sigmoid via a shared softplus:
    #   -log(sigmoid(x))     = softplus(-x) = log(1 + e^-|x|) + relu(-x)
    #   -log(1 - sigmoid(x)) = softplus( x) = log(1 + e^-|x|) + relu( x)
    t = jnp.exp(-jnp.abs(logits))
    lp = jnp.log(1.0 + t)
    sp_pos = lp + jnp.maximum(logits, 0.0)      # = -log(1 - sigmoid(logits))
    sp_neg = lp + jnp.maximum(-logits, 0.0)     # = -log(sigmoid(logits))

    # Factored walk-window accumulation.  All factors are nonnegative
    # (softmax'd probs, walk counts, 0/1 adjacency, softplus), so the per-w
    # abs of the reference is a no-op and the sum over W factors out:
    #   sum_w |pw*target_w*sp_neg + adj*sp_pos| =
    #       (sum_w pw*target_w) * sp_neg + W * adj * sp_pos
    tsum = None
    for w in range(num_w):                 # W is small & static -> unrolled
        tw = probs_ref[w, 0] * target_ref[w].astype(jnp.float32)
        tsum = tw if tsum is None else tsum + tw

    s = tsum * sp_neg + (float(num_w) * adj_ref[...].astype(jnp.float32)) * sp_pos

    # Fold (tr, tc) -> lane-dense (8, 128) partial with (8,128)-aligned
    # reshapes (pure vreg adds, no cross-lane XLU work).
    partial = (s.reshape(tr // 8, 8, tc // 128, 128)
                .sum(axis=0)
                .sum(axis=1))                                     # (8, 128)

    @pl.when(j == 0)
    def _init():
        out_ref[0] = partial

    @pl.when(j > 0)
    def _accum():
        out_ref[0] += partial


def _pick_tiles(W, N, D2, tgt_itemsize, adj_itemsize,
                budget_bytes=20 * 1024 * 1024):
    """Pick (tr, tc): widest lane tile that fits a v7x-safe VMEM budget."""
    def est(tr, tc):
        # declared double-buffered blocks + rough live f32 elementwise temps
        blocks = 2 * (W * tr * tc * tgt_itemsize + tr * tc * adj_itemsize
                      + tr * D2 * 4 + D2 * tc * 4) + 2 * 8 * 128 * 4
        temps = 8 * tr * tc * 4
        return blocks + temps

    tcs = [c for c in dict.fromkeys((N, 4096, 2048, 1024, 512, 256, 128))
           if c <= N and N % c == 0]
    trs = [c for c in (128, 64, 32, 16, 8) if c <= N and N % c == 0]
    for tc in tcs:
        feas = [tr for tr in trs if est(tr, tc) <= budget_bytes]
        if not feas:
            continue
        # Prefer >= 2 and even row-stripe count (v7x has 2 TensorCores).
        even = [tr for tr in feas if (N // tr) >= 2 and (N // tr) % 2 == 0]
        return (even[0] if even else feas[0]), tc
    return trs[-1], tcs[-1]


def attention_walk_loss(attention, target_tensor, adjacency_opposite,
                        left_factors, right_factors, *,
                        num_of_walks, beta, gamma, tr=None, tc=None):
    W, N, _ = target_tensor.shape
    D2 = left_factors.shape[1]

    # Tiny O(W) / O(N*D2) terms computed once in the wrapper.
    att = attention.astype(jnp.float32)
    probs = jax.nn.softmax(att, axis=0)                          # (W, 1)
    scaled_probs = (float(num_of_walks) * float(N)) * probs      # fold scale

    # Halve the dominant HBM stream: bf16 target / adjacency, upcast per tile.
    target_bf = target_tensor.astype(jnp.bfloat16)
    adj_bf = adjacency_opposite.astype(jnp.bfloat16)
    left = left_factors.astype(jnp.float32)
    right = right_factors.astype(jnp.float32)

    # Zero-pad N to a multiple of 128 (padded rows/cols contribute exactly 0);
    # the final mean divides by the true W*N*N.
    Np = ((N + 127) // 128) * 128
    if Np != N:
        pad = Np - N
        target_bf = jnp.pad(target_bf, ((0, 0), (0, pad), (0, pad)))
        adj_bf = jnp.pad(adj_bf, ((0, pad), (0, pad)))
        left = jnp.pad(left, ((0, pad), (0, 0)))
        right = jnp.pad(right, ((0, 0), (0, pad)))

    if tr is None or tc is None:
        ptr, ptc = _pick_tiles(W, Np, D2,
                               target_bf.dtype.itemsize, adj_bf.dtype.itemsize)
        tr = tr or ptr
        tc = tc or ptc
    assert Np % tr == 0 and Np % tc == 0, (Np, tr, tc)
    assert tr % 8 == 0 and tc % 128 == 0, (tr, tc)
    grid = (Np // tr, Np // tc)

    partials = pl.pallas_call(
        attention_walk_tile_kernel,
        out_shape=jax.ShapeDtypeStruct((grid[0], 8, 128), jnp.float32),
        grid_spec=pltpu.PrefetchScalarGridSpec(
            num_scalar_prefetch=0,
            grid=grid,
            in_specs=[
                pl.BlockSpec(memory_space=pltpu.MemorySpace.SMEM),  # probs
                pl.BlockSpec((W, tr, tc), lambda i, j: (0, i, j)),  # target
                pl.BlockSpec((tr, tc), lambda i, j: (i, j)),        # adjacency
                pl.BlockSpec((tr, D2), lambda i, j: (i, 0)),        # left
                pl.BlockSpec((D2, tc), lambda i, j: (0, j)),        # right
            ],
            out_specs=pl.BlockSpec((1, 8, 128), lambda i, j: (i, 0, 0)),
        ),
        compiler_params=pltpu.CompilerParams(
            dimension_semantics=("parallel", "arbitrary"),
            vmem_limit_bytes=48 * 1024 * 1024),
    )(scaled_probs, target_bf, adj_bf, left, right)

    loss_on_matrices = jnp.sum(partials) / float(W * N * N)
    norms = (jnp.mean(jnp.abs(left_factors.astype(jnp.float32)))
             + jnp.mean(jnp.abs(right_factors.astype(jnp.float32))))
    loss_on_regularization = beta * jnp.sum(att * att)
    return loss_on_matrices + loss_on_regularization + gamma * norms


def reference_loss(attention, target_tensor, adjacency_opposite,
                   left_factors, right_factors,
                   *, num_of_walks, beta, gamma):
    """Plain-JAX mirror of the PyTorch forward for verification."""
    probs = jax.nn.softmax(attention, axis=0)                    # (W, 1)
    wtt = target_tensor * probs[:, :, None]                      # (W, N, N)
    N = target_tensor.shape[1]
    logits = left_factors @ right_factors                        # (N, N)
    sig = jax.nn.sigmoid(logits)
    loss_on_target = -wtt * jnp.log(sig)
    loss_opposite = -adjacency_opposite * jnp.log(1.0 - sig)
    loss_on_matrices = jnp.mean(
        jnp.abs(num_of_walks * N * loss_on_target + loss_opposite[None, :, :]))
    norms = jnp.mean(jnp.abs(left_factors)) + jnp.mean(jnp.abs(right_factors))
    loss_on_regularization = beta * jnp.sum(attention ** 2)
    return loss_on_matrices + loss_on_regularization + gamma * norms


if __name__ == "__main__":
    # shapes = (W, N, N), dimensions = 32 -> D2 = 16
    W, N, D2 = 8, 256, 16
    num_of_walks, beta, gamma = 80, 0.5, 0.5

    key = jax.random.PRNGKey(0)
    k_tgt, k_adj, k_l, k_r, k_att = jax.random.split(key, 5)

    # forward inputs (nonnegative, as in AttentionWalk)
    weighted_target_tensor = jax.random.uniform(k_tgt, (W, N, N), jnp.float32)
    adjacency_opposite = (jax.random.uniform(k_adj, (N, N)) > 0.7).astype(jnp.float32)

    # parameters: uniform(-0.01, 0.01), deterministic
    left_factors = jax.random.uniform(k_l, (N, D2), jnp.float32, -0.01, 0.01)
    right_factors = jax.random.uniform(k_r, (D2, N), jnp.float32, -0.01, 0.01)
    attention = jax.random.uniform(k_att, (W, 1), jnp.float32, -0.01, 0.01)

    loss = attention_walk_loss(
        attention, weighted_target_tensor, adjacency_opposite,
        left_factors, right_factors,
        num_of_walks=num_of_walks, beta=beta, gamma=gamma)
    loss = jax.block_until_ready(loss)

    ref = reference_loss(
        attention, weighted_target_tensor, adjacency_opposite,
        left_factors, right_factors,
        num_of_walks=num_of_walks, beta=beta, gamma=gamma)
    ref = jax.block_until_ready(ref)

    assert jnp.allclose(loss, ref, rtol=1e-3, atol=1e-3), (loss, ref)
    print("KERNEL_OK")
</pallas_src>

<mosaic_0001>
module attributes {stable_mosaic.version = 11 : i64} {
  func.func @attention_walk_tile_kernel(%arg0: i32, %arg1: i32, %arg2: memref<8x1xf32, #tpu.memory_space<smem>>, %arg3: memref<8x128x256xbf16, #tpu.memory_space<vmem>>, %arg4: memref<128x256xbf16, #tpu.memory_space<vmem>>, %arg5: memref<128x16xf32, #tpu.memory_space<vmem>>, %arg6: memref<16x256xf32, #tpu.memory_space<vmem>>, %arg7: memref<1x8x128xf32, #tpu.memory_space<vmem>>) attributes {dimension_semantics = [#tpu.dimension_semantics<parallel>, #tpu.dimension_semantics<arbitrary>], iteration_bounds = array<i64: 2, 1>, scalar_prefetch = 0 : i64, scratch_operands = 0 : i64, tpu.core_type = #tpu.core_type<tc>, window_params = [{transform_indices = @transform_0, window_bounds = array<i64: 8, 1>}, {transform_indices = @transform_1, window_bounds = array<i64: 8, 128, 256>}, {transform_indices = @transform_2, window_bounds = array<i64: 128, 256>}, {transform_indices = @transform_3, window_bounds = array<i64: 128, 16>}, {transform_indices = @transform_4, window_bounds = array<i64: 16, 256>}, {transform_indices = @transform_5, window_bounds = array<i64: 1, 8, 128>}]} {
    %c0 = arith.constant 0 : index
    %c0_0 = arith.constant 0 : index
    %0 = vector.load %arg5[%c0, %c0_0] : memref<128x16xf32, #tpu.memory_space<vmem>>, vector<128x16xf32>
    %c0_1 = arith.constant 0 : index
    %c0_2 = arith.constant 0 : index
    %1 = vector.load %arg6[%c0_1, %c0_2] : memref<16x256xf32, #tpu.memory_space<vmem>>, vector<16x256xf32>
    %cst = arith.constant dense<0.000000e+00> : vector<128x256xf32>
    %2 = tpu.matmul %0, %1, %cst {dimension_numbers = #tpu.dot_dimension_numbers<[1], [0], [0], [1], [0, 0, 1, 1], [], []>} : vector<128x16xf32>, vector<16x256xf32>, vector<128x256xf32> -> vector<128x256xf32>
    %3 = math.absf %2 : vector<128x256xf32>
    %cst_3 = arith.constant 0.000000e+00 : f32
    %4 = vector.broadcast %cst_3 : f32 to vector<128x256xf32>
    %5 = arith.subf %4, %3 : vector<128x256xf32>
    %6 = math.exp %5 : vector<128x256xf32>
    %cst_4 = arith.constant 1.000000e+00 : f32
    %7 = vector.broadcast %cst_4 : f32 to vector<128x256xf32>
    %8 = arith.addf %7, %6 : vector<128x256xf32>
    %9 = math.log %8 : vector<128x256xf32>
    %cst_5 = arith.constant 0.000000e+00 : f32
    %10 = vector.broadcast %cst_5 : f32 to vector<128x256xf32>
    %11 = arith.maximumf %2, %10 : vector<128x256xf32>
    %12 = arith.addf %9, %11 : vector<128x256xf32>
    %cst_6 = arith.constant 0.000000e+00 : f32
    %13 = vector.broadcast %cst_6 : f32 to vector<128x256xf32>
    %14 = arith.subf %13, %2 : vector<128x256xf32>
    %cst_7 = arith.constant 0.000000e+00 : f32
    %15 = vector.broadcast %cst_7 : f32 to vector<128x256xf32>
    %16 = arith.maximumf %14, %15 : vector<128x256xf32>
    %17 = arith.addf %9, %16 : vector<128x256xf32>
    %c0_8 = arith.constant 0 : index
    %c0_9 = arith.constant 0 : index
    %18 = memref.load %arg2[%c0_8, %c0_9] : memref<8x1xf32, #tpu.memory_space<smem>>
    %c0_10 = arith.constant 0 : index
    %c0_11 = arith.constant 0 : index
    %c0_12 = arith.constant 0 : index
    %19 = vector.load %arg3[%c0_10, %c0_11, %c0_12] : memref<8x128x256xbf16, #tpu.memory_space<vmem>>, vector<1x128x256xbf16>
    %20 = vector.shape_cast %19 : vector<1x128x256xbf16> to vector<128x256xbf16>
    %21 = arith.extf %20 : vector<128x256xbf16> to vector<128x256xf32>
    %22 = vector.broadcast %18 : f32 to vector<128x256xf32>
    %23 = arith.mulf %22, %21 : vector<128x256xf32>
    %c1 = arith.constant 1 : index
    %c0_13 = arith.constant 0 : index
    %24 = memref.load %arg2[%c1, %c0_13] : memref<8x1xf32, #tpu.memory_space<smem>>
    %c1_14 = arith.constant 1 : index
    %c0_15 = arith.constant 0 : index
    %c0_16 = arith.constant 0 : index
    %25 = vector.load %arg3[%c1_14, %c0_15, %c0_16] : memref<8x128x256xbf16, #tpu.memory_space<vmem>>, vector<1x128x256xbf16>
    %26 = vector.shape_cast %25 : vector<1x128x256xbf16> to vector<128x256xbf16>
    %27 = arith.extf %26 : vector<128x256xbf16> to vector<128x256xf32>
    %28 = vector.broadcast %24 : f32 to vector<128x256xf32>
    %29 = arith.mulf %28, %27 : vector<128x256xf32>
    %30 = arith.addf %23, %29 : vector<128x256xf32>
    %c2 = arith.constant 2 : index
    %c0_17 = arith.constant 0 : index
    %31 = memref.load %arg2[%c2, %c0_17] : memref<8x1xf32, #tpu.memory_space<smem>>
    %c2_18 = arith.constant 2 : index
    %c0_19 = arith.constant 0 : index
    %c0_20 = arith.constant 0 : index
    %32 = vector.load %arg3[%c2_18, %c0_19, %c0_20] : memref<8x128x256xbf16, #tpu.memory_space<vmem>>, vector<1x128x256xbf16>
    %33 = vector.shape_cast %32 : vector<1x128x256xbf16> to vector<128x256xbf16>
    %34 = arith.extf %33 : vector<128x256xbf16> to vector<128x256xf32>
    %35 = vector.broadcast %31 : f32 to vector<128x256xf32>
    %36 = arith.mulf %35, %34 : vector<128x256xf32>
    %37 = arith.addf %30, %36 : vector<128x256xf32>
    %c3 = arith.constant 3 : index
    %c0_21 = arith.constant 0 : index
    %38 = memref.load %arg2[%c3, %c0_21] : memref<8x1xf32, #tpu.memory_space<smem>>
    %c3_22 = arith.constant 3 : index
    %c0_23 = arith.constant 0 : index
    %c0_24 = arith.constant 0 : index
    %39 = vector.load %arg3[%c3_22, %c0_23, %c0_24] : memref<8x128x256xbf16, #tpu.memory_space<vmem>>, vector<1x128x256xbf16>
    %40 = vector.shape_cast %39 : vector<1x128x256xbf16> to vector<128x256xbf16>
    %41 = arith.extf %40 : vector<128x256xbf16> to vector<128x256xf32>
    %42 = vector.broadcast %38 : f32 to vector<128x256xf32>
    %43 = arith.mulf %42, %41 : vector<128x256xf32>
    %44 = arith.addf %37, %43 : vector<128x256xf32>
    %c4 = arith.constant 4 : index
    %c0_25 = arith.constant 0 : index
    %45 = memref.load %arg2[%c4, %c0_25] : memref<8x1xf32, #tpu.memory_space<smem>>
    %c4_26 = arith.constant 4 : index
    %c0_27 = arith.constant 0 : index
    %c0_28 = arith.constant 0 : index
    %46 = vector.load %arg3[%c4_26, %c0_27, %c0_28] : memref<8x128x256xbf16, #tpu.memory_space<vmem>>, vector<1x128x256xbf16>
    %47 = vector.shape_cast %46 : vector<1x128x256xbf16> to vector<128x256xbf16>
    %48 = arith.extf %47 : vector<128x256xbf16> to vector<128x256xf32>
    %49 = vector.broadcast %45 : f32 to vector<128x256xf32>
    %50 = arith.mulf %49, %48 : vector<128x256xf32>
    %51 = arith.addf %44, %50 : vector<128x256xf32>
    %c5 = arith.constant 5 : index
    %c0_29 = arith.constant 0 : index
    %52 = memref.load %arg2[%c5, %c0_29] : memref<8x1xf32, #tpu.memory_space<smem>>
    %c5_30 = arith.constant 5 : index
    %c0_31 = arith.constant 0 : index
    %c0_32 = arith.constant 0 : index
    %53 = vector.load %arg3[%c5_30, %c0_31, %c0_32] : memref<8x128x256xbf16, #tpu.memory_space<vmem>>, vector<1x128x256xbf16>
    %54 = vector.shape_cast %53 : vector<1x128x256xbf16> to vector<128x256xbf16>
    %55 = arith.extf %54 : vector<128x256xbf16> to vector<128x256xf32>
    %56 = vector.broadcast %52 : f32 to vector<128x256xf32>
    %57 = arith.mulf %56, %55 : vector<128x256xf32>
    %58 = arith.addf %51, %57 : vector<128x256xf32>
    %c6 = arith.constant 6 : index
    %c0_33 = arith.constant 0 : index
    %59 = memref.load %arg2[%c6, %c0_33] : memref<8x1xf32, #tpu.memory_space<smem>>
    %c6_34 = arith.constant 6 : index
    %c0_35 = arith.constant 0 : index
    %c0_36 = arith.constant 0 : index
    %60 = vector.load %arg3[%c6_34, %c0_35, %c0_36] : memref<8x128x256xbf16, #tpu.memory_space<vmem>>, vector<1x128x256xbf16>
    %61 = vector.shape_cast %60 : vector<1x128x256xbf16> to vector<128x256xbf16>
    %62 = arith.extf %61 : vector<128x256xbf16> to vector<128x256xf32>
    %63 = vector.broadcast %59 : f32 to vector<128x256xf32>
    %64 = arith.mulf %63, %62 : vector<128x256xf32>
    %65 = arith.addf %58, %64 : vector<128x256xf32>
    %c7 = arith.constant 7 : index
    %c0_37 = arith.constant 0 : index
    %66 = memref.load %arg2[%c7, %c0_37] : memref<8x1xf32, #tpu.memory_space<smem>>
    %c7_38 = arith.constant 7 : index
    %c0_39 = arith.constant 0 : index
    %c0_40 = arith.constant 0 : index
    %67 = vector.load %arg3[%c7_38, %c0_39, %c0_40] : memref<8x128x256xbf16, #tpu.memory_space<vmem>>, vector<1x128x256xbf16>
    %68 = vector.shape_cast %67 : vector<1x128x256xbf16> to vector<128x256xbf16>
    %69 = arith.extf %68 : vector<128x256xbf16> to vector<128x256xf32>
    %70 = vector.broadcast %66 : f32 to vector<128x256xf32>
    %71 = arith.mulf %70, %69 : vector<128x256xf32>
    %72 = arith.addf %65, %71 : vector<128x256xf32>
    %73 = arith.mulf %72, %17 : vector<128x256xf32>
    %c0_41 = arith.constant 0 : index
    %c0_42 = arith.constant 0 : index
    %74 = vector.load %arg4[%c0_41, %c0_42] : memref<128x256xbf16, #tpu.memory_space<vmem>>, vector<128x256xbf16>
    %75 = arith.extf %74 : vector<128x256xbf16> to vector<128x256xf32>
    %cst_43 = arith.constant 8.000000e+00 : f32
    %76 = vector.broadcast %cst_43 : f32 to vector<128x256xf32>
    %77 = arith.mulf %76, %75 : vector<128x256xf32>
    %78 = arith.mulf %77, %12 : vector<128x256xf32>
    %79 = arith.addf %73, %78 : vector<128x256xf32>
    %80 = vector.shape_cast %79 : vector<128x256xf32> to vector<16x8x2x128xf32>
    %cst_44 = arith.constant dense<0.000000e+00> : vector<8x2x128xf32>
    %81 = vector.multi_reduction <add>, %80, %cst_44 [0] : vector<16x8x2x128xf32> to vector<8x2x128xf32>
    %cst_45 = arith.constant dense<0.000000e+00> : vector<8x128xf32>
    %82 = vector.multi_reduction <add>, %81, %cst_45 [1] : vector<8x2x128xf32> to vector<8x128xf32>
    %c0_i32 = arith.constant 0 : i32
    %83 = arith.cmpi eq, %arg1, %c0_i32 : i32
    %84 = arith.extui %83 : i1 to i32
    %c0_i32_46 = arith.constant 0 : i32
    %85 = arith.cmpi ne, %84, %c0_i32_46 : i32
    scf.if %85 {
      %c0_49 = arith.constant 0 : index
      %c0_50 = arith.constant 0 : index
      %c0_51 = arith.constant 0 : index
      %89 = vector.load %arg7[%c0_49, %c0_50, %c0_51] : memref<1x8x128xf32, #tpu.memory_space<vmem>>, vector<1x8x128xf32>
      %90 = vector.shape_cast %89 : vector<1x8x128xf32> to vector<8x128xf32>
      %91 = vector.shape_cast %82 : vector<8x128xf32> to vector<1x8x128xf32>
      tpu.vector_store %arg7[%c0_49, %c0_50, %c0_51], %91 {strides = array<i32>} : memref<1x8x128xf32, #tpu.memory_space<vmem>>, vector<1x8x128xf32>,
    } else {
    }
    %c0_i32_47 = arith.constant 0 : i32
    %86 = arith.cmpi sgt, %arg1, %c0_i32_47 : i32
    %87 = arith.extui %86 : i1 to i32
    %c0_i32_48 = arith.constant 0 : i32
    %88 = arith.cmpi ne, %87, %c0_i32_48 : i32
    scf.if %88 {
      %c0_49 = arith.constant 0 : index
      %c0_50 = arith.constant 0 : index
      %c0_51 = arith.constant 0 : index
      %89 = vector.load %arg7[%c0_49, %c0_50, %c0_51] : memref<1x8x128xf32, #tpu.memory_space<vmem>>, vector<1x8x128xf32>
      %90 = vector.shape_cast %89 : vector<1x8x128xf32> to vector<8x128xf32>
      %91 = arith.addf %90, %82 : vector<8x128xf32>
      %c0_52 = arith.constant 0 : index
      %c0_53 = arith.constant 0 : index
      %c0_54 = arith.constant 0 : index
      %92 = vector.load %arg7[%c0_52, %c0_53, %c0_54] : memref<1x8x128xf32, #tpu.memory_space<vmem>>, vector<1x8x128xf32>
      %93 = vector.shape_cast %92 : vector<1x8x128xf32> to vector<8x128xf32>
      %94 = vector.shape_cast %91 : vector<8x128xf32> to vector<1x8x128xf32>
      tpu.vector_store %arg7[%c0_52, %c0_53, %c0_54], %94 {strides = array<i32>} : memref<1x8x128xf32, #tpu.memory_space<vmem>>, vector<1x8x128xf32>,
    } else {
    }
    return
  }
  func.func @transform_0(%arg0: i32, %arg1: i32) -> (i32, i32) {
    %c0_i32 = arith.constant 0 : i32
    %c0_i32_0 = arith.constant 0 : i32
    %c0_i32_1 = arith.constant 0 : i32
    return %c0_i32, %c0_i32_0 : i32, i32
  }
  func.func @transform_1(%arg0: i32, %arg1: i32) -> (i32, i32, i32) {
    %c0_i32 = arith.constant 0 : i32
    %c0_i32_0 = arith.constant 0 : i32
    return %c0_i32, %arg0, %arg1 : i32, i32, i32
  }
  func.func @transform_2(%arg0: i32, %arg1: i32) -> (i32, i32) {
    %c0_i32 = arith.constant 0 : i32
    return %arg0, %arg1 : i32, i32
  }
  func.func @transform_3(%arg0: i32, %arg1: i32) -> (i32, i32) {
    %c0_i32 = arith.constant 0 : i32
    %c0_i32_0 = arith.constant 0 : i32
    return %arg0, %c0_i32 : i32, i32
  }
  func.func @transform_4(%arg0: i32, %arg1: i32) -> (i32, i32) {
    %c0_i32 = arith.constant 0 : i32
    %c0_i32_0 = arith.constant 0 : i32
    return %c0_i32, %arg1 : i32, i32
  }
  func.func @transform_5(%arg0: i32, %arg1: i32) -> (i32, i32, i32) {
    %c0_i32 = arith.constant 0 : i32
    %c0_i32_0 = arith.constant 0 : i32
    %c0_i32_1 = arith.constant 0 : i32
    return %arg0, %c0_i32, %c0_i32_0 : i32, i32, i32
  }
}

</mosaic_0001>

<bundles_post_ra>
// kernel: tpu_custom_call.1
= control target key start
LH: loop header
LB: loop body
LE: loop exit
PB: predicated region body
PF: predicated region fallthrough
CT: control target
= control target key end

     0   :  { %s6292_s0 = inlined_call_operand.vmem [shape: f32[8,1], index: 0, kind: input, shape index: {}]   ;;  %s6293_s1 = inlined_call_operand.hbm [shape: bf16[8,256,256], index: 1, kind: input, shape index: {}]   ;;  %s6294_s2 = inlined_call_operand.vmem [shape: bf16[256,256], index: 2, kind: input, shape index: {}]   ;;  %s6295_s3 = inlined_call_operand.vmem [shape: f32[256,16], index: 3, kind: input, shape index: {}]   ;;  %s6296_s4 = inlined_call_operand.vmem [shape: f32[16,256], index: 4, kind: input, shape index: {}]   ;;  %s6297_s5 = inlined_call_operand.hbm [shape: f32[2,8,128], index: 5, kind: output, shape index: {}]  }
   0x1   :  { %6302 = sst [smem:[#allocation63_spill]] %s6292_s0 }
   0x2   :  { %10 = vsyncpa [#allocation5], 0 }
   0x3   :  { %11 = vsyncpa [#allocation3], 0 }
   0x4   :  { %13 = vsyncpa [#allocation3 + $0x1], 0 }
   0x5   :  { %14 = vsyncpa [#allocation4], 0 }
   0x6   :  { %16 = vsyncpa [#allocation4 + $0x1], 0  ;;  %s3920_s18 = smov 0   ;;  %s3922_s19 = smov 0  }
   0x7   :  { %s3924_s20 = smov 0   ;;  %s3926_s21 = smov 0  }
   0x8   :  { %s3928_s22 = smov 0   ;;  %s3930_s23 = smov 0  }
   0x9 LB: > { %s3384_s24 = sadd.s32 4294967295, %s3879_s23   ;;  %s3385_s25 = sadd.s32 4294967294, %s3879_s23   ;;  %s3879_s23 = sphi %s3930_s23, %s22_s23   ;;  %s3875_s22 = sphi %s3928_s22, %s6430_s22   ;;  %s3871_s21 = sphi %s3926_s21, %s6429_s21   ;;  %s3867_s20 = sphi %s3924_s20, %s6428_s20   ;;  %s3863_s19 = sphi %s3922_s19, %s6427_s19   ;;  %s3859_s18 = sphi %s3920_s18, %s6426_s18  }
   0xa   : > { %s34_s26 = sadd.s32 1, %s3875_s22  ;;  %s64_s27 = sadd.s32 1, %s3867_s20 }
   0xb   : > { %p36_p0 = scmp.ge.s32.totalorder %s34_s26, 2  ;;  %p71_p1 = scmp.ne.s32.totalorder %s3867_s20, %s3863_s19 }
   0xc   : > { %p72_p2 = scmp.eq.s32.totalorder %s3879_s23, 0  ;;  %p77_p3 = scmp.ne.s32.totalorder %s3863_s19, %s3859_s18 }
   0xd   : > { %s6432_s26 = smov (%p36_p0, %s34_s26), 0  ;;  %p3965_p5 = scmp.eq.s32.totalorder %s3384_s24, 0 }
   0xe   : > { %6303 = sst [smem:[#allocation14_spill]] %s6432_s26  ;;  %p3961_p4 = por %p72_p2, %p71_p1 }
   0xf   : > { %s59_s30 = ssub.s32 %s3875_s22, %s6432_s26  ;;  %p181_p6 = scmp.eq.s32.totalorder %s3384_s24, 1 }
  0x10   : > { %p62_p7 = scmp.eq.s32.totalorder %s59_s30, 0  ;;  %p3973_p8 = por %p3965_p5, %p77_p3 }
  0x11   : > { %p3977_p9 = por %p181_p6, %p71_p1  ;;  %p187_p10 = scmp.eq.s32.totalorder %s3385_s25, 1 }
  0x12   : > { %s3982_s8 = scalar_select %p62_p7, %s3867_s20, %s64_s27  }
  0x13   : > { %p3984_p11 = por %p187_p10, %p77_p3  ;;  %p3386_p12 = scmp.ge.s32.totalorder %s3879_s23, 1 }
  0x14   : > { %p194_p13 = scmp.lt.s32.totalorder %s3879_s23, 3  ;;  %s6310_s0 = sld [smem:[#allocation63_spill]] }
  0x15   : > { %s3881_s14 = smov [#allocation2]   ;;  %p3389_p3 = scmp.ge.s32.totalorder %s3879_s23, 2 }
  0x16   : > { %p3990_p0 = pnand %p3386_p12, %p194_p13 }
  0x18   : > { %p3582_p1 = pneg %p3990_p0  ;;  %222 = sbr.rel (%p3389_p3) target bundleno = 43 (0x2b), region = 24 }
  0x1a   : > { %s206_s13 = sshll.u32 %s6310_s0, 4  ;;  %p3583_p2 = pnand %p3582_p1, %p3965_p5  ;;  %s207_s13 = int_to_ptr.vmem [resolvable:$true] %s206_s13 }
  0x1c   : > { %3585 = dma.vmem_to_smem (!%p3583_p2), %s207_s13, 128, %s3881_s14, [#allocation5]  }
  0x1d   : > { %s226_s15 = sand.u32 1, %s3867_s20   ;;  %s3561_s16 = sshll.u32 %s3875_s22, 7 }
  0x1e   : > { %s3390_s17 = sshll.u32 %s226_s15, 10  ;;  %s238_s27 = scalar_lea.hbm %s6293_s1, %s3561_s16 }
  0x1f   : > { %s3569_s30 = scalar_select %p3961_p4, [#allocation0], [#allocation10] }
  0x20   : > { %s251_s11 = sshll.u32 %s238_s27, 4  ;;  %s230_s12 = scalar_lea.vmem [#allocation6], %s3390_s17  ;;  %s252_s11 = int_to_ptr.hbm [resolvable:$true] %s251_s11 }
  0x21   : > { %s253_s13 = sshll.u32 %s230_s12, 4  ;;  %s243_s14 = sld [smem:[%s3569_s30]]   ;;  %s254_s13 = int_to_ptr.vmem [resolvable:$true] %s253_s13 }
  0x22   : > { %s3882_s0 = smov 4096   ;;  %s3883_s26 = smov 2048  }
  0x23   : > { %3570 = sst [smem:[#allocation9]] (%p3961_p4), %s3882_s0  ;;  %s3884_s24 = smov 16  }
  0x24   : > { %3571 = sst [smem:[#allocation9 + $0x1]] (%p3961_p4), %s3883_s26  ;;  %s3885_s16 = smov 128  }
  0x25   : > { %3572 = sst [smem:[#allocation9 + $0x2]] (%p3961_p4), %s3884_s24  ;;  %s3886_s27 = smov 8  }
  0x26   : > { %3573 = sst [smem:[#allocation9 + $0x3]] (%p3961_p4), %s3885_s16  ;;  %s227_s30 = scalar_lea.sflag [#allocation3], %s226_s15 }
  0x27   : > { %s3394_s25 = sshll.u32 %s243_s14, 26  ;;  %3574 = sst [smem:[#allocation9 + $0x4]] (%p3961_p4), %s3885_s16 }
  0x28   : > { %s3395_s17 = sadd.s32 134217728, %s3394_s25  ;;  %3575 = sst [smem:[#allocation9 + $0x5]] (%p3961_p4), %s3886_s27 }
  0x29   : > { %s3887_s12 = smov [#allocation8]  }
  0x2a   : > { %3576 = dma.general (%p3961_p4), %s252_s11, 16384, %s254_s13, %s227_s30, %s3887_s12, [#allocation9], %s3395_s17, 0  }
  0x2b PF: > { %302 = sbr.rel (%p3990_p0) target bundleno = 694 (0x2b6), region = 40 }
  0x30   : > { %3846 = dma.done.wait (%p3965_p5), [#allocation5], 128  }
  0x31   : > { %3848 = vsyncadd (%p3965_p5), [#allocation5], 4294967168  ;;  %s4032_s0 = sand.u32 1, %s3863_s19  }
  0x32   : > { %s3398_s26 = sshll.u32 %s4032_s0, 10  ;;  %s310_s15 = scalar_lea.sflag [#allocation3], %s4032_s0 }
  0x33   : > { %s4036_s28 = scalar_lea.vmem [#allocation6], %s3398_s26 }
  0x34   : > { %3850 = dma.done.wait (%p3973_p8), %s310_s15, 16384  }
  0x35   : > { %3852 = vsyncadd (%p3973_p8), %s310_s15, 4294950912 }
  0x36   : > { %319 = sfence }
  0x37   : > { %v406_v0 = vld [vmem:[%s6296_s4 + $0x10] sm:$0xff]  ;;  %v407_v1 = vld [vmem:[%s6296_s4 + $0x18] sm:$0xff]  ;;  %v404_v2 = vld [vmem:[%s6296_s4] sm:$0xff]  ;;  %s3400_s16 = sshll.u32 %s3871_s21, 4  ;;  %vm408_vm0 = vcmask 130048   ;;  %s971_s26 = sld [smem:[#allocation2]] }
  0x38   : > { %471 = vmatpush.msra.mxu0 %v406_v0  ;;  %3563 = vmatpush.msra.mxu2 %v406_v0  ;;  %v405_v3 = vld [vmem:[%s6296_s4 + $0x8] sm:$0xff]  ;;  %p366_p4 = scmp.lt.s32.totalorder %s3400_s16, 31  ;;  %s3437_s15 = sld [smem:[#allocation2 + $0x80]]  ;;  %v972_v20 = vld [vmem:[%s4036_s28] sm:$0xff]  ;;  %vm2035_vm1 = vcmask 1047556   ;;  %vm2867_vm2 = vcmask 1041408  }
  0x39   : > { %536 = vmatpush.msra.mxu1 %v407_v1  ;;  %3565 = vmatpush.msra.mxu3 %v407_v1  ;;  %s3454_s10 = sld [smem:[#allocation2 + $0x100]]  ;;  %v3438_v21 = vld [vmem:[%s4036_s28 + $0x80] sm:$0xff]  ;;  %v988_v22 = vunpack.c.l.bf16 %v972_v20  ;;  %v989_v24 = vunpack.c.h.bf16 %v972_v20  ;;  %vm3184_vm3 = vcmask 1041409   ;;  %vm3186_vm4 = vcmask 1042434  }
  0x3a   : > { %472 = vmatpush.msra.mxu0 %v404_v2  ;;  %3564 = vmatpush.msra.mxu2 %v404_v2  ;;  %s6434_s16 = smov (!%p366_p4, %s3400_s16), 31  ;;  %s3471_s11 = sld [smem:[#allocation2 + $0x180]]  ;;  %v1071_v23 = vunpack.c.l.bf16 %v3438_v21  ;;  %v1072_v25 = vunpack.c.h.bf16 %v3438_v21  ;;  %v3455_v28 = vld [vmem:[%s4036_s28 + $0x100] sm:$0xff]  ;;  %vm3188_vm5 = vcmask 1043459   ;;  %vm3190_vm6 = vcmask 1044484  }
  0x3b   : > { %537 = vmatpush.msra.mxu1 %v405_v3  ;;  %3566 = vmatpush.msra.mxu3 %v405_v3  ;;  %s3562_s17 = sshll.u32 %s6434_s16, 3  ;;  %s4115_s29 = sld [smem:[#allocation2 + $0x200]]  ;;  %v1186_v31 = vunpack.c.l.bf16 %v3455_v28  ;;  %v3472_v34 = vld [vmem:[%s4036_s28 + $0x180] sm:$0xff]  ;;  %v1187_v36 = vunpack.c.h.bf16 %v3455_v28  ;;  %vm3192_vm7 = vcmask 1045509   ;;  %vm3194_vm8 = vcmask 1046534  }
  0x3c   : > { %s4063_s12 = scalar_lea.vmem %s6295_s3, %s3562_s17  ;;  %s4122_s13 = sld [smem:[#allocation2 + $0x280]]  ;;  %v1301_v39 = vunpack.c.l.bf16 %v3472_v34  ;;  %v1302_v40 = vunpack.c.h.bf16 %v3472_v34  ;;  %v3489_v42 = vld [vmem:[%s4036_s28 + $0x200] sm:$0xff]  ;;  %vm3196_vm9 = vcmask 1047559  }
  0x3d   : > { %v388_v4 = vld [vmem:[%s4063_s12] sm:$0xff]  ;;  %v389_v6 = vld [vmem:[%s4063_s12 + $0x8] sm:$0xff]  ;;  %v390_v8 = vld [vmem:[%s4063_s12 + $0x10] sm:$0xff]  ;;  %v4117_v26 = vstv %s971_s26  ;;  %s4130_s14 = sld [smem:[#allocation2 + $0x300]]  ;;  %v1416_v48 = vunpack.c.l.bf16 %v3489_v42  ;;  %v1417_v53 = vunpack.c.h.bf16 %v3489_v42  ;;  %s4165_s27 = scalar_lea.vmem %s6294_s2, %s3562_s17 }
  0x3e   : > { %v396_v5 = vld [vmem:[%s4063_s12 + $0x40] sm:$0xff]  ;;  %3405 = vmatmul.msk.f32.vlgmr.msra.gmra.mxu0 %vm408_vm0, %v388_v4  ;;  %3421 = vmatmul.msk.f32.vlgmr.msra.gmra.mxu1 %vm408_vm0, %v388_v4  ;;  %v397_v7 = vld [vmem:[%s4063_s12 + $0x48] sm:$0xff]  ;;  %v398_v9 = vld [vmem:[%s4063_s12 + $0x50] sm:$0xff]  ;;  %v4119_v27 = vstv %s3437_s15  ;;  %v1021_v29 = vmul.f32 %v4117_v26, %v988_v22  ;;  %v1022_v32 = vmul.f32 %v4117_v26, %v989_v24  ;;  %s4137_s24 = sld [smem:[#allocation2 + $0x380]]  ;;  %s3557_s16 = sshll.u32 %s3871_s21, 3 }
  0x3f   : > { %3413 = vmatmul.msk.f32.vlgmr.msra.gmra.mxu2 %vm408_vm0, %v396_v5  ;;  %3429 = vmatmul.msk.f32.vlgmr.msra.gmra.mxu3 %vm408_vm0, %v396_v5  ;;  %v391_v10 = vld [vmem:[%s4063_s12 + $0x18] sm:$0xff]  ;;  %v392_v12 = vld [vmem:[%s4063_s12 + $0x20] sm:$0xff]  ;;  %v393_v14 = vld [vmem:[%s4063_s12 + $0x28] sm:$0xff]  ;;  %v1104_v30 = vmul.f32 %v4119_v27, %v1071_v23  ;;  %v4127_v33 = vstv %s3454_s10  ;;  %v1105_v35 = vmul.f32 %v4119_v27, %v1072_v25  ;;  %s3231_s10 = scalar_lea.sflag [#allocation4], %s4032_s0 }
  0x40   : > { %v399_v11 = vld [vmem:[%s4063_s12 + $0x58] sm:$0xff]  ;;  %v400_v13 = vld [vmem:[%s4063_s12 + $0x60] sm:$0xff]  ;;  %v401_v15 = vld [vmem:[%s4063_s12 + $0x68] sm:$0xff]  ;;  %v1219_v38 = vmul.f32 %v4127_v33, %v1186_v31  ;;  %v4134_v41 = vstv %s3471_s11  ;;  %v1220_v44 = vmul.f32 %v4127_v33, %v1187_v36 }
  0x41   : > { %v394_v16 = vld [vmem:[%s4063_s12 + $0x30] sm:$0xff]  ;;  %v395_v18 = vld [vmem:[%s4063_s12 + $0x38] sm:$0xff]  ;;  %v1136_v37 = vadd.f32 %v1104_v30, %v1021_v29  ;;  %v1137_v43 = vadd.f32 %v1105_v35, %v1022_v32  ;;  %v4141_v45 = vld [vmem:[%s4036_s28 + $0x40] sm:$0xff]  ;;  %v1334_v47 = vmul.f32 %v4134_v41, %v1301_v39  ;;  %v1335_v49 = vmul.f32 %v4134_v41, %v1302_v40 }
  0x42   : > { %v402_v17 = vld [vmem:[%s4063_s12 + $0x70] sm:$0xff]  ;;  %v403_v19 = vld [vmem:[%s4063_s12 + $0x78] sm:$0xff]  ;;  %v4146_v50 = vstv %s4115_s29  ;;  %v3506_v51 = vld [vmem:[%s4036_s28 + $0x280] sm:$0xff]  ;;  %v1004_v54 = vunpack.c.l.bf16 %v4141_v45  ;;  %s3241_s12 = scalar_lea.hbm %s6297_s5, %s3557_s16 }
  0x43   : > { %v1251_v46 = vadd.f32 %v1219_v38, %v1136_v37  ;;  %v1252_v52 = vadd.f32 %v1220_v44, %v1137_v43  ;;  %v1449_v56 = vmul.f32 %v4146_v50, %v1416_v48  ;;  %v1531_v57 = vunpack.c.l.bf16 %v3506_v51  ;;  %v4152_v59 = vld [vmem:[%s4036_s28 + $0xc0] sm:$0xff]  ;;  %s3245_s15 = sshll.u32 %s3241_s12, 4  ;;  %s3246_s15 = int_to_ptr.hbm [resolvable:$true] %s3245_s15 }
  0x44   : > { %v1532_v58 = vunpack.c.h.bf16 %v3506_v51  ;;  %v4155_v60 = vstv %s4122_s13  ;;  %v3523_v61 = vld [vmem:[%s4036_s28 + $0x300] sm:$0xff]  ;;  %v1450_v63 = vmul.f32 %v4146_v50, %v1417_v53  ;;  %v1037_v0 = vmul.f32 %v4117_v26, %v1004_v54  ;;  %s3807_s11 = sshra.s32 %s3246_s15, 4  ;;  %s3808_s11 = int_to_ptr.hbm [resolvable:$true] %s3807_s11 }
  0x45   : > { %v1366_v55 = vadd.f32 %v1334_v47, %v1251_v46  ;;  %v1367_v62 = vadd.f32 %v1335_v49, %v1252_v52  ;;  %v1564_v2 = vmul.f32 %v4155_v60, %v1531_v57  ;;  %v1646_v3 = vunpack.c.l.bf16 %v3523_v61  ;;  %v4185_v20 = vld [vmem:[%s4036_s28 + $0x1c0] sm:$0xff]  ;;  %s3809_s29 = scalar_lea.hbm %s3808_s11, 8  ;;  %p3814_p8 = scmp.lt.s32.totalorder %s3808_s11, %s6297_s5 }
  0x46   : > { %3406 = vmatmul.msk.f32.gmra.mxu0 %vm408_vm0, %v389_v6  ;;  %3422 = vmatmul.msk.f32.gmra.mxu1 %vm408_vm0, %v389_v6  ;;  %v1565_v4 = vmul.f32 %v4155_v60, %v1532_v58  ;;  %v4170_v5 = vstv %s4130_s14  ;;  %v3540_v6 = vld [vmem:[%s4036_s28 + $0x380] sm:$0xff]  ;;  %v1317_v30 = vunpack.c.l.bf16 %v4185_v20  ;;  %v3888_v38 = vmov 1983009808   ;;  %p3810_p5 = scmp.ne.s32.totalorder %s3808_s11, %s3809_s29 }
  0x47   : > { %3414 = vmatmul.msk.f32.gmra.mxu2 %vm408_vm0, %v397_v7  ;;  %3430 = vmatmul.msk.f32.gmra.mxu3 %vm408_vm0, %v397_v7  ;;  %v1481_v1 = vadd.f32 %v1449_v56, %v1366_v55  ;;  %v1482_v7 = vadd.f32 %v1450_v63, %v1367_v62  ;;  %v4188_v21 = vld [vmem:[%s4036_s28 + $0x240] sm:$0xff]  ;;  %v2038_v39 = vunpack.c.l.s4 %v3888_v38  ;;  %v1005_v47 = vunpack.c.h.bf16 %v4141_v45 }
  0x48   : > { %v4192_v25 = vld [vmem:[%s4036_s28 + $0x2c0] sm:$0xff]  ;;  %v1432_v31 = vunpack.c.l.bf16 %v4188_v21  ;;  %v1350_v42 = vmul.f32 %v4134_v41, %v1317_v30  ;;  %v1088_v52 = vunpack.c.h.bf16 %v4152_v59  ;;  %v1318_v30 = vunpack.c.h.bf16 %v4185_v20  ;;  %p3811_p6 = pnand %p3810_p5, %p3977_p9 }
  0x49   : > { %v4200_v36 = vld [vmem:[%s4036_s28 + $0x340] sm:$0xff]  ;;  %v1547_v43 = vunpack.c.l.bf16 %v4192_v25  ;;  %v4222_v58 = vunpack.c.0.s8 %v2038_v39 }
  0x4a   : > { %v4203_v37 = vld [vmem:[%s4036_s28 + $0x3c0] sm:$0xff]  ;;  %v1465_v48 = vmul.f32 %v4146_v50, %v1432_v31  ;;  %v1662_v49 = vunpack.c.l.bf16 %v4200_v36  ;;  %v1433_v31 = vunpack.c.h.bf16 %v4188_v21  ;;  %p3812_p7 = pneg %p3811_p6 }
  0x4b   : > { %v4208_v46 = vld [vmem:[%s4165_s27 + $0x40] sm:$0xff]  ;;  %v1777_v51 = vunpack.c.l.bf16 %v4203_v37  ;;  %v1580_v62 = vmul.f32 %v4155_v60, %v1547_v43 }
  0x4c   : > { %v1922_v56 = vunpack.c.l.bf16 %v4208_v46 }
  0x4e   : > { %3407 = vmatmul.msk.f32.gmra.mxu0 %vm408_vm0, %v390_v8  ;;  %3423 = vmatmul.msk.f32.gmra.mxu1 %vm408_vm0, %v390_v8  ;;  %v1647_v8 = vunpack.c.h.bf16 %v3523_v61 }
  0x4f   : > { %3415 = vmatmul.msk.f32.gmra.mxu2 %vm408_vm0, %v398_v9  ;;  %3431 = vmatmul.msk.f32.gmra.mxu3 %vm408_vm0, %v398_v9  ;;  %v1087_v9 = vunpack.c.l.bf16 %v4152_v59 }
  0x56   : > { %3408 = vmatmul.msk.f32.gmra.mxu0 %vm408_vm0, %v391_v10  ;;  %3424 = vmatmul.msk.f32.gmra.mxu1 %vm408_vm0, %v391_v10  ;;  %v1596_v10 = vadd.f32 %v1564_v2, %v1481_v1  ;;  %v1121_v1 = vmul.f32 %v4119_v27, %v1088_v52 }
  0x57   : > { %3416 = vmatmul.msk.f32.gmra.mxu2 %vm408_vm0, %v399_v11  ;;  %3432 = vmatmul.msk.f32.gmra.mxu3 %vm408_vm0, %v399_v11  ;;  %v1679_v11 = vmul.f32 %v4170_v5, %v1646_v3 }
  0x59   : > { %v1711_v22 = vadd.f32 %v1679_v11, %v1596_v10  ;;  %v4239_v10 = vmul.f32 8.0, %v1922_v56  ;;  %v1778_v56 = vunpack.c.h.bf16 %v4203_v37  ;;  %v4282_v37 = vld [vmem:[%s4036_s28 + $0x108] sm:$0xff] }
  0x5e   : > { %3409 = vmatmul.msk.f32.gmra.mxu0 %vm408_vm0, %v392_v12  ;;  %3425 = vmatmul.msk.f32.gmra.mxu1 %vm408_vm0, %v392_v12  ;;  %v1761_v12 = vunpack.c.l.bf16 %v3540_v6 }
  0x5f   : > { %3417 = vmatmul.msk.f32.gmra.mxu2 %vm408_vm0, %v400_v13  ;;  %3433 = vmatmul.msk.f32.gmra.mxu3 %vm408_vm0, %v400_v13  ;;  %v1762_v13 = vunpack.c.h.bf16 %v3540_v6 }
  0x66   : > { %3410 = vmatmul.msk.f32.gmra.mxu0 %vm408_vm0, %v393_v14  ;;  %3426 = vmatmul.msk.f32.gmra.mxu1 %vm408_vm0, %v393_v14  ;;  %v4176_v14 = vld [vmem:[%s4036_s28 + $0x140] sm:$0xff] }
  0x67   : > { %3418 = vmatmul.msk.f32.gmra.mxu2 %vm408_vm0, %v401_v15  ;;  %3434 = vmatmul.msk.f32.gmra.mxu3 %vm408_vm0, %v401_v15  ;;  %v4179_v15 = vstv %s4137_s24  ;;  %v1202_v24 = vunpack.c.l.bf16 %v4176_v14  ;;  %s3813_s24 = scalar_lea.hbm %s6297_s5, 16 }
  0x68   : > { %v1794_v28 = vmul.f32 %v4179_v15, %v1761_v12  ;;  %v1795_v34 = vmul.f32 %v4179_v15, %v1762_v13  ;;  %v1810_v6 = vmul.f32 %v4179_v15, %v1777_v51  ;;  %v3889_v12 = vmov 1934713408   ;;  %p3815_p10 = scmp.lt.s32.totalorder %s3813_s24, %s3809_s29 }
  0x69   : > { %v1235_v35 = vmul.f32 %v4127_v33, %v1202_v24  ;;  %v2060_v13 = vunpack.c.l.s4 %v3889_v12  ;;  %v1466_v51 = vmul.f32 %v4146_v50, %v1433_v31 }
  0x6a   : > { %v4215_v53 = vadd.f32 %v1794_v28, %v1711_v22  ;;  %p3816_p12 = por %p3815_p10, %p3814_p8 }
  0x6b   : > { %v4254_v38 = vunpack.c.0.s8 %v2060_v13 }
  0x6c   : > { %p3817_p13 = pnand %p3816_p12, %p3812_p7 }
  0x6e   : > { %3411 = vmatmul.msk.f32.gmra.mxu0 %vm408_vm0, %v394_v16  ;;  %3427 = vmatmul.msk.f32.gmra.mxu1 %vm408_vm0, %v394_v16  ;;  %v1890_v16 = vld [vmem:[%s4165_s27] sm:$0xff] }
  0x6f   : > { %3419 = vmatmul.msk.f32.gmra.mxu2 %vm408_vm0, %v402_v17  ;;  %3435 = vmatmul.msk.f32.gmra.mxu3 %vm408_vm0, %v402_v17  ;;  %v1597_v17 = vadd.f32 %v1565_v4, %v1482_v7  ;;  %v1906_v29 = vunpack.c.l.bf16 %v1890_v16  ;;  %v1907_v40 = vunpack.c.h.bf16 %v1890_v16  ;;  %v1695_v4 = vmul.f32 %v4170_v5, %v1662_v49 }
  0x70   : > { %v1351_v49 = vmul.f32 %v4134_v41, %v1318_v30  ;;  %v4293_v30 = vld [vmem:[%s4036_s28 + $0x208] sm:$0xff] }
  0x71   : > { %v4217_v54 = vmul.f32 8.0, %v1906_v29  ;;  %v4226_v61 = vmul.f32 8.0, %v1907_v40  ;;  %v1548_v40 = vunpack.c.h.bf16 %v4192_v25 }
  0x76   : > { %3412 = vmatmul.msk.f32.gmra.mxu0 %vm408_vm0, %v395_v18  ;;  %3428 = vmatmul.msk.f32.gmra.mxu1 %vm408_vm0, %v395_v18  ;;  %v1680_v18 = vmul.f32 %v4170_v5, %v1647_v8 }
  0x77   : > { %3420 = vmatmul.msk.f32.gmra.mxu2 %vm408_vm0, %v403_v19  ;;  %3436 = vmatmul.msk.f32.gmra.mxu3 %vm408_vm0, %v403_v19  ;;  %v1120_v19 = vmul.f32 %v4119_v27, %v1087_v9 }
  0x78   : > { %v1712_v32 = vadd.f32 %v1680_v18, %v1597_v17  ;;  %v1203_v17 = vunpack.c.h.bf16 %v4176_v14 }
  0x79   : > { %v1152_v23 = vadd.f32 %v1120_v19, %v1037_v0  ;;  %v1038_v0 = vmul.f32 %v4117_v26, %v1005_v47 }
  0x7a   : > { %v4224_v45 = vadd.f32 %v1795_v34, %v1712_v32  ;;  %v1236_v29 = vmul.f32 %v4127_v33, %v1203_v17  ;;  %v1811_v17 = vmul.f32 %v4179_v15, %v1778_v56  ;;  %v4309_v56 = vld [vmem:[%s4036_s28 + $0x308] sm:$0xff] }
  0x7b   : > { %v1267_v44 = vadd.f32 %v1235_v35, %v1152_v23  ;;  %v1153_v23 = vadd.f32 %v1121_v1, %v1038_v0  ;;  %v1581_v0 = vmul.f32 %v4155_v60, %v1548_v40 }
  0x7d   : > { %v1382_v55 = vadd.f32 %v1350_v42, %v1267_v44  ;;  %v1268_v43 = vadd.f32 %v1236_v29, %v1153_v23  ;;  %v4288_v23 = vld [vmem:[%s4036_s28 + $0x188] sm:$0xff]  ;;  %v1188_v29 = vunpack.c.l.bf16 %v4282_v37 }
  0x7f   : > { %v1497_v3 = vadd.f32 %v1465_v48, %v1382_v55  ;;  %v1663_v55 = vunpack.c.h.bf16 %v4200_v36  ;;  %v4279_v36 = vld [vmem:[%s4036_s28 + $0x88] sm:$0xff] }
  0x81   : > { %v1612_v16 = vadd.f32 %v1580_v62, %v1497_v3  ;;  %v1696_v13 = vmul.f32 %v4170_v5, %v1663_v55  ;;  %v1418_v55 = vunpack.c.l.bf16 %v4293_v30 }
  0x83   : > { %v1727_v34 = vadd.f32 %v1695_v4, %v1612_v16 }
  0x85   : > { %v4266_v25 = vadd.f32 %v1810_v6, %v1727_v34 }
  0xbb   : > { %v4220_v57 = vpop.f32.mrf.mxu0  ;;  %v4230_v59 = vpop.f32.mrf.mxu1 }
  0xbc   : > { %v587_v63 = vand.u32 2147483647, %v4220_v57  ;;  %v588_v2 = vand.u32 2147483647, %v4230_v59  ;;  %v811_v8 = vmax.f32 %v4220_v57, 0.0  ;;  %v875_v9 = vsub.f32 0.0, %v4220_v57 }
  0xbd   : > { %v812_v19 = vmax.f32 %v4230_v59, 0.0  ;;  %v876_v22 = vsub.f32 0.0, %v4230_v59 }
  0xbe   : > { %v619_v7 = vsub.f32 0.0, %v587_v63  ;;  %v620_v11 = vsub.f32 0.0, %v588_v2  ;;  %v4249_v32 = vmax.f32 %v875_v9, 0.0  ;;  %v1383_v63 = vadd.f32 %v1351_v49, %v1268_v43  ;;  %v4273_v2 = vld [vmem:[%s4036_s28 + $0x8] sm:$0xff] }
  0xbf   : > { %v4258_v42 = vmax.f32 %v876_v22, 0.0  ;;  %v990_v22 = vunpack.c.l.bf16 %v4273_v2  ;;  %v1221_v43 = vmul.f32 %v4127_v33, %v1188_v29 }
  0xc0   : > { %v651_v18 = vmul.f32 1.442695, %v619_v7  ;;  %v653_v24 = vmul.f32 1.442695, %v620_v11  ;;  %v1923_v7 = vunpack.c.h.bf16 %v4208_v46  ;;  %v1498_v12 = vadd.f32 %v1466_v51, %v1383_v63 }
  0xc1   : > { %v1023_v34 = vmul.f32 %v4117_v26, %v990_v22 }
  0xc2   : > { %v4244_v28 = vpop.f32.mrf.mxu2  ;;  %3650 = vpow2.f32 %v651_v18  ;;  %v4252_v35 = vpop.f32.mrf.mxu3  ;;  %v1613_v46 = vadd.f32 %v1581_v0, %v1498_v12 }
  0xc3   : > { %v603_v14 = vand.u32 2147483647, %v4244_v28  ;;  %3652 = vpow2.f32 %v653_v24  ;;  %v604_v39 = vand.u32 2147483647, %v4252_v35  ;;  %v827_v21 = vmax.f32 %v4244_v28, 0.0  ;;  %v4261_v44 = vpop.f32.mrf.mxu0 }
  0xc4   : > { %v891_v47 = vsub.f32 0.0, %v4244_v28  ;;  %v589_v1 = vand.u32 2147483647, %v4261_v44  ;;  %v828_v4 = vmax.f32 %v4252_v35, 0.0  ;;  %v892_v6 = vsub.f32 0.0, %v4252_v35 }
  0xc5   : > { %v635_v20 = vsub.f32 0.0, %v603_v14  ;;  %v636_v48 = vsub.f32 0.0, %v604_v39  ;;  %v1073_v24 = vunpack.c.l.bf16 %v4279_v36  ;;  %v877_v14 = vsub.f32 0.0, %v4261_v44  ;;  %v4298_v39 = vld [vmem:[%s4036_s28 + $0x288] sm:$0xff] }
  0xc6   : > { %v621_v18 = vsub.f32 0.0, %v589_v1  ;;  %v1728_v40 = vadd.f32 %v1696_v13, %v1613_v46  ;;  %v4303_v51 = vmax.f32 %v891_v47, 0.0  ;;  %v4315_v47 = vmul.f32 8.0, %v1923_v7  ;;  %v4321_v13 = vld [vmem:[%s4036_s28 + $0x388] sm:$0xff] }
  0xc7   : > { %v683_v52 = vmul.f32 1.442695, %v635_v20  ;;  %v685_v62 = vmul.f32 1.442695, %v636_v48  ;;  %v1106_v20 = vmul.f32 %v4119_v27, %v1073_v24  ;;  %v1303_v48 = vunpack.c.l.bf16 %v4288_v23 }
  0xc8   : > { %v3651_v3 = vpop.eup %3650  ;;  %v655_v31 = vmul.f32 1.442695, %v621_v18  ;;  %v4317_v12 = vmax.f32 %v877_v14, 0.0  ;;  %v1843_v22 = vadd.f32 %v1811_v17, %v1728_v40  ;;  %v1648_v24 = vunpack.c.l.bf16 %v4309_v56 }
  0xc9   : > { %3654 = vpow2.f32 %v683_v52  ;;  %v3653_v9 = vpop.eup %3652  ;;  %v715_v11 = vadd.f32 1.0, %v3651_v3  ;;  %v4305_v52 = vmax.f32 %v892_v6, 0.0  ;;  %v1138_v1 = vadd.f32 %v1106_v20, %v1023_v34 }
  0xca   : > { %3656 = vpow2.f32 %v685_v62  ;;  %v716_v16 = vadd.f32 1.0, %v3653_v9  ;;  %v1533_v3 = vunpack.c.l.bf16 %v4298_v39  ;;  %v4313_v9 = vpop.f32.mrf.mxu1  ;;  %v1336_v6 = vmul.f32 %v4134_v41, %v1303_v48 }
  0xcb   : > { %3658 = vlog2.f32 %v715_v11  ;;  %v1253_v46 = vadd.f32 %v1221_v43, %v1138_v1  ;;  %v1451_v7 = vmul.f32 %v4146_v50, %v1418_v55  ;;  %v590_v14 = vand.u32 2147483647, %v4313_v9 }
  0xcc   : > { %3660 = vlog2.f32 %v716_v16  ;;  %v4324_v16 = vld [vmem:[%s4165_s27 + $0x8] sm:$0xff]  ;;  %v1566_v20 = vmul.f32 %v4155_v60, %v1533_v3  ;;  %v1763_v48 = vunpack.c.l.bf16 %v4321_v13  ;;  %v878_v3 = vsub.f32 0.0, %v4313_v9 }
  0xcd   : > { %3662 = vpow2.f32 %v655_v31  ;;  %v1368_v43 = vadd.f32 %v1336_v6, %v1253_v46  ;;  %v1681_v0 = vmul.f32 %v4170_v5, %v1648_v24  ;;  %v814_v57 = vmax.f32 %v4313_v9, 0.0 }
  0xce   : > { %v4346_v59 = vmul.f32 %v4179_v15, %v1763_v48 }
  0xcf   : > { %v3655_v49 = vpop.eup %3654 }
  0xd0   : > { %v3657_v62 = vpop.eup %3656  ;;  %v731_v63 = vadd.f32 1.0, %v3655_v49  ;;  %v1908_v49 = vunpack.c.l.bf16 %v4324_v16 }
  0xd1   : > { %v732_v11 = vadd.f32 1.0, %v3657_v62  ;;  %v3659_v18 = vpop.eup %3658 }
  0xd2   : > { %3664 = vlog2.f32 %v731_v63  ;;  %v3661_v29 = vpop.eup %3660  ;;  %v748_v31 = vmul.f32 0.6931472, %v3659_v18  ;;  %v622_v63 = vsub.f32 0.0, %v590_v14 }
  0xd3   : > { %3666 = vlog2.f32 %v732_v11  ;;  %v750_v34 = vmul.f32 0.6931472, %v3661_v29  ;;  %v3663_v62 = vpop.eup %3662 }
  0xd4   : > { %v843_v17 = vadd.f32 %v811_v8, %v748_v31  ;;  %v939_v40 = vadd.f32 %v4249_v32, %v748_v31  ;;  %v717_v11 = vadd.f32 1.0, %v3663_v62  ;;  %v657_v24 = vmul.f32 1.442695, %v622_v63 }
  0xd5   : > { %v844_v55 = vadd.f32 %v812_v19, %v750_v34  ;;  %v940_v1 = vadd.f32 %v4258_v42, %v750_v34  ;;  %v4348_v19 = vmul.f32 8.0, %v1908_v49  ;;  %v4350_v34 = vmax.f32 %v878_v3, 0.0 }
  0xd6   : > { %v1858_v18 = vmul.f32 %v4215_v53, %v939_v40  ;;  %v1970_v29 = vmul.f32 %v4217_v54, %v843_v17  ;;  %3668 = vlog2.f32 %v717_v11  ;;  %v1483_v53 = vadd.f32 %v1451_v7, %v1368_v43 }
  0xd7   : > { %v1859_v32 = vmul.f32 %v4224_v45, %v940_v1  ;;  %v1971_v6 = vmul.f32 %v4226_v61, %v844_v55  ;;  %3670 = vpow2.f32 %v657_v24 }
  0xd8   : > { %v3665_v8 = vpop.eup %3664  ;;  %v2002_v46 = vadd.f32 %v1970_v29, %v1858_v18 }
  0xd9   : > { %v3667_v42 = vpop.eup %3666  ;;  %v780_v31 = vmul.f32 0.6931472, %v3665_v8  ;;  %v2003_v54 = vadd.f32 %v1971_v6, %v1859_v32 }
  0xda   : > { %v782_v14 = vmul.f32 0.6931472, %v3667_v42  ;;  %v2034_v62 = vrot.slane %v2002_v46, 4  ;;  %v2040_v45 = vperm.slane %v2002_v46, %v4222_v58 }
  0xdb   : > { %v859_v61 = vadd.f32 %v827_v21, %v780_v31  ;;  %v955_v48 = vadd.f32 %v4303_v51, %v780_v31  ;;  %v2045_v49 = vrot.slane %v2003_v54, 4  ;;  %v2050_v17 = vperm.slane %v2003_v54, %v4222_v58 }
  0xdc   : > { %v860_v7 = vadd.f32 %v828_v4, %v782_v14  ;;  %v956_v40 = vadd.f32 %v4305_v52, %v782_v14  ;;  %v2036_v43 = vsel %vm2035_vm1, 0.0, %v2034_v62  ;;  %v2057_v63 = vrot.slane %v2040_v45, 4  ;;  %v3669_v3 = vpop.eup %3668 }
  0xdd   : > { %v1874_v55 = vmul.f32 %v4266_v25, %v955_v48  ;;  %v1986_v1 = vmul.f32 %v4239_v10, %v859_v61  ;;  %v2044_v28 = vperm.slane %v2036_v43, %v4222_v58  ;;  %v2046_v21 = vsel %vm2035_vm1, 0.0, %v2045_v49 }
  0xde   : > { %v2055_v51 = vrot.slane %v2050_v17, 4  ;;  %v1875_v11 = vmul.f32 %v1843_v22, %v956_v40  ;;  %v2054_v18 = vperm.slane %v2046_v21, %v4222_v58  ;;  %v2058_v35 = vsel %vm2035_vm1, %v2050_v17, %v2057_v63 }
  0xdf   : > { %v2018_v4 = vadd.f32 %v1986_v1, %v1874_v55  ;;  %v1987_v52 = vmul.f32 %v4315_v47, %v860_v7  ;;  %v2069_v29 = vrot.slane %v2044_v28, 4  ;;  %v2066_v25 = vperm.slane %v2058_v35, %v4254_v38 }
  0xe0   : > { %v2056_v8 = vsel %vm2035_vm1, %v2055_v51, %v2040_v45  ;;  %v1598_v10 = vadd.f32 %v1566_v20, %v1483_v53  ;;  %v2067_v6 = vrot.slane %v2054_v18, 4  ;;  %v752_v54 = vmul.f32 0.6931472, %v3669_v3  ;;  %v3671_v51 = vpop.eup %3670 }
  0xe1   : > { %v2062_v32 = vperm.slane %v2056_v8, %v4254_v38  ;;  %v2451_v42 = vrot.slane %v2018_v4, 4  ;;  %v2456_v22 = vperm.slane %v2018_v4, %v4222_v58  ;;  %v2070_v46 = vsel %vm2035_vm1, %v2054_v18, %v2069_v29 }
  0xe2   : > { %v2081_v31 = vrot.slane %v2066_v25, 4  ;;  %v2068_v14 = vsel %vm2035_vm1, %v2067_v6, %v2044_v28  ;;  %v2078_v47 = vperm.slane %v2070_v46, %v4254_v38  ;;  %v2019_v45 = vadd.f32 %v1987_v52, %v1875_v11 }
  0xe3   : > { %v2079_v62 = vrot.slane %v2062_v32, 4  ;;  %v2074_v61 = vperm.slane %v2068_v14, %v4254_v38  ;;  %v2452_v20 = vsel %vm2035_vm1, 0.0, %v2451_v42  ;;  %v1713_v53 = vadd.f32 %v1681_v0, %v1598_v10 }
  0xe4   : > { %v991_v48 = vunpack.c.h.bf16 %v4273_v2  ;;  %v2082_v49 = vsel %vm2035_vm1, 0.0, %v2081_v31  ;;  %v2085_v17 = vrot.slane %v2078_v47, 4  ;;  %v2473_v7 = vrot.slane %v2456_v22, 4 }
  0xe5   : > { %v1074_v40 = vunpack.c.h.bf16 %v4279_v36  ;;  %v2083_v24 = vrot.slane %v2074_v61, 4  ;;  %v4381_v43 = vsel %vm2867_vm2, %v2062_v32, 0.0  ;;  %v4384_v63 = vsel %vm2867_vm2, %v2066_v25, 0.0 }
  0xe6   : > { %v2460_v55 = vperm.slane %v2452_v20, %v4222_v58  ;;  %v2080_v1 = vsel %vm2035_vm1, 0.0, %v2079_v62  ;;  %v2461_v0 = vrot.slane %v2019_v45, 4  ;;  %v2466_v2 = vperm.slane %v2019_v45, %v4222_v58 }
  0xe7   : > { %v6311_v28 = vmax.f32 %v4261_v44, 0.0  ;;  %v2086_v36 = vsel %vm2035_vm1, 0.0, %v2085_v17  ;;  %v4393_v11 = vsel %vm2867_vm2, %v2082_v49, 0.0  ;;  %v4396_v3 = vsel %vm2867_vm2, %v2078_v47, 0.0 }
  0xe8   : > { %v2485_v18 = vrot.slane %v2460_v55, 4  ;;  %v2462_v35 = vsel %vm2035_vm1, 0.0, %v2461_v0  ;;  %v2471_v4 = vrot.slane %v2466_v2, 4  ;;  %v2474_v52 = vsel %vm2035_vm1, %v2466_v2, %v2473_v7 }
  0xe9   : > { %v845_v21 = vadd.f32 %v6311_v28, %v752_v54  ;;  %v941_v29 = vadd.f32 %v4317_v12, %v752_v54  ;;  %v2084_v44 = vsel %vm2035_vm1, 0.0, %v2083_v24  ;;  %v2470_v8 = vperm.slane %v2462_v35, %v4222_v58 }
  0xea   : > { %v2482_v25 = vperm.slane %v2474_v52, %v4254_v38  ;;  %v1828_v10 = vadd.f32 %v4346_v59, %v1713_v53  ;;  %v2472_v32 = vsel %vm2035_vm1, %v2471_v4, %v2456_v22  ;;  %v718_v42 = vadd.f32 1.0, %v3671_v51 }
  0xeb   : > { %v1972_v6 = vmul.f32 %v4348_v19, %v845_v21  ;;  %v1024_v46 = vmul.f32 %v4117_v26, %v991_v48  ;;  %v2478_v31 = vperm.slane %v2472_v32, %v4254_v38  ;;  %v2483_v14 = vrot.slane %v2470_v8, 4 }
  0xec   : > { %v2486_v12 = vsel %vm2035_vm1, %v2470_v8, %v2485_v18  ;;  %v2497_v54 = vrot.slane %v2482_v25, 4  ;;  %v1860_v62 = vmul.f32 %v1828_v10, %v941_v29  ;;  %3672 = vlog2.f32 %v718_v42 }
  0xed   : > { %v2494_v47 = vperm.slane %v2486_v12, %v4254_v38  ;;  %v1107_v45 = vmul.f32 %v4119_v27, %v1074_v40  ;;  %v4413_v59 = vsel %vm2867_vm2, %v2080_v1, 0.0  ;;  %v2484_v19 = vsel %vm2035_vm1, %v2483_v14, %v2460_v55  ;;  %v981_v14 = vld [vmem:[%s4036_s28 + $0x48] sm:$0xff] }
  0xee   : > { %v2495_v22 = vrot.slane %v2478_v31, 4  ;;  %v2498_v20 = vsel %vm2035_vm1, 0.0, %v2497_v54  ;;  %v4418_v53 = vsel %vm2867_vm2, %v2074_v61, 0.0  ;;  %v4421_v48 = vsel %vm2867_vm2, %v2084_v44, 0.0 }
  0xef   : > { %v4424_v49 = vsel %vm2867_vm2, %v2086_v36, 0.0  ;;  %v2490_v17 = vperm.slane %v2484_v19, %v4254_v38  ;;  %v2501_v7 = vrot.slane %v2494_v47, 4  ;;  %v4428_v40 = vsel %vm2867_vm2, %v2482_v25, 0.0  ;;  %v3464_v19 = vld [vmem:[%s4036_s28 + $0x148] sm:$0xff] }
  0xf0   : > { %v2004_v24 = vadd.f32 %v1972_v6, %v1860_v62  ;;  %v1189_v55 = vunpack.c.h.bf16 %v4282_v37  ;;  %v2496_v1 = vsel %vm2035_vm1, 0.0, %v2495_v22  ;;  %v4433_v61 = vsel %vm2867_vm2, %v2478_v31, 0.0 }
  0xf1   : > { %v4436_v0 = vsel %vm2867_vm2, %v2498_v20, 0.0  ;;  %v1139_v2 = vadd.f32 %v1107_v45, %v1024_v46  ;;  %v2499_v28 = vrot.slane %v2490_v17, 4  ;;  %v4443_v35 = vsel %vm2867_vm2, %v2494_v47, 0.0  ;;  %v3447_v45 = vld [vmem:[%s4036_s28 + $0xc8] sm:$0xff] }
  0xf2   : > { %6312 = vst [vmem:[#allocation15_spill] sm:$0xff] %v4436_v0  ;;  %v2087_v21 = vrot.slane %v2004_v24, 4  ;;  %v4439_v51 = vperm.slane %v2004_v24, %v4222_v58  ;;  %v1222_v36 = vmul.f32 %v4127_v33, %v1189_v55  ;;  %v3673_v18 = vpop.eup %3672  ;;  %v1304_v37 = vunpack.c.h.bf16 %v4288_v23 }
  0xf3   : > { %6313 = vst [vmem:[#allocation16_spill] sm:$0xff] %v4443_v35  ;;  %v1419_v4 = vunpack.c.h.bf16 %v4293_v30  ;;  %v1534_v52 = vunpack.c.h.bf16 %v4298_v39  ;;  %v4449_v29 = vsel %vm2035_vm1, 0.0, %v2501_v7  ;;  %v4452_v44 = vsel %vm2867_vm2, %v2496_v1, 0.0  ;;  %v4460_v39 = vpop.f32.mrf.mxu2  ;;  %v3481_v7 = vld [vmem:[%s4036_s28 + $0x1c8] sm:$0xff] }
  0xf4   : > { %6314 = vst [vmem:[#allocation17_spill] sm:$0xff] %v4452_v44  ;;  %v2088_v8 = vsel %vm2035_vm1, 0.0, %v2087_v21  ;;  %v754_v25 = vmul.f32 0.6931472, %v3673_v18  ;;  %v1254_v23 = vadd.f32 %v1222_v36, %v1139_v2  ;;  %v1337_v32 = vmul.f32 %v4134_v41, %v1304_v37  ;;  %v4485_v1 = vld [vmem:[%s4036_s28 + $0x248] sm:$0xff] }
  0xf5   : > { %v4456_v10 = vperm.slane %v2088_v8, %v4222_v58  ;;  %v1452_v30 = vmul.f32 %v4146_v50, %v1419_v4  ;;  %v4463_v6 = vsel %vm2035_vm1, 0.0, %v2499_v28  ;;  %v4466_v42 = vsel %vm2867_vm2, %v2490_v17, 0.0  ;;  %v4489_v21 = vld [vmem:[%s4036_s28 + $0x2c8] sm:$0xff] }
  0xf6   : > { %6315 = vst [vmem:[#allocation18_spill] sm:$0xff] %v4466_v42  ;;  %v1649_v31 = vunpack.c.h.bf16 %v4309_v56  ;;  %v1369_v12 = vadd.f32 %v1337_v32, %v1254_v23  ;;  %v1567_v54 = vmul.f32 %v4155_v60, %v1534_v52  ;;  %v1764_v47 = vunpack.c.h.bf16 %v4321_v13  ;;  %v4496_v52 = vld [vmem:[%s4036_s28 + $0x3c8] sm:$0xff] }
  0xf7   : > { %v1909_v62 = vunpack.c.h.bf16 %v4324_v16  ;;  %v846_v20 = vadd.f32 %v814_v57, %v754_v25  ;;  %v942_v56 = vadd.f32 %v4350_v34, %v754_v25  ;;  %v605_v17 = vand.u32 2147483647, %v4460_v39  ;;  %v4492_v34 = vld [vmem:[%s4036_s28 + $0x348] sm:$0xff] }
  0xf8   : > { %v1484_v24 = vadd.f32 %v1452_v30, %v1369_v12  ;;  %v1682_v13 = vmul.f32 %v4170_v5, %v1649_v31  ;;  %v893_v16 = vsub.f32 0.0, %v4460_v39  ;;  %v1006_v55 = vunpack.c.l.bf16 %v981_v14  ;;  %v4502_v30 = vld [vmem:[%s4165_s27 + $0x48] sm:$0xff] }
  0xf9   : > { %v1797_v2 = vmul.f32 %v4179_v15, %v1764_v47  ;;  %v637_v28 = vsub.f32 0.0, %v605_v17  ;;  %v1089_v9 = vunpack.c.l.bf16 %v3447_v45  ;;  %v1204_v57 = vunpack.c.l.bf16 %v3464_v19 }
  0xfa   : > { %v1599_v36 = vadd.f32 %v1567_v54, %v1484_v24  ;;  %v1941_v18 = vmul.f32 8.0, %v1909_v62  ;;  %v1039_v37 = vmul.f32 %v4117_v26, %v1006_v55  ;;  %v1319_v4 = vunpack.c.l.bf16 %v3481_v7  ;;  %v4507_v62 = vpop.f32.mrf.mxu3 }
  0xfb   : > { %v687_v8 = vmul.f32 1.442695, %v637_v28  ;;  %v1122_v25 = vmul.f32 %v4119_v27, %v1089_v9  ;;  %v1237_v23 = vmul.f32 %v4127_v33, %v1204_v57  ;;  %v1434_v32 = vunpack.c.l.bf16 %v4485_v1 }
  0xfc   : > { %v1714_v31 = vadd.f32 %v1682_v13, %v1599_v36  ;;  %v1549_v54 = vunpack.c.l.bf16 %v4489_v21  ;;  %v1664_v47 = vunpack.c.l.bf16 %v4492_v34  ;;  %v1352_v24 = vmul.f32 %v4134_v41, %v1319_v4 }
  0xfd   : > { %3674 = vpow2.f32 %v687_v8  ;;  %v1154_v17 = vadd.f32 %v1122_v25, %v1039_v37  ;;  %v1779_v55 = vunpack.c.l.bf16 %v4496_v52  ;;  %v1973_v9 = vmul.f32 %v1941_v18, %v846_v20 }
  0xfe   : > { %v1829_v28 = vadd.f32 %v1797_v2, %v1714_v31  ;;  %v4511_v57 = vmax.f32 %v893_v16, 0.0  ;;  %v1924_v13 = vunpack.c.l.bf16 %v4502_v30  ;;  %v1467_v12 = vmul.f32 %v4146_v50, %v1434_v32 }
  0xff   : > { %v1269_v36 = vadd.f32 %v1237_v23, %v1154_v17  ;;  %v1582_v22 = vmul.f32 %v4155_v60, %v1549_v54  ;;  %v606_v46 = vand.u32 2147483647, %v4507_v62  ;;  %v1697_v37 = vmul.f32 %v4170_v5, %v1664_v47 }
 0x100   : > { %v1861_v35 = vmul.f32 %v1829_v28, %v942_v56  ;;  %v1812_v4 = vmul.f32 %v4179_v15, %v1779_v55  ;;  %v1007_v8 = vunpack.c.h.bf16 %v981_v14  ;;  %v1090_v20 = vunpack.c.h.bf16 %v3447_v45 }
 0x101   : > { %v1384_v25 = vadd.f32 %v1352_v24, %v1269_v36  ;;  %v638_v2 = vsub.f32 0.0, %v606_v46  ;;  %v1205_v16 = vunpack.c.h.bf16 %v3464_v19  ;;  %v4519_v31 = vmul.f32 8.0, %v1924_v13 }
 0x102   : > { %v2005_v18 = vadd.f32 %v1973_v9, %v1861_v35  ;;  %v1040_v23 = vmul.f32 %v4117_v26, %v1007_v8  ;;  %v1320_v32 = vunpack.c.h.bf16 %v3481_v7  ;;  %v1123_v56 = vmul.f32 %v4119_v27, %v1090_v20 }
 0x103   : > { %v3675_v17 = vpop.eup %3674  ;;  %v1499_v54 = vadd.f32 %v1467_v12, %v1384_v25  ;;  %v689_v42 = vmul.f32 1.442695, %v638_v2  ;;  %v1238_v47 = vmul.f32 %v4127_v33, %v1205_v16  ;;  %v1435_v19 = vunpack.c.h.bf16 %v4485_v1 }
 0x104   : > { %v2097_v28 = vrot.slane %v2005_v18, 4  ;;  %v2102_v14 = vperm.slane %v2005_v18, %v4222_v58  ;;  %v733_v24 = vadd.f32 1.0, %v3675_v17  ;;  %v1353_v46 = vmul.f32 %v4134_v41, %v1320_v32 }
 0x105   : > { %v1614_v45 = vadd.f32 %v1582_v22, %v1499_v54  ;;  %3676 = vpow2.f32 %v689_v42  ;;  %v1155_v35 = vadd.f32 %v1123_v56, %v1040_v23  ;;  %v6316_v12 = vrot.slane %v4439_v51, 4 }
 0x106   : > { %v2098_v7 = vsel %vm2035_vm1, 0.0, %v2097_v28  ;;  %v2107_v55 = vrot.slane %v2102_v14, 4  ;;  %3678 = vlog2.f32 %v733_v24  ;;  %v1468_v22 = vmul.f32 %v4146_v50, %v1435_v19 }
 0x107   : > { %v2110_v9 = vsel %vm2035_vm1, %v2102_v14, %v6316_v12  ;;  %v2106_v13 = vperm.slane %v2098_v7, %v4222_v58  ;;  %v1729_v8 = vadd.f32 %v1697_v37, %v1614_v45  ;;  %v1270_v25 = vadd.f32 %v1238_v47, %v1155_v35 }
 0x108   : > { %v2118_v36 = vperm.slane %v2110_v9, %v4254_v38  ;;  %v2108_v42 = vsel %vm2035_vm1, %v2107_v55, %v4439_v51  ;;  %v1550_v1 = vunpack.c.h.bf16 %v4489_v21  ;;  %v1665_v2 = vunpack.c.h.bf16 %v4492_v34 }
 0x109   : > { %v2114_v20 = vperm.slane %v2108_v42, %v4254_v38  ;;  %v2119_v16 = vrot.slane %v2106_v13, 4  ;;  %v6317_v18 = vrot.slane %v4456_v10, 4  ;;  %v1844_v54 = vadd.f32 %v1812_v4, %v1729_v8 }
 0x10a   : > { %v2133_v32 = vrot.slane %v2118_v36, 4  ;;  %v2931_v17 = vsel %vm2867_vm2, %v2118_v36, 0.0  ;;  %v1385_v51 = vadd.f32 %v1353_v46, %v1270_v25 }
 0x10b   : > { %v2122_v23 = vsel %vm2035_vm1, %v2106_v13, %v6317_v18  ;;  %v3677_v56 = vpop.eup %3676  ;;  %v2120_v21 = vsel %vm2035_vm1, %v2119_v16, %v4456_v10  ;;  %v2131_v47 = vrot.slane %v2114_v20, 4  ;;  %v2869_v28 = vsel %vm2867_vm2, %v2114_v20, 0.0 }
 0x10c   : > { %v2130_v37 = vperm.slane %v2122_v23, %v4254_v38  ;;  %v2134_v34 = vsel %vm2035_vm1, 0.0, %v2133_v32  ;;  %v3679_v14 = vpop.eup %3678  ;;  %v2126_v24 = vperm.slane %v2120_v21, %v4254_v38  ;;  %v4550_v35 = vadd.f32 %v2869_v28, %v4381_v43  ;;  %v4582_v32 = vpop.f32.mrf.mxu0 }
 0x10d   : > { %v4553_v19 = vadd.f32 %v2931_v17, %v4384_v63  ;;  %v2132_v4 = vsel %vm2035_vm1, 0.0, %v2131_v47  ;;  %v2962_v46 = vsel %vm2867_vm2, %v2134_v34, 0.0  ;;  %v784_v7 = vmul.f32 0.6931472, %v3679_v14  ;;  %v4591_v17 = vld [vmem:[%s4036_s28 + $0x10] sm:$0xff] }
 0x10e   : > { %v2137_v45 = vrot.slane %v2130_v37, 4  ;;  %v3055_v10 = vsel %vm2867_vm2, %v2130_v37, 0.0  ;;  %v2135_v55 = vrot.slane %v2126_v24, 4  ;;  %v2900_v9 = vsel %vm2867_vm2, %v2132_v4, 0.0 }
 0x10f   : > { %v4561_v13 = vadd.f32 %v2962_v46, %v4393_v11  ;;  %v4564_v43 = vadd.f32 %v2900_v9, %v4413_v59  ;;  %v2993_v63 = vsel %vm2867_vm2, %v2126_v24, 0.0  ;;  %v4568_v36 = vadd.f32 %v3055_v10, %v4396_v3  ;;  %v4626_v9 = vld [vmem:[%s4036_s28 + $0x290] sm:$0xff] }
 0x110   : > { %v2138_v12 = vsel %vm2035_vm1, 0.0, %v2137_v45  ;;  %v2136_v25 = vsel %vm2035_vm1, 0.0, %v2135_v55  ;;  %v4573_v42 = vadd.f32 %v2993_v63, %v4418_v53  ;;  %v6318_v11 = vmax.f32 %v4460_v39, 0.0  ;;  %v4619_v45 = vld [vmem:[%s4036_s28 + $0x210] sm:$0xff] }
 0x111   : > { %v3086_v8 = vsel %vm2867_vm2, %v2138_v12, 0.0  ;;  %v3024_v16 = vsel %vm2867_vm2, %v2136_v25, 0.0  ;;  %v957_v18 = vadd.f32 %v4511_v57, %v784_v7  ;;  %v734_v3 = vadd.f32 1.0, %v3677_v56  ;;  %v4605_v56 = vld [vmem:[%s4036_s28 + $0x110] sm:$0xff] }
 0x112   : > { %v4576_v20 = vadd.f32 %v3086_v8, %v4424_v49  ;;  %v861_v59 = vadd.f32 %v6318_v11, %v784_v7  ;;  %v1500_v23 = vadd.f32 %v1468_v22, %v1385_v51  ;;  %v4585_v37 = vadd.f32 %v3024_v16, %v4421_v48  ;;  %v4596_v51 = vld [vmem:[%s4036_s28 + $0x90] sm:$0xff] }
 0x113   : > { %v1583_v49 = vmul.f32 %v4155_v60, %v1550_v1  ;;  %v1698_v39 = vmul.f32 %v4170_v5, %v1665_v2  ;;  %v1876_v21 = vmul.f32 %v1844_v54, %v957_v18  ;;  %3680 = vlog2.f32 %v734_v3  ;;  %v4629_v63 = vld [vmem:[%s4036_s28 + $0x310] sm:$0xff] }
 0x114   : > { %v1988_v53 = vmul.f32 %v4519_v31, %v861_v59  ;;  %v894_v57 = vsub.f32 0.0, %v4507_v62  ;;  %v1780_v22 = vunpack.c.h.bf16 %v4496_v52  ;;  %v4600_v48 = vsel %vm2867_vm2, %v4449_v29, 0.0  ;;  %v4614_v29 = vld [vmem:[%s4036_s28 + $0x190] sm:$0xff] }
 0x115   : > { %6319 = vst [vmem:[#allocation19_spill] sm:$0xff] %v4600_v48  ;;  %v1615_v31 = vadd.f32 %v1583_v49, %v1500_v23  ;;  %v1925_v1 = vunpack.c.h.bf16 %v4502_v30  ;;  %v591_v2 = vand.u32 2147483647, %v4582_v32  ;;  %v4609_v54 = vsel %vm2867_vm2, %v4463_v6, 0.0 }
 0x116   : > { %6320 = vst [vmem:[#allocation20_spill] sm:$0xff] %v4609_v54  ;;  %v2020_v47 = vadd.f32 %v1988_v53, %v1876_v21  ;;  %v830_v52 = vmax.f32 %v4507_v62, 0.0  ;;  %v992_v34 = vunpack.c.l.bf16 %v4591_v17  ;;  %v1813_v30 = vmul.f32 %v4179_v15, %v1780_v22  ;;  %v4636_v53 = vld [vmem:[%s4036_s28 + $0x390] sm:$0xff]  ;;  %v4642_v22 = vpop.f32.mrf.mxu1 }
 0x117   : > { %v1730_v28 = vadd.f32 %v1698_v39, %v1615_v31  ;;  %v623_v14 = vsub.f32 0.0, %v591_v2  ;;  %v1075_v24 = vunpack.c.l.bf16 %v4596_v51  ;;  %v926_v6 = vmax.f32 %v894_v57, 0.0 }
 0x118   : > { %v2503_v4 = vrot.slane %v2020_v47, 4  ;;  %v1025_v46 = vmul.f32 %v4117_v26, %v992_v34  ;;  %v1190_v62 = vunpack.c.l.bf16 %v4605_v56  ;;  %v1957_v10 = vmul.f32 8.0, %v1925_v1  ;;  %v4646_v34 = vld [vmem:[%s4165_s27 + $0x10] sm:$0xff] }
 0x119   : > { %v659_v7 = vmul.f32 1.442695, %v623_v14  ;;  %v1108_v55 = vmul.f32 %v4119_v27, %v1075_v24  ;;  %v1305_v12 = vunpack.c.l.bf16 %v4614_v29  ;;  %v3681_v8 = vpop.eup %3680  ;;  %v2508_v11 = vperm.slane %v2020_v47, %v4222_v58 }
 0x11a   : > { %v2504_v25 = vsel %vm2035_vm1, 0.0, %v2503_v4  ;;  %v1223_v59 = vmul.f32 %v4127_v33, %v1190_v62  ;;  %v1420_v16 = vunpack.c.l.bf16 %v4619_v45  ;;  %v786_v18 = vmul.f32 0.6931472, %v3681_v8 }
 0x11b   : > { %v1845_v3 = vadd.f32 %v1813_v30, %v1730_v28  ;;  %3682 = vpow2.f32 %v659_v7  ;;  %v1140_v23 = vadd.f32 %v1108_v55, %v1025_v46  ;;  %v2512_v49 = vperm.slane %v2504_v25, %v4222_v58 }
 0x11c   : > { %v1338_v39 = vmul.f32 %v4134_v41, %v1305_v12  ;;  %v1535_v21 = vunpack.c.l.bf16 %v4626_v9  ;;  %v1650_v57 = vunpack.c.l.bf16 %v4629_v63  ;;  %v862_v31 = vadd.f32 %v830_v52, %v786_v18 }
 0x11d   : > { %v958_v1 = vadd.f32 %v926_v6, %v786_v18  ;;  %v1255_v2 = vadd.f32 %v1223_v59, %v1140_v23  ;;  %v1453_v47 = vmul.f32 %v4146_v50, %v1420_v16  ;;  %v815_v28 = vmax.f32 %v4582_v32, 0.0 }
 0x11e   : > { %v879_v30 = vsub.f32 0.0, %v4582_v32  ;;  %v1568_v14 = vmul.f32 %v4155_v60, %v1535_v21  ;;  %v1765_v24 = vunpack.c.l.bf16 %v4636_v53  ;;  %v1989_v46 = vmul.f32 %v1957_v10, %v862_v31  ;;  %v4705_v32 = vld [vmem:[%s4036_s28 + $0x50] sm:$0xff] }
 0x11f   : > { %v1877_v4 = vmul.f32 %v1845_v3, %v958_v1  ;;  %v1370_v62 = vadd.f32 %v1338_v39, %v1255_v2  ;;  %v592_v7 = vand.u32 2147483647, %v4642_v22  ;;  %v2525_v52 = vrot.slane %v2508_v11, 4 }
 0x120   : > { %v2537_v6 = vrot.slane %v2512_v49, 4  ;;  %v1683_v55 = vmul.f32 %v4170_v5, %v1650_v57  ;;  %v1910_v12 = vunpack.c.l.bf16 %v4646_v34  ;;  %v993_v18 = vunpack.c.h.bf16 %v4591_v17 }
 0x121   : > { %v3683_v8 = vpop.eup %3682  ;;  %v2021_v25 = vadd.f32 %v1989_v46, %v1877_v4  ;;  %v1485_v59 = vadd.f32 %v1453_v47, %v1370_v62  ;;  %v624_v16 = vsub.f32 0.0, %v592_v7  ;;  %v1798_v21 = vmul.f32 %v4179_v15, %v1765_v24 }
 0x122   : > { %v719_v23 = vadd.f32 1.0, %v3683_v8  ;;  %v1076_v10 = vunpack.c.h.bf16 %v4596_v51  ;;  %v1191_v3 = vunpack.c.h.bf16 %v4605_v56  ;;  %v880_v2 = vsub.f32 0.0, %v4642_v22 }
 0x123   : > { %v2513_v39 = vrot.slane %v2021_v25, 4  ;;  %v2518_v31 = vperm.slane %v2021_v25, %v4222_v58  ;;  %v1600_v1 = vadd.f32 %v1568_v14, %v1485_v59  ;;  %v661_v57 = vmul.f32 1.442695, %v624_v16 }
 0x124   : > { %3684 = vlog2.f32 %v719_v23  ;;  %v1026_v47 = vmul.f32 %v4117_v26, %v993_v18  ;;  %v1109_v4 = vmul.f32 %v4119_v27, %v1076_v10  ;;  %v1224_v51 = vmul.f32 %v4127_v33, %v1191_v3 }
 0x125   : > { %v2514_v17 = vsel %vm2035_vm1, 0.0, %v2513_v39  ;;  %v2523_v46 = vrot.slane %v2518_v31, 4  ;;  %v2526_v24 = vsel %vm2035_vm1, %v2518_v31, %v2525_v52  ;;  %3686 = vpow2.f32 %v661_v57 }
 0x126   : > { %v2522_v56 = vperm.slane %v2514_v17, %v4222_v58  ;;  %v2534_v62 = vperm.slane %v2526_v24, %v4254_v38  ;;  %v1141_v14 = vadd.f32 %v1109_v4, %v1026_v47  ;;  %v1715_v8 = vadd.f32 %v1683_v55, %v1600_v1 }
 0x127   : > { %v2524_v7 = vsel %vm2035_vm1, %v2523_v46, %v2508_v11  ;;  %v1306_v25 = vunpack.c.h.bf16 %v4614_v29  ;;  %v1421_v59 = vunpack.c.h.bf16 %v4619_v45  ;;  %v911_v3 = vmax.f32 %v879_v30, 0.0 }
 0x128   : > { %v2530_v16 = vperm.slane %v2524_v7, %v4254_v38  ;;  %v2535_v18 = vrot.slane %v2522_v56, 4  ;;  %v2538_v52 = vsel %vm2035_vm1, %v2522_v56, %v2537_v6  ;;  %v2549_v23 = vrot.slane %v2534_v62, 4 }
 0x129   : > { %v2546_v10 = vperm.slane %v2538_v52, %v4254_v38  ;;  %v1256_v39 = vadd.f32 %v1224_v51, %v1141_v14  ;;  %v1339_v31 = vmul.f32 %v4134_v41, %v1306_v25  ;;  %v1942_v1 = vmul.f32 8.0, %v1910_v12 }
 0x12a   : > { %v3685_v57 = vpop.eup %3684  ;;  %v2536_v11 = vsel %vm2035_vm1, %v2535_v18, %v2512_v49  ;;  %v2547_v55 = vrot.slane %v2530_v16, 4  ;;  %v2550_v29 = vsel %vm2035_vm1, 0.0, %v2549_v23  ;;  %v1830_v47 = vadd.f32 %v1798_v21, %v1715_v8  ;;  %v4699_v18 = vpop.f32.mrf.mxu2 }
 0x12b   : > { %v2542_v45 = vperm.slane %v2536_v11, %v4254_v38  ;;  %v816_v4 = vmax.f32 %v4642_v22, 0.0  ;;  %v4679_v6 = vmax.f32 %v880_v2, 0.0  ;;  %v3687_v17 = vpop.eup %3686  ;;  %v2553_v46 = vrot.slane %v2546_v10, 4 }
 0x12c   : > { %v756_v30 = vmul.f32 0.6931472, %v3685_v57  ;;  %v1371_v24 = vadd.f32 %v1339_v31, %v1256_v39  ;;  %v1454_v51 = vmul.f32 %v4146_v50, %v1421_v59  ;;  %v4683_v56 = vsel %vm2867_vm2, %v2530_v16, 0.0 }
 0x12d   : > { %v4686_v49 = vsel %vm2867_vm2, %v2534_v62, 0.0  ;;  %v4689_v12 = vsel %vm2867_vm2, %v2550_v29, 0.0  ;;  %v4692_v21 = vsel %vm2867_vm2, %v2546_v10, 0.0  ;;  %v2548_v2 = vsel %vm2035_vm1, 0.0, %v2547_v55  ;;  %v4719_v55 = vld [vmem:[%s4036_s28 + $0xd0] sm:$0xff] }
 0x12e   : > { %6321 = vst [vmem:[#allocation21_spill] sm:$0xff] %v4686_v49  ;;  %v847_v14 = vadd.f32 %v815_v28, %v756_v30  ;;  %v943_v7 = vadd.f32 %v911_v3, %v756_v30  ;;  %v720_v8 = vadd.f32 1.0, %v3687_v17  ;;  %v2551_v25 = vrot.slane %v2542_v45, 4  ;;  %v4722_v29 = vld [vmem:[%s4036_s28 + $0x150] sm:$0xff] }
 0x12f   : > { %6322 = vst [vmem:[#allocation22_spill] sm:$0xff] %v4689_v12  ;;  %v1486_v59 = vadd.f32 %v1454_v51, %v1371_v24  ;;  %v1536_v16 = vunpack.c.h.bf16 %v4626_v9  ;;  %v1651_v62 = vunpack.c.h.bf16 %v4629_v63  ;;  %v4702_v52 = vsel %vm2035_vm1, 0.0, %v2553_v46 }
 0x130   : > { %6323 = vst [vmem:[#allocation23_spill] sm:$0xff] %v4692_v21  ;;  %v1862_v23 = vmul.f32 %v1830_v47, %v943_v7  ;;  %v1974_v10 = vmul.f32 %v1942_v1, %v847_v14  ;;  %3688 = vlog2.f32 %v720_v8  ;;  %v4708_v28 = vsel %vm2867_vm2, %v2548_v2, 0.0  ;;  %v4738_v8 = vld [vmem:[%s4036_s28 + $0x250] sm:$0xff] }
 0x131   : > { %6324 = vst [vmem:[#allocation24_spill] sm:$0xff] %v4708_v28  ;;  %v1569_v9 = vmul.f32 %v4155_v60, %v1536_v16  ;;  %v1684_v3 = vmul.f32 %v4170_v5, %v1651_v62  ;;  %v1766_v63 = vunpack.c.h.bf16 %v4636_v53  ;;  %v4714_v39 = vsel %vm2867_vm2, %v2542_v45, 0.0  ;;  %v4730_v45 = vld [vmem:[%s4036_s28 + $0x1d0] sm:$0xff] }
 0x132   : > { %6325 = vst [vmem:[#allocation25_spill] sm:$0xff] %v4714_v39  ;;  %v2006_v31 = vadd.f32 %v1974_v10, %v1862_v23  ;;  %v1911_v57 = vunpack.c.h.bf16 %v4646_v34  ;;  %v607_v11 = vand.u32 2147483647, %v4699_v18  ;;  %v4725_v1 = vsel %vm2035_vm1, 0.0, %v2551_v25 }
 0x133   : > { %v1601_v47 = vadd.f32 %v1569_v9, %v1486_v59  ;;  %v1799_v17 = vmul.f32 %v4179_v15, %v1766_v63  ;;  %v1008_v53 = vunpack.c.l.bf16 %v4705_v32  ;;  %v895_v24 = vsub.f32 0.0, %v4699_v18 }
 0x134   : > { %v2139_v46 = vrot.slane %v2006_v31, 4  ;;  %v639_v30 = vsub.f32 0.0, %v607_v11  ;;  %v1091_v14 = vunpack.c.l.bf16 %v4719_v55  ;;  %v1206_v7 = vunpack.c.l.bf16 %v4722_v29  ;;  %v4745_v11 = vld [vmem:[%s4036_s28 + $0x2d0] sm:$0xff] }
 0x135   : > { %v1716_v51 = vadd.f32 %v1684_v3, %v1601_v47  ;;  %v1041_v2 = vmul.f32 %v4117_v26, %v1008_v53  ;;  %v1943_v16 = vmul.f32 8.0, %v1911_v57  ;;  %v1321_v23 = vunpack.c.l.bf16 %v4730_v45  ;;  %v4748_v47 = vld [vmem:[%s4036_s28 + $0x350] sm:$0xff] }
 0x136   : > { %v3689_v25 = vpop.eup %3688  ;;  %v2140_v59 = vsel %vm2035_vm1, 0.0, %v2139_v46  ;;  %v691_v62 = vmul.f32 1.442695, %v639_v30  ;;  %v2144_v10 = vperm.slane %v2006_v31, %v4222_v58  ;;  %v1124_v63 = vmul.f32 %v4119_v27, %v1091_v14  ;;  %v4751_v53 = vld [vmem:[%s4036_s28 + $0x3d0] sm:$0xff] }
 0x137   : > { %v758_v9 = vmul.f32 0.6931472, %v3689_v25  ;;  %v1831_v3 = vadd.f32 %v1799_v17, %v1716_v51  ;;  %v2148_v34 = vperm.slane %v2140_v59, %v4222_v58  ;;  %v1239_v57 = vmul.f32 %v4127_v33, %v1206_v7  ;;  %v4761_v14 = vld [vmem:[%s4165_s27 + $0x50] sm:$0xff]  ;;  %v4763_v25 = vpop.f32.mrf.mxu3 }
 0x138   : > { %3690 = vpow2.f32 %v691_v62  ;;  %v1436_v46 = vunpack.c.l.bf16 %v4738_v8  ;;  %v1156_v30 = vadd.f32 %v1124_v63, %v1041_v2  ;;  %v1354_v51 = vmul.f32 %v4134_v41, %v1321_v23 }
 0x139   : > { %v848_v31 = vadd.f32 %v816_v4, %v758_v9  ;;  %v944_v17 = vadd.f32 %v4679_v6, %v758_v9  ;;  %v4765_v48 = vmax.f32 %v895_v24, 0.0  ;;  %v1551_v59 = vunpack.c.l.bf16 %v4745_v11 }
 0x13a   : > { %v1666_v7 = vunpack.c.l.bf16 %v4748_v47  ;;  %v1781_v62 = vunpack.c.l.bf16 %v4751_v53  ;;  %v1271_v4 = vadd.f32 %v1239_v57, %v1156_v30  ;;  %v1469_v6 = vmul.f32 %v4146_v50, %v1436_v46 }
 0x13b   : > { %v1863_v21 = vmul.f32 %v1831_v3, %v944_v17  ;;  %v1975_v22 = vmul.f32 %v1943_v16, %v848_v31  ;;  %v2161_v2 = vrot.slane %v2144_v10, 4  ;;  %v2173_v9 = vrot.slane %v2148_v34, 4 }
 0x13c   : > { %v1926_v23 = vunpack.c.l.bf16 %v4761_v14  ;;  %v608_v63 = vand.u32 2147483647, %v4763_v25  ;;  %v1386_v24 = vadd.f32 %v1354_v51, %v1271_v4  ;;  %v1584_v39 = vmul.f32 %v4155_v60, %v1551_v59 }
 0x13d   : > { %v2007_v54 = vadd.f32 %v1975_v22, %v1863_v21  ;;  %v1699_v12 = vmul.f32 %v4170_v5, %v1666_v7  ;;  %v1814_v0 = vmul.f32 %v4179_v15, %v1781_v62  ;;  %v1009_v16 = vunpack.c.h.bf16 %v4705_v32 }
 0x13e   : > { %v3691_v28 = vpop.eup %3690  ;;  %v640_v3 = vsub.f32 0.0, %v608_v63  ;;  %v1092_v57 = vunpack.c.h.bf16 %v4719_v55  ;;  %v1501_v30 = vadd.f32 %v1469_v6, %v1386_v24  ;;  %v1958_v49 = vmul.f32 8.0, %v1926_v23 }
 0x13f   : > { %v2149_v46 = vrot.slane %v2007_v54, 4  ;;  %v2154_v31 = vperm.slane %v2007_v54, %v4222_v58  ;;  %v735_v17 = vadd.f32 1.0, %v3691_v28  ;;  %v1042_v51 = vmul.f32 %v4117_v26, %v1009_v16 }
 0x140   : > { %v693_v21 = vmul.f32 1.442695, %v640_v3  ;;  %v1125_v59 = vmul.f32 %v4119_v27, %v1092_v57  ;;  %v1616_v4 = vadd.f32 %v1584_v39, %v1501_v30  ;;  %v1207_v6 = vunpack.c.h.bf16 %v4722_v29 }
 0x141   : > { %v2150_v7 = vsel %vm2035_vm1, 0.0, %v2149_v46  ;;  %v2159_v22 = vrot.slane %v2154_v31, 4  ;;  %v2162_v62 = vsel %vm2035_vm1, %v2154_v31, %v2161_v2  ;;  %3692 = vlog2.f32 %v735_v17 }
 0x142   : > { %v2158_v32 = vperm.slane %v2150_v7, %v4222_v58  ;;  %v2170_v55 = vperm.slane %v2162_v62, %v4254_v38  ;;  %3694 = vpow2.f32 %v693_v21  ;;  %v1157_v28 = vadd.f32 %v1125_v59, %v1042_v51 }
 0x143   : > { %v2160_v54 = vsel %vm2035_vm1, %v2159_v22, %v2144_v10  ;;  %v1322_v23 = vunpack.c.h.bf16 %v4730_v45  ;;  %v1731_v46 = vadd.f32 %v1699_v12, %v1616_v4  ;;  %v1240_v39 = vmul.f32 %v4127_v33, %v1207_v6 }
 0x144   : > { %v2166_v63 = vperm.slane %v2160_v54, %v4254_v38  ;;  %v2171_v24 = vrot.slane %v2158_v32, 4  ;;  %v2174_v3 = vsel %vm2035_vm1, %v2158_v32, %v2173_v9  ;;  %v2185_v2 = vrot.slane %v2170_v55, 4 }
 0x145   : > { %v2182_v16 = vperm.slane %v2174_v3, %v4254_v38  ;;  %v2933_v57 = vsel %vm2867_vm2, %v2170_v55, 0.0 }
 0x146   : > { %v2172_v10 = vsel %vm2035_vm1, %v2171_v24, %v2148_v34  ;;  %v2183_v31 = vrot.slane %v2166_v63, 4  ;;  %v2186_v29 = vsel %vm2035_vm1, 0.0, %v2185_v2  ;;  %v2871_v45 = vsel %vm2867_vm2, %v2166_v63, 0.0 }
 0x147   : > { %v3693_v17 = vpop.eup %3692  ;;  %v2178_v30 = vperm.slane %v2172_v10, %v4254_v38  ;;  %v2189_v21 = vrot.slane %v2182_v16, 4  ;;  %v4798_v9 = vadd.f32 %v2871_v45, %v4550_v35  ;;  %v4801_v51 = vadd.f32 %v2933_v57, %v4553_v19 }
 0x148   : > { %v3695_v12 = vpop.eup %3694  ;;  %v2184_v59 = vsel %vm2035_vm1, 0.0, %v2183_v31  ;;  %v2964_v34 = vsel %vm2867_vm2, %v2186_v29, 0.0  ;;  %v3057_v7 = vsel %vm2867_vm2, %v2182_v16, 0.0  ;;  %v788_v22 = vmul.f32 0.6931472, %v3693_v17 }
 0x149   : > { %v2187_v62 = vrot.slane %v2178_v30, 4  ;;  %v2190_v32 = vsel %vm2035_vm1, 0.0, %v2189_v21  ;;  %v2902_v55 = vsel %vm2867_vm2, %v2184_v59, 0.0  ;;  %v4809_v4 = vadd.f32 %v2964_v34, %v4561_v13  ;;  %v4848_v21 = vld [vmem:[%s4036_s28 + $0x98] sm:$0xff] }
 0x14a   : > { %v4812_v35 = vadd.f32 %v2902_v55, %v4564_v43  ;;  %v2995_v19 = vsel %vm2867_vm2, %v2178_v30, 0.0  ;;  %v4816_v54 = vadd.f32 %v3057_v7, %v4568_v36  ;;  %v3088_v6 = vsel %vm2867_vm2, %v2190_v32, 0.0  ;;  %v4845_v30 = vld [vmem:[%s4036_s28 + $0x18] sm:$0xff] }
 0x14b   : > { %v2188_v63 = vsel %vm2035_vm1, 0.0, %v2187_v62  ;;  %v4821_v24 = vadd.f32 %v2995_v19, %v4573_v42  ;;  %v4824_v3 = vadd.f32 %v3088_v6, %v4576_v20  ;;  %v6326_v13 = vmax.f32 %v4699_v18, 0.0  ;;  %v4834_v20 = vpop.f32.mrf.mxu0 }
 0x14c   : > { %v3026_v43 = vsel %vm2867_vm2, %v2188_v63, 0.0  ;;  %v959_v16 = vadd.f32 %v4765_v48, %v788_v22  ;;  %v1846_v57 = vadd.f32 %v1814_v0, %v1731_v46  ;;  %v736_v36 = vadd.f32 1.0, %v3695_v12  ;;  %v4870_v63 = vld [vmem:[%s4036_s28 + $0x198] sm:$0xff] }
 0x14d   : > { %v863_v2 = vadd.f32 %v6326_v13, %v788_v22  ;;  %v4831_v10 = vadd.f32 %v3026_v43, %v4585_v37  ;;  %v1272_v29 = vadd.f32 %v1240_v39, %v1157_v28  ;;  %v1355_v42 = vmul.f32 %v4134_v41, %v1322_v23 }
 0x14e   : > { %v1878_v18 = vmul.f32 %v1846_v57, %v959_v16  ;;  %3696 = vlog2.f32 %v736_v36  ;;  %v1437_v45 = vunpack.c.h.bf16 %v4738_v8  ;;  %v1552_v48 = vunpack.c.h.bf16 %v4745_v11  ;;  %v4851_v8 = vld [vmem:[%s4036_s28 + $0x118] sm:$0xff] }
 0x14f   : > { %v1990_v31 = vmul.f32 %v1958_v49, %v863_v2  ;;  %v896_v0 = vsub.f32 0.0, %v4763_v25  ;;  %v1387_v46 = vadd.f32 %v1355_v42, %v1272_v29  ;;  %v1667_v37 = vunpack.c.h.bf16 %v4748_v47  ;;  %v4875_v57 = vld [vmem:[%s4036_s28 + $0x218] sm:$0xff] }
 0x150   : > { %v1782_v49 = vunpack.c.h.bf16 %v4751_v53  ;;  %v1470_v39 = vmul.f32 %v4146_v50, %v1437_v45  ;;  %v1585_v23 = vmul.f32 %v4155_v60, %v1552_v48  ;;  %v593_v17 = vand.u32 2147483647, %v4834_v20  ;;  %v4878_v36 = vld [vmem:[%s4036_s28 + $0x298] sm:$0xff] }
 0x151   : > { %v2022_v28 = vadd.f32 %v1990_v31, %v1878_v18  ;;  %v4855_v11 = vsel %vm2867_vm2, %v4725_v1, 0.0  ;;  %v4859_v47 = vsel %vm2867_vm2, %v4702_v52, 0.0  ;;  %v832_v53 = vmax.f32 %v4763_v25, 0.0  ;;  %v4883_v18 = vld [vmem:[%s4036_s28 + $0x318] sm:$0xff] }
 0x152   : > { %6327 = vst [vmem:[#allocation26_spill] sm:$0xff] %v4855_v11  ;;  %v1927_v12 = vunpack.c.h.bf16 %v4761_v14  ;;  %v1502_v34 = vadd.f32 %v1470_v39, %v1387_v46  ;;  %v1700_v7 = vmul.f32 %v4170_v5, %v1667_v37  ;;  %v625_v22 = vsub.f32 0.0, %v593_v17  ;;  %v4886_v45 = vld [vmem:[%s4036_s28 + $0x398] sm:$0xff]  ;;  %v4892_v17 = vpop.f32.mrf.mxu1 }
 0x153   : > { %6328 = vst [vmem:[#allocation27_spill] sm:$0xff] %v4859_v47  ;;  %v2555_v59 = vrot.slane %v2022_v28, 4  ;;  %v928_v62 = vmax.f32 %v896_v0, 0.0  ;;  %v994_v1 = vunpack.c.l.bf16 %v4845_v30  ;;  %v1077_v32 = vunpack.c.l.bf16 %v4848_v21  ;;  %v5020_v47 = vpop.f32.mrf.mxu3 }
 0x154   : > { %v1192_v52 = vunpack.c.l.bf16 %v4851_v8  ;;  %v3697_v55 = vpop.eup %3696  ;;  %v1617_v14 = vadd.f32 %v1585_v23, %v1502_v34  ;;  %v1815_v19 = vmul.f32 %v4179_v15, %v1782_v49  ;;  %v663_v6 = vmul.f32 1.442695, %v625_v22 }
 0x155   : > { %v2556_v25 = vsel %vm2035_vm1, 0.0, %v2555_v59  ;;  %v2560_v13 = vperm.slane %v2022_v28, %v4222_v58  ;;  %v790_v2 = vmul.f32 0.6931472, %v3697_v55  ;;  %v1959_v43 = vmul.f32 8.0, %v1927_v12 }
 0x156   : > { %v1027_v16 = vmul.f32 %v4117_v26, %v994_v1  ;;  %v1732_v31 = vadd.f32 %v1700_v7, %v1617_v14  ;;  %3698 = vpow2.f32 %v663_v6  ;;  %v1110_v29 = vmul.f32 %v4119_v27, %v1077_v32 }
 0x157   : > { %v1225_v42 = vmul.f32 %v4127_v33, %v1192_v52  ;;  %v2564_v48 = vperm.slane %v2556_v25, %v4222_v58  ;;  %v864_v0 = vadd.f32 %v832_v53, %v790_v2  ;;  %v960_v46 = vadd.f32 %v928_v62, %v790_v2  ;;  %v4901_v25 = vld [vmem:[%s4165_s27 + $0x18] sm:$0xff] }
 0x158   : > { %v1307_v37 = vunpack.c.l.bf16 %v4870_v63  ;;  %v1847_v49 = vadd.f32 %v1815_v19, %v1732_v31  ;;  %v1142_v28 = vadd.f32 %v1110_v29, %v1027_v16  ;;  %v1422_v39 = vunpack.c.l.bf16 %v4875_v57 }
 0x159   : > { %v1537_v23 = vunpack.c.l.bf16 %v4878_v36  ;;  %v1991_v12 = vmul.f32 %v1959_v43, %v864_v0  ;;  %v1652_v34 = vunpack.c.l.bf16 %v4883_v18  ;;  %v1767_v7 = vunpack.c.l.bf16 %v4886_v45 }
 0x15a   : > { %v1340_v59 = vmul.f32 %v4134_v41, %v1307_v37  ;;  %v1879_v53 = vmul.f32 %v1847_v49, %v960_v46  ;;  %v817_v22 = vmax.f32 %v4834_v20, 0.0  ;;  %v1257_v62 = vadd.f32 %v1225_v42, %v1142_v28 }
 0x15b   : > { %v1455_v1 = vmul.f32 %v4146_v50, %v1422_v39  ;;  %v2577_v32 = vrot.slane %v2560_v13, 4  ;;  %v2589_v52 = vrot.slane %v2564_v48, 4  ;;  %v881_v55 = vsub.f32 0.0, %v4834_v20 }
 0x15c   : > { %v594_v14 = vand.u32 2147483647, %v4892_v17  ;;  %v3699_v19 = vpop.eup %3698  ;;  %v2023_v6 = vadd.f32 %v1991_v12, %v1879_v53  ;;  %v1372_v2 = vadd.f32 %v1340_v59, %v1257_v62  ;;  %v1570_v43 = vmul.f32 %v4155_v60, %v1537_v23 }
 0x15d   : > { %v1685_v16 = vmul.f32 %v4170_v5, %v1652_v34  ;;  %v721_v31 = vadd.f32 1.0, %v3699_v19  ;;  %v1800_v29 = vmul.f32 %v4179_v15, %v1767_v7  ;;  %v995_v0 = vunpack.c.h.bf16 %v4845_v30 }
 0x15e   : > { %v626_v42 = vsub.f32 0.0, %v594_v14  ;;  %v2565_v46 = vrot.slane %v2023_v6, 4  ;;  %v2570_v37 = vperm.slane %v2023_v6, %v4222_v58  ;;  %v1487_v49 = vadd.f32 %v1455_v1, %v1372_v2 }
 0x15f   : > { %v1912_v28 = vunpack.c.l.bf16 %v4901_v25  ;;  %3700 = vlog2.f32 %v721_v31  ;;  %v882_v12 = vsub.f32 0.0, %v4892_v17  ;;  %v1078_v23 = vunpack.c.h.bf16 %v4848_v21 }
 0x160   : > { %v665_v39 = vmul.f32 1.442695, %v626_v42  ;;  %v2566_v59 = vsel %vm2035_vm1, 0.0, %v2565_v46  ;;  %v2575_v34 = vrot.slane %v2570_v37, 4  ;;  %v2578_v7 = vsel %vm2035_vm1, %v2570_v37, %v2577_v32 }
 0x161   : > { %v1602_v53 = vadd.f32 %v1570_v43, %v1487_v49  ;;  %v2574_v30 = vperm.slane %v2566_v59, %v4222_v58  ;;  %v2586_v62 = vperm.slane %v2578_v7, %v4254_v38  ;;  %v1028_v1 = vmul.f32 %v4117_v26, %v995_v0 }
 0x162   : > { %3702 = vpow2.f32 %v665_v39  ;;  %v2576_v14 = vsel %vm2035_vm1, %v2575_v34, %v2560_v13  ;;  %v1111_v6 = vmul.f32 %v4119_v27, %v1078_v23  ;;  %v1193_v21 = vunpack.c.h.bf16 %v4851_v8 }
 0x163   : > { %v1717_v19 = vadd.f32 %v1685_v16, %v1602_v53  ;;  %v2582_v2 = vperm.slane %v2576_v14, %v4254_v38  ;;  %v2587_v31 = vrot.slane %v2574_v30, 4  ;;  %v2590_v32 = vsel %vm2035_vm1, %v2574_v30, %v2589_v52 }
 0x164   : > { %v2601_v43 = vrot.slane %v2586_v62, 4  ;;  %v2598_v42 = vperm.slane %v2590_v32, %v4254_v38  ;;  %v913_v46 = vmax.f32 %v881_v55, 0.0  ;;  %v818_v37 = vmax.f32 %v4892_v17, 0.0  ;;  %v4952_v32 = vpop.f32.mrf.mxu2 }
 0x165   : > { %v1308_v0 = vunpack.c.h.bf16 %v4870_v63  ;;  %v3701_v49 = vpop.eup %3700  ;;  %v2588_v13 = vsel %vm2035_vm1, %v2587_v31, %v2564_v48  ;;  %v2599_v16 = vrot.slane %v2582_v2, 4  ;;  %v1944_v8 = vmul.f32 8.0, %v1912_v28 }
 0x166   : > { %v2602_v39 = vsel %vm2035_vm1, 0.0, %v2601_v43  ;;  %v4928_v23 = vperm.slane %v2588_v13, %v4254_v38  ;;  %v4931_v52 = vsel %vm2867_vm2, %v2586_v62, 0.0  ;;  %v4933_v59 = vmax.f32 %v882_v12, 0.0 }
 0x167   : > { %6329 = vst [vmem:[#allocation28_spill] sm:$0xff] %v4931_v52  ;;  %v1143_v55 = vadd.f32 %v1111_v6, %v1028_v1  ;;  %v2605_v7 = vrot.slane %v2598_v42, 4  ;;  %v760_v53 = vmul.f32 0.6931472, %v3701_v49  ;;  %v1832_v63 = vadd.f32 %v1800_v29, %v1717_v19  ;;  %v5006_v19 = vld [vmem:[%s4036_s28 + $0x358] sm:$0xff] }
 0x168   : > { %v3703_v34 = vpop.eup %3702  ;;  %v1226_v30 = vmul.f32 %v4127_v33, %v1193_v21  ;;  %v4937_v48 = vsel %vm2867_vm2, %v2582_v2, 0.0  ;;  %v4940_v28 = vsel %vm2867_vm2, %v2602_v39, 0.0  ;;  %v4943_v14 = vsel %vm2867_vm2, %v2598_v42, 0.0  ;;  %v4964_v39 = vld [vmem:[%s4036_s28 + $0x58] sm:$0xff] }
 0x169   : > { %6330 = vst [vmem:[#allocation29_spill] sm:$0xff] %v4937_v48  ;;  %v1341_v62 = vmul.f32 %v4134_v41, %v1308_v0  ;;  %v2600_v12 = vsel %vm2035_vm1, 0.0, %v2599_v16  ;;  %v849_v1 = vadd.f32 %v817_v22, %v760_v53  ;;  %v945_v6 = vadd.f32 %v913_v46, %v760_v53  ;;  %v4972_v53 = vld [vmem:[%s4036_s28 + $0xd8] sm:$0xff] }
 0x16a   : > { %6331 = vst [vmem:[#allocation30_spill] sm:$0xff] %v4940_v28  ;;  %v722_v29 = vadd.f32 1.0, %v3703_v34  ;;  %v1258_v21 = vadd.f32 %v1226_v30, %v1143_v55  ;;  %v1423_v2 = vunpack.c.h.bf16 %v4875_v57  ;;  %v1538_v31 = vunpack.c.h.bf16 %v4878_v36 }
 0x16b   : > { %6332 = vst [vmem:[#allocation31_spill] sm:$0xff] %v4943_v14  ;;  %v4955_v43 = vsel %vm2035_vm1, 0.0, %v2605_v7  ;;  %v1864_v42 = vmul.f32 %v1832_v63, %v945_v6  ;;  %v1976_v0 = vmul.f32 %v1944_v8, %v849_v1  ;;  %v1653_v49 = vunpack.c.h.bf16 %v4883_v18  ;;  %v4975_v18 = vld [vmem:[%s4036_s28 + $0x158] sm:$0xff] }
 0x16c   : > { %3704 = vlog2.f32 %v722_v29  ;;  %v1373_v20 = vadd.f32 %v1341_v62, %v1258_v21  ;;  %v1456_v22 = vmul.f32 %v4146_v50, %v1423_v2  ;;  %v1571_v46 = vmul.f32 %v4155_v60, %v1538_v31  ;;  %v4988_v29 = vld [vmem:[%s4036_s28 + $0x1d8] sm:$0xff] }
 0x16d   : > { %v2008_v57 = vadd.f32 %v1976_v0, %v1864_v42  ;;  %v1768_v36 = vunpack.c.h.bf16 %v4886_v45  ;;  %v1913_v13 = vunpack.c.h.bf16 %v4901_v25  ;;  %v609_v16 = vand.u32 2147483647, %v4952_v32 }
 0x16e   : > { %v4967_v8 = vsel %vm2867_vm2, %v2600_v12, 0.0  ;;  %v1488_v55 = vadd.f32 %v1456_v22, %v1373_v20  ;;  %v1686_v34 = vmul.f32 %v4170_v5, %v1653_v49  ;;  %v897_v7 = vsub.f32 0.0, %v4952_v32 }
 0x16f   : > { %6333 = vst [vmem:[#allocation32_spill] sm:$0xff] %v4967_v8  ;;  %v4979_v45 = vsel %vm2867_vm2, %v4928_v23, 0.0  ;;  %v2191_v25 = vrot.slane %v2008_v57, 4  ;;  %v4982_v63 = vperm.slane %v2008_v57, %v4222_v58  ;;  %v1801_v12 = vmul.f32 %v4179_v15, %v1768_v36  ;;  %v4996_v57 = vld [vmem:[%s4036_s28 + $0x258] sm:$0xff] }
 0x170   : > { %6334 = vst [vmem:[#allocation33_spill] sm:$0xff] %v4979_v45  ;;  %v1603_v62 = vadd.f32 %v1571_v46, %v1488_v55  ;;  %v641_v1 = vsub.f32 0.0, %v609_v16  ;;  %v1010_v6 = vunpack.c.l.bf16 %v4964_v39  ;;  %v1945_v31 = vmul.f32 8.0, %v1913_v13 }
 0x171   : > { %v2192_v2 = vsel %vm2035_vm1, 0.0, %v2191_v25  ;;  %v1093_v42 = vunpack.c.l.bf16 %v4972_v53  ;;  %v1208_v0 = vunpack.c.l.bf16 %v4975_v18  ;;  %v4993_v49 = vmax.f32 %v897_v7, 0.0  ;;  %v5003_v25 = vld [vmem:[%s4036_s28 + $0x2d8] sm:$0xff] }
 0x172   : > { %v3705_v21 = vpop.eup %3704  ;;  %v1718_v22 = vadd.f32 %v1686_v34, %v1603_v62  ;;  %v695_v46 = vmul.f32 1.442695, %v641_v1  ;;  %v1043_v36 = vmul.f32 %v4117_v26, %v1010_v6  ;;  %v1323_v13 = vunpack.c.l.bf16 %v4988_v29  ;;  %v5013_v1 = vld [vmem:[%s4036_s28 + $0x3d8] sm:$0xff] }
 0x173   : > { %v762_v20 = vmul.f32 0.6931472, %v3705_v21  ;;  %v1126_v16 = vmul.f32 %v4119_v27, %v1093_v42  ;;  %v1241_v55 = vmul.f32 %v4127_v33, %v1208_v0  ;;  %v2200_v21 = vperm.slane %v2192_v2, %v4222_v58  ;;  %v5016_v6 = vld [vmem:[%s4165_s27 + $0x58] sm:$0xff] }
 0x174   : > { %v1833_v62 = vadd.f32 %v1801_v12, %v1718_v22  ;;  %3706 = vpow2.f32 %v695_v46  ;;  %v1356_v0 = vmul.f32 %v4134_v41, %v1323_v13  ;;  %v1438_v30 = vunpack.c.l.bf16 %v4996_v57 }
 0x175   : > { %v850_v34 = vadd.f32 %v818_v37, %v762_v20  ;;  %v946_v7 = vadd.f32 %v4933_v59, %v762_v20  ;;  %v1158_v42 = vadd.f32 %v1126_v16, %v1043_v36  ;;  %v1553_v17 = vunpack.c.l.bf16 %v5003_v25 }
 0x176   : > { %v1668_v37 = vunpack.c.l.bf16 %v5006_v19  ;;  %v1471_v12 = vmul.f32 %v4146_v50, %v1438_v30  ;;  %v1783_v20 = vunpack.c.l.bf16 %v5013_v1  ;;  %v1928_v22 = vunpack.c.l.bf16 %v5016_v6 }
 0x177   : > { %v1865_v14 = vmul.f32 %v1833_v62, %v946_v7  ;;  %v1977_v2 = vmul.f32 %v1945_v31, %v850_v34  ;;  %v1273_v59 = vadd.f32 %v1241_v55, %v1158_v42  ;;  %v2213_v46 = vrot.slane %v4982_v63, 4 }
 0x178   : > { %v2225_v36 = vrot.slane %v2200_v21, 4  ;;  %v610_v13 = vand.u32 2147483647, %v5020_v47  ;;  %v1586_v31 = vmul.f32 %v4155_v60, %v1553_v17  ;;  %v1701_v34 = vmul.f32 %v4170_v5, %v1668_v37 }
 0x179   : > { %v2009_v16 = vadd.f32 %v1977_v2, %v1865_v14  ;;  %v1388_v11 = vadd.f32 %v1356_v0, %v1273_v59  ;;  %v1816_v7 = vmul.f32 %v4179_v15, %v1783_v20  ;;  %v5033_v62 = vmul.f32 8.0, %v1928_v22 }
 0x17a   : > { %v642_v42 = vsub.f32 0.0, %v610_v13  ;;  %v3707_v45 = vpop.eup %3706  ;;  %v898_v8 = vsub.f32 0.0, %v5020_v47  ;;  %v1011_v14 = vunpack.c.h.bf16 %v4964_v39  ;;  %v1094_v0 = vunpack.c.h.bf16 %v4972_v53 }
 0x17b   : > { %v2201_v55 = vrot.slane %v2009_v16, 4  ;;  %v2206_v30 = vperm.slane %v2009_v16, %v4222_v58  ;;  %v1503_v28 = vadd.f32 %v1471_v12, %v1388_v11  ;;  %v737_v59 = vadd.f32 1.0, %v3707_v45 }
 0x17c   : > { %v697_v13 = vmul.f32 1.442695, %v642_v42  ;;  %v1044_v39 = vmul.f32 %v4117_v26, %v1011_v14  ;;  %v1209_v53 = vunpack.c.h.bf16 %v4975_v18 }
 0x17d   : > { %v2202_v2 = vsel %vm2035_vm1, 0.0, %v2201_v55  ;;  %v2211_v17 = vrot.slane %v2206_v30, 4  ;;  %v2214_v37 = vsel %vm2035_vm1, %v2206_v30, %v2213_v46  ;;  %v1618_v16 = vadd.f32 %v1586_v31, %v1503_v28 }
 0x17e   : > { %v2210_v20 = vperm.slane %v2202_v2, %v4222_v58  ;;  %v2222_v22 = vperm.slane %v2214_v37, %v4254_v38  ;;  %3708 = vlog2.f32 %v737_v59 }
 0x17f   : > { %v2212_v11 = vsel %vm2035_vm1, %v2211_v17, %v4982_v63  ;;  %v1733_v28 = vadd.f32 %v1701_v34, %v1618_v16  ;;  %3710 = vpow2.f32 %v697_v13 }
 0x180   : > { %v2218_v12 = vperm.slane %v2212_v11, %v4254_v38  ;;  %v2223_v55 = vrot.slane %v2210_v20, 4  ;;  %v2226_v46 = vsel %vm2035_vm1, %v2210_v20, %v2225_v36  ;;  %v2237_v45 = vrot.slane %v2222_v22, 4 }
 0x181   : > { %v2234_v30 = vperm.slane %v2226_v46, %v4254_v38  ;;  %v2935_v2 = vsel %vm2867_vm2, %v2222_v22, 0.0  ;;  %v1848_v20 = vadd.f32 %v1816_v7, %v1733_v28 }
 0x182   : > { %v2224_v31 = vsel %vm2035_vm1, %v2223_v55, %v2200_v21  ;;  %v2235_v63 = vrot.slane %v2218_v12, 4  ;;  %v2238_v42 = vsel %vm2035_vm1, 0.0, %v2237_v45  ;;  %v2873_v14 = vsel %vm2867_vm2, %v2218_v12, 0.0 }
 0x183   : > { %v2230_v18 = vperm.slane %v2224_v31, %v4254_v38  ;;  %v2241_v17 = vrot.slane %v2234_v30, 4  ;;  %v5055_v37 = vadd.f32 %v2873_v14, %v4798_v9  ;;  %v5058_v36 = vadd.f32 %v2935_v2, %v4801_v51 }
 0x184   : > { %v2236_v59 = vsel %vm2035_vm1, 0.0, %v2235_v63  ;;  %v2966_v34 = vsel %vm2867_vm2, %v2238_v42, 0.0  ;;  %v3059_v21 = vsel %vm2867_vm2, %v2234_v30, 0.0  ;;  %v3709_v22 = vpop.eup %3708  ;;  %v1127_v31 = vmul.f32 %v4119_v27, %v1094_v0 }
 0x185   : > { %v2239_v16 = vrot.slane %v2230_v18, 4  ;;  %v2242_v13 = vsel %vm2035_vm1, 0.0, %v2241_v17  ;;  %v2904_v11 = vsel %vm2867_vm2, %v2236_v59, 0.0  ;;  %v5066_v12 = vadd.f32 %v2966_v34, %v4809_v4  ;;  %v3711_v7 = vpop.eup %3710  ;;  %v5095_v59 = vpop.f32.mrf.mxu0 }
 0x186   : > { %v5069_v9 = vadd.f32 %v2904_v11, %v4812_v35  ;;  %v2997_v51 = vsel %vm2867_vm2, %v2230_v18, 0.0  ;;  %v5073_v55 = vadd.f32 %v3059_v21, %v4816_v54  ;;  %v3090_v46 = vsel %vm2867_vm2, %v2242_v13, 0.0 }
 0x187   : > { %v2240_v45 = vsel %vm2035_vm1, 0.0, %v2239_v16  ;;  %v5078_v30 = vadd.f32 %v2997_v51, %v4821_v24  ;;  %v5081_v2 = vadd.f32 %v3090_v46, %v4824_v3  ;;  %v792_v4 = vmul.f32 0.6931472, %v3709_v22  ;;  %v5115_v16 = vld [vmem:[%s4036_s28 + $0xa0] sm:$0xff] }
 0x188   : > { %v3028_v35 = vsel %vm2867_vm2, %v2240_v45, 0.0  ;;  %v738_v28 = vadd.f32 1.0, %v3711_v7  ;;  %v1242_v54 = vmul.f32 %v4127_v33, %v1209_v53  ;;  %v6335_v42 = vmax.f32 %v4952_v32, 0.0 }
 0x189   : > { %v5087_v63 = vadd.f32 %v3028_v35, %v4831_v10  ;;  %v961_v24 = vadd.f32 %v4993_v49, %v792_v4  ;;  %v1324_v18 = vunpack.c.h.bf16 %v4988_v29  ;;  %v1159_v3 = vadd.f32 %v1127_v31, %v1044_v39 }
 0x18a   : > { %v865_v14 = vadd.f32 %v6335_v42, %v792_v4  ;;  %3712 = vlog2.f32 %v738_v28  ;;  %v1439_v17 = vunpack.c.h.bf16 %v4996_v57  ;;  %v1554_v0 = vunpack.c.h.bf16 %v5003_v25  ;;  %v5127_v28 = vld [vmem:[%s4036_s28 + $0x120] sm:$0xff] }
 0x18b   : > { %v1880_v53 = vmul.f32 %v1848_v20, %v961_v24  ;;  %v1357_v32 = vmul.f32 %v4134_v41, %v1324_v18  ;;  %v1669_v34 = vunpack.c.h.bf16 %v5006_v19  ;;  %v5102_v29 = vsel %vm2867_vm2, %v4955_v43, 0.0  ;;  %v5112_v19 = vld [vmem:[%s4036_s28 + $0x20] sm:$0xff] }
 0x18c   : > { %v1992_v10 = vmul.f32 %v5033_v62, %v865_v14  ;;  %6336 = vst [vmem:[#allocation34_spill] sm:$0xff] %v5102_v29  ;;  %v1274_v49 = vadd.f32 %v1242_v54, %v1159_v3  ;;  %v1472_v39 = vmul.f32 %v4146_v50, %v1439_v17  ;;  %v1784_v57 = vunpack.c.h.bf16 %v5013_v1  ;;  %v5134_v14 = vld [vmem:[%s4036_s28 + $0x1a0] sm:$0xff] }
 0x18d   : > { %v6337_v25 = vrot.slane %v4928_v23, 4  ;;  %v834_v62 = vmax.f32 %v5020_v47, 0.0  ;;  %v595_v22 = vand.u32 2147483647, %v5095_v59  ;;  %v930_v43 = vmax.f32 %v898_v8, 0.0 }
 0x18e   : > { %v2024_v20 = vadd.f32 %v1992_v10, %v1880_v53  ;;  %v1389_v13 = vadd.f32 %v1357_v32, %v1274_v49  ;;  %v1587_v1 = vmul.f32 %v4155_v60, %v1554_v0  ;;  %v1929_v23 = vunpack.c.h.bf16 %v5016_v6  ;;  %v5139_v0 = vld [vmem:[%s4036_s28 + $0x220] sm:$0xff] }
 0x18f   : > { %v2604_v21 = vsel %vm2035_vm1, 0.0, %v6337_v25  ;;  %v1702_v51 = vmul.f32 %v4170_v5, %v1669_v34  ;;  %v1817_v46 = vmul.f32 %v4179_v15, %v1784_v57  ;;  %v627_v7 = vsub.f32 0.0, %v595_v22  ;;  %v5142_v53 = vld [vmem:[%s4036_s28 + $0x2a0] sm:$0xff] }
 0x190   : > { %v2607_v11 = vrot.slane %v2024_v20, 4  ;;  %v3713_v45 = vpop.eup %3712  ;;  %v1504_v4 = vadd.f32 %v1472_v39, %v1389_v13  ;;  %v883_v35 = vsub.f32 0.0, %v5095_v59  ;;  %v996_v47 = vunpack.c.l.bf16 %v5112_v19 }
 0x191   : > { %v1079_v8 = vunpack.c.l.bf16 %v5115_v16  ;;  %v5131_v31 = vperm.slane %v2024_v20, %v4222_v58  ;;  %v794_v54 = vmul.f32 0.6931472, %v3713_v45  ;;  %v667_v42 = vmul.f32 1.442695, %v627_v7  ;;  %v5150_v20 = vld [vmem:[%s4036_s28 + $0x320] sm:$0xff] }
 0x192   : > { %v2608_v6 = vsel %vm2035_vm1, 0.0, %v2607_v11  ;;  %v1619_v24 = vadd.f32 %v1587_v1, %v1504_v4  ;;  %v1961_v18 = vmul.f32 8.0, %v1929_v23  ;;  %v1029_v3 = vmul.f32 %v4117_v26, %v996_v47  ;;  %v5158_v23 = vpop.f32.mrf.mxu1  ;;  %v5163_v45 = vld [vmem:[%s4036_s28 + $0x3a0] sm:$0xff] }
 0x193   : > { %v1112_v17 = vmul.f32 %v4119_v27, %v1079_v8  ;;  %v5145_v10 = vperm.slane %v2608_v6, %v4222_v58  ;;  %v866_v32 = vadd.f32 %v834_v62, %v794_v54  ;;  %3714 = vpow2.f32 %v667_v42  ;;  %v5166_v4 = vld [vmem:[%s4165_s27 + $0x20] sm:$0xff] }
 0x194   : > { %v1194_v34 = vunpack.c.l.bf16 %v5127_v28  ;;  %v962_v49 = vadd.f32 %v930_v43, %v794_v54  ;;  %v1734_v39 = vadd.f32 %v1702_v51, %v1619_v24  ;;  %v1309_v25 = vunpack.c.l.bf16 %v5134_v14 }
 0x195   : > { %v1144_v57 = vadd.f32 %v1112_v17, %v1029_v3  ;;  %v5153_v22 = vsel %vm2867_vm2, %v2604_v21, 0.0  ;;  %v1424_v1 = vunpack.c.l.bf16 %v5139_v0  ;;  %v1539_v62 = vunpack.c.l.bf16 %v5142_v53 }
 0x196   : > { %6338 = vst [vmem:[#allocation35_spill] sm:$0xff] %v5153_v22  ;;  %v1227_v13 = vmul.f32 %v4127_v33, %v1194_v34  ;;  %v1849_v11 = vadd.f32 %v1817_v46, %v1734_v39  ;;  %v1993_v7 = vmul.f32 %v1961_v18, %v866_v32  ;;  %v1342_v51 = vmul.f32 %v4134_v41, %v1309_v25 }
 0x197   : > { %v5168_v21 = vmax.f32 %v883_v35, 0.0  ;;  %v1457_v8 = vmul.f32 %v4146_v50, %v1424_v1  ;;  %v1654_v6 = vunpack.c.l.bf16 %v5150_v20  ;;  %v2629_v54 = vrot.slane %v5131_v31, 4 }
 0x198   : > { %v1259_v47 = vadd.f32 %v1227_v13, %v1144_v57  ;;  %v2641_v46 = vrot.slane %v5145_v10, 4  ;;  %v1881_v42 = vmul.f32 %v1849_v11, %v962_v49  ;;  %v596_v24 = vand.u32 2147483647, %v5158_v23 }
 0x199   : > { %v3715_v18 = vpop.eup %3714  ;;  %v1572_v17 = vmul.f32 %v4155_v60, %v1539_v62  ;;  %v1769_v32 = vunpack.c.l.bf16 %v5163_v45  ;;  %v1914_v35 = vunpack.c.l.bf16 %v5166_v4  ;;  %v997_v25 = vunpack.c.h.bf16 %v5112_v19 }
 0x19a   : > { %v1374_v3 = vadd.f32 %v1342_v51, %v1259_v47  ;;  %v2025_v34 = vadd.f32 %v1993_v7, %v1881_v42  ;;  %v723_v39 = vadd.f32 1.0, %v3715_v18  ;;  %v628_v57 = vsub.f32 0.0, %v596_v24 }
 0x19b   : > { %v1687_v1 = vmul.f32 %v4170_v5, %v1654_v6  ;;  %v1080_v49 = vunpack.c.h.bf16 %v5115_v16  ;;  %v1195_v11 = vunpack.c.h.bf16 %v5127_v28  ;;  %v884_v29 = vsub.f32 0.0, %v5158_v23 }
 0x19c   : > { %v1489_v13 = vadd.f32 %v1457_v8, %v1374_v3  ;;  %v2617_v43 = vrot.slane %v2025_v34, 4  ;;  %v2622_v51 = vperm.slane %v2025_v34, %v4222_v58  ;;  %3716 = vlog2.f32 %v723_v39 }
 0x19d   : > { %v669_v62 = vmul.f32 1.442695, %v628_v57  ;;  %v1030_v7 = vmul.f32 %v4117_v26, %v997_v25  ;;  %v1113_v42 = vmul.f32 %v4119_v27, %v1080_v49  ;;  %v1228_v18 = vmul.f32 %v4127_v33, %v1195_v11 }
 0x19e   : > { %v1604_v47 = vadd.f32 %v1572_v17, %v1489_v13  ;;  %v2618_v19 = vsel %vm2035_vm1, 0.0, %v2617_v43  ;;  %v2627_v8 = vrot.slane %v2622_v51, 4  ;;  %v2630_v6 = vsel %vm2035_vm1, %v2622_v51, %v2629_v54 }
 0x19f   : > { %3718 = vpow2.f32 %v669_v62  ;;  %v2626_v16 = vperm.slane %v2618_v19, %v4222_v58  ;;  %v2638_v28 = vperm.slane %v2630_v6, %v4254_v38  ;;  %v1145_v24 = vadd.f32 %v1113_v42, %v1030_v7 }
 0x1a0   : > { %v2628_v3 = vsel %vm2035_vm1, %v2627_v8, %v5131_v31  ;;  %v1719_v17 = vadd.f32 %v1687_v1, %v1604_v47  ;;  %v1802_v34 = vmul.f32 %v4179_v15, %v1769_v32  ;;  %v1310_v39 = vunpack.c.h.bf16 %v5134_v14 }
 0x1a1   : > { %v2634_v43 = vperm.slane %v2628_v3, %v4254_v38  ;;  %v2639_v57 = vrot.slane %v2626_v16, 4  ;;  %v2642_v54 = vsel %vm2035_vm1, %v2626_v16, %v2641_v46  ;;  %v2653_v25 = vrot.slane %v2638_v28, 4 }
 0x1a2   : > { %v3717_v13 = vpop.eup %3716  ;;  %v2650_v49 = vperm.slane %v2642_v54, %v4254_v38  ;;  %v1946_v51 = vmul.f32 8.0, %v1914_v35  ;;  %v820_v11 = vmax.f32 %v5158_v23, 0.0  ;;  %v5199_v62 = vmax.f32 %v884_v29, 0.0 }
 0x1a3   : > { %v2640_v31 = vsel %vm2035_vm1, %v2639_v57, %v5145_v10  ;;  %v2654_v32 = vsel %vm2035_vm1, 0.0, %v2653_v25  ;;  %v1260_v14 = vadd.f32 %v1228_v18, %v1145_v24  ;;  %v1425_v1 = vunpack.c.h.bf16 %v5139_v0 }
 0x1a4   : > { %v5206_v46 = vperm.slane %v2640_v31, %v4254_v38  ;;  %v5209_v7 = vsel %vm2867_vm2, %v2638_v28, 0.0  ;;  %v1834_v35 = vadd.f32 %v1802_v34, %v1719_v17  ;;  %v1540_v42 = vunpack.c.h.bf16 %v5142_v53  ;;  %v5223_v17 = vpop.f32.mrf.mxu2 }
 0x1a5   : > { %v3719_v47 = vpop.eup %3718  ;;  %6339 = vst [vmem:[#allocation36_spill] sm:$0xff] %v5209_v7  ;;  %v2651_v29 = vrot.slane %v2634_v43, 4  ;;  %v764_v19 = vmul.f32 0.6931472, %v3717_v13  ;;  %v1343_v10 = vmul.f32 %v4134_v41, %v1310_v39  ;;  %v2657_v16 = vrot.slane %v2650_v49, 4  ;;  %v5236_v13 = vld [vmem:[%s4036_s28 + $0x60] sm:$0xff] }
 0x1a6   : > { %v724_v8 = vadd.f32 1.0, %v3719_v47  ;;  %v2655_v6 = vrot.slane %v5206_v46, 4  ;;  %v5215_v0 = vsel %vm2867_vm2, %v2634_v43, 0.0  ;;  %v5218_v24 = vsel %vm2867_vm2, %v2654_v32, 0.0 }
 0x1a7   : > { %6340 = vst [vmem:[#allocation37_spill] sm:$0xff] %v5215_v0  ;;  %v6342_v28 = vmax.f32 %v5095_v59, 0.0  ;;  %v947_v53 = vadd.f32 %v5168_v21, %v764_v19  ;;  %v1375_v3 = vadd.f32 %v1343_v10, %v1260_v14  ;;  %v5226_v34 = vsel %vm2867_vm2, %v2650_v49, 0.0 }
 0x1a8   : > { %6341 = vst [vmem:[#allocation38_spill] sm:$0xff] %v5218_v24  ;;  %3720 = vlog2.f32 %v724_v8  ;;  %v1458_v39 = vmul.f32 %v4146_v50, %v1425_v1  ;;  %v1573_v43 = vmul.f32 %v4155_v60, %v1540_v42  ;;  %v1655_v57 = vunpack.c.h.bf16 %v5150_v20  ;;  %v5242_v1 = vld [vmem:[%s4036_s28 + $0xe0] sm:$0xff] }
 0x1a9   : > { %v851_v18 = vadd.f32 %v6342_v28, %v764_v19  ;;  %6343 = vst [vmem:[#allocation39_spill] sm:$0xff] %v5226_v34  ;;  %v5232_v54 = vsel %vm2035_vm1, 0.0, %v2651_v29  ;;  %v1866_v59 = vmul.f32 %v1834_v35, %v947_v53  ;;  %v1770_v21 = vunpack.c.h.bf16 %v5163_v45  ;;  %v5254_v19 = vld [vmem:[%s4036_s28 + $0x160] sm:$0xff] }
 0x1aa   : > { %v1490_v31 = vadd.f32 %v1458_v39, %v1375_v3  ;;  %v1688_v49 = vmul.f32 %v4170_v5, %v1655_v57  ;;  %v1915_v32 = vunpack.c.h.bf16 %v5166_v4  ;;  %v611_v14 = vand.u32 2147483647, %v5223_v17  ;;  %v5284_v29 = vld [vmem:[%s4165_s27 + $0x60] sm:$0xff] }
 0x1ab   : > { %v1978_v25 = vmul.f32 %v1946_v51, %v851_v18  ;;  %v5245_v20 = vsel %vm2035_vm1, 0.0, %v2655_v6  ;;  %v5248_v47 = vsel %vm2035_vm1, 0.0, %v2657_v16  ;;  %v1803_v45 = vmul.f32 %v4179_v15, %v1770_v21 }
 0x1ac   : > { %6344 = vst [vmem:[#allocation40_spill] sm:$0xff] %v5248_v47  ;;  %v1605_v35 = vadd.f32 %v1573_v43, %v1490_v31  ;;  %v643_v42 = vsub.f32 0.0, %v611_v14  ;;  %v1012_v4 = vunpack.c.l.bf16 %v5236_v13  ;;  %v1947_v28 = vmul.f32 8.0, %v1915_v32  ;;  %v5260_v43 = vld [vmem:[%s4036_s28 + $0x1e0] sm:$0xff] }
 0x1ad   : > { %v2010_v51 = vadd.f32 %v1978_v25, %v1866_v59  ;;  %v1095_v16 = vunpack.c.l.bf16 %v5242_v1  ;;  %v899_v59 = vsub.f32 0.0, %v5223_v17  ;;  %v1210_v21 = vunpack.c.l.bf16 %v5254_v19  ;;  %v5267_v31 = vld [vmem:[%s4036_s28 + $0x260] sm:$0xff] }
 0x1ae   : > { %v3721_v8 = vpop.eup %3720  ;;  %v1720_v53 = vadd.f32 %v1688_v49, %v1605_v35  ;;  %v699_v3 = vmul.f32 1.442695, %v643_v42  ;;  %v1045_v39 = vmul.f32 %v4117_v26, %v1012_v4  ;;  %v5273_v35 = vld [vmem:[%s4036_s28 + $0x2e0] sm:$0xff] }
 0x1af   : > { %v2243_v10 = vrot.slane %v2010_v51, 4  ;;  %v2248_v6 = vperm.slane %v2010_v51, %v4222_v58  ;;  %v766_v18 = vmul.f32 0.6931472, %v3721_v8  ;;  %v1128_v25 = vmul.f32 %v4119_v27, %v1095_v16  ;;  %v5276_v42 = vld [vmem:[%s4036_s28 + $0x360] sm:$0xff] }
 0x1b0   : > { %v1835_v51 = vadd.f32 %v1803_v45, %v1720_v53  ;;  %3722 = vpow2.f32 %v699_v3  ;;  %v1243_v8 = vmul.f32 %v4127_v33, %v1210_v21  ;;  %v5281_v16 = vld [vmem:[%s4036_s28 + $0x3e0] sm:$0xff]  ;;  %v5288_v45 = vpop.f32.mrf.mxu3  ;;  %v1555_v3 = vunpack.c.l.bf16 %v5273_v35 }
 0x1b1   : > { %v2244_v57 = vsel %vm2035_vm1, 0.0, %v2243_v10  ;;  %v2265_v32 = vrot.slane %v2248_v6, 4  ;;  %v852_v49 = vadd.f32 %v820_v11, %v766_v18  ;;  %v948_v14 = vadd.f32 %v5199_v62, %v766_v18 }
 0x1b2   : > { %v1160_v4 = vadd.f32 %v1128_v25, %v1045_v39  ;;  %v1325_v10 = vunpack.c.l.bf16 %v5260_v43  ;;  %v2252_v23 = vperm.slane %v2244_v57, %v4222_v58  ;;  %v1440_v62 = vunpack.c.l.bf16 %v5267_v31 }
 0x1b3   : > { %v1867_v11 = vmul.f32 %v1835_v51, %v948_v14  ;;  %v1979_v47 = vmul.f32 %v1947_v28, %v852_v49  ;;  %v1670_v39 = vunpack.c.l.bf16 %v5276_v42  ;;  %v1785_v34 = vunpack.c.l.bf16 %v5281_v16 }
 0x1b4   : > { %v1275_v18 = vadd.f32 %v1243_v8, %v1160_v4  ;;  %v1358_v53 = vmul.f32 %v4134_v41, %v1325_v10  ;;  %v1473_v21 = vmul.f32 %v4146_v50, %v1440_v62  ;;  %v1930_v57 = vunpack.c.l.bf16 %v5284_v29 }
 0x1b5   : > { %v2011_v25 = vadd.f32 %v1979_v47, %v1867_v11  ;;  %v5296_v14 = vmax.f32 %v899_v59, 0.0  ;;  %v1588_v49 = vmul.f32 %v4155_v60, %v1555_v3  ;;  %v612_v51 = vand.u32 2147483647, %v5288_v45 }
 0x1b6   : > { %v1390_v28 = vadd.f32 %v1358_v53, %v1275_v18  ;;  %v2277_v4 = vrot.slane %v2252_v23, 4  ;;  %v1703_v22 = vmul.f32 %v4170_v5, %v1670_v39  ;;  %v3723_v47 = vpop.eup %3722  ;;  %v1818_v62 = vmul.f32 %v4179_v15, %v1785_v34 }
 0x1b7   : > { %v2253_v8 = vrot.slane %v2011_v25, 4  ;;  %v2258_v10 = vperm.slane %v2011_v25, %v4222_v58  ;;  %v1962_v24 = vmul.f32 8.0, %v1930_v57  ;;  %v644_v7 = vsub.f32 0.0, %v612_v51 }
 0x1b8   : > { %v1505_v11 = vadd.f32 %v1473_v21, %v1390_v28  ;;  %v739_v53 = vadd.f32 1.0, %v3723_v47  ;;  %v900_v21 = vsub.f32 0.0, %v5288_v45  ;;  %v1013_v34 = vunpack.c.h.bf16 %v5236_v13 }
 0x1b9   : > { %v2254_v59 = vsel %vm2035_vm1, 0.0, %v2253_v8  ;;  %v2263_v0 = vrot.slane %v2258_v10, 4  ;;  %v2266_v18 = vsel %vm2035_vm1, %v2258_v10, %v2265_v32  ;;  %v701_v25 = vmul.f32 1.442695, %v644_v7 }
 0x1ba   : > { %v2262_v3 = vperm.slane %v2254_v59, %v4222_v58  ;;  %v2274_v52 = vperm.slane %v2266_v18, %v4254_v38  ;;  %v1620_v48 = vadd.f32 %v1588_v49, %v1505_v11  ;;  %3724 = vlog2.f32 %v739_v53 }
 0x1bb   : > { %v2264_v39 = vsel %vm2035_vm1, %v2263_v0, %v2248_v6  ;;  %3726 = vpow2.f32 %v701_v25 }
 0x1bc   : > { %v2270_v57 = vperm.slane %v2264_v39, %v4254_v38  ;;  %v2275_v28 = vrot.slane %v2262_v3, 4  ;;  %v2278_v51 = vsel %vm2035_vm1, %v2262_v3, %v2277_v4  ;;  %v2289_v32 = vrot.slane %v2274_v52, 4 }
 0x1bd   : > { %v2286_v8 = vperm.slane %v2278_v51, %v4254_v38  ;;  %v2937_v10 = vsel %vm2867_vm2, %v2274_v52, 0.0  ;;  %v1735_v47 = vadd.f32 %v1703_v22, %v1620_v48 }
 0x1be   : > { %v2276_v7 = vsel %vm2035_vm1, %v2275_v28, %v2252_v23  ;;  %v2287_v0 = vrot.slane %v2270_v57, 4  ;;  %v2290_v6 = vsel %vm2035_vm1, 0.0, %v2289_v32  ;;  %v2875_v49 = vsel %vm2867_vm2, %v2270_v57, 0.0 }
 0x1bf   : > { %v2282_v13 = vperm.slane %v2276_v7, %v4254_v38  ;;  %v2293_v11 = vrot.slane %v2286_v8, 4  ;;  %v5319_v59 = vadd.f32 %v2875_v49, %v5055_v37  ;;  %v5322_v4 = vadd.f32 %v2937_v10, %v5058_v36 }
 0x1c0   : > { %v2288_v52 = vsel %vm2035_vm1, 0.0, %v2287_v0  ;;  %v2968_v48 = vsel %vm2867_vm2, %v2290_v6, 0.0  ;;  %v3061_v22 = vsel %vm2867_vm2, %v2286_v8, 0.0  ;;  %v1850_v23 = vadd.f32 %v1818_v62, %v1735_v47  ;;  %v3725_v18 = vpop.eup %3724 }
 0x1c1   : > { %v2291_v53 = vrot.slane %v2282_v13, 4  ;;  %v2294_v3 = vsel %vm2035_vm1, 0.0, %v2293_v11  ;;  %v2906_v25 = vsel %vm2867_vm2, %v2288_v52, 0.0  ;;  %v5330_v39 = vadd.f32 %v2968_v48, %v5066_v12  ;;  %v3727_v62 = vpop.eup %3726  ;;  %v5362_v52 = vpop.f32.mrf.mxu0 }
 0x1c2   : > { %v5333_v37 = vadd.f32 %v2906_v25, %v5069_v9  ;;  %v2999_v36 = vsel %vm2867_vm2, %v2282_v13, 0.0  ;;  %v5337_v57 = vadd.f32 %v3061_v22, %v5073_v55  ;;  %v3092_v28 = vsel %vm2867_vm2, %v2294_v3, 0.0  ;;  %v5386_v3 = vld [vmem:[%s4036_s28 + $0xa8] sm:$0xff] }
 0x1c3   : > { %v2292_v51 = vsel %vm2035_vm1, 0.0, %v2291_v53  ;;  %v5342_v32 = vadd.f32 %v2999_v36, %v5078_v30  ;;  %v5345_v8 = vadd.f32 %v3092_v28, %v5081_v2  ;;  %v796_v12 = vmul.f32 0.6931472, %v3725_v18 }
 0x1c4   : > { %v3030_v9 = vsel %vm2867_vm2, %v2292_v51, 0.0  ;;  %v740_v10 = vadd.f32 1.0, %v3727_v62  ;;  %v1046_v47 = vmul.f32 %v4117_v26, %v1013_v34  ;;  %v1096_v55 = vunpack.c.h.bf16 %v5242_v1 }
 0x1c5   : > { %v5351_v7 = vadd.f32 %v3030_v9, %v5087_v63  ;;  %v6345_v0 = vmax.f32 %v5223_v17, 0.0  ;;  %v963_v30 = vadd.f32 %v5296_v14, %v796_v12  ;;  %v1211_v49 = vunpack.c.h.bf16 %v5254_v19 }
 0x1c6   : > { %3728 = vlog2.f32 %v740_v10  ;;  %v1129_v2 = vmul.f32 %v4119_v27, %v1096_v55  ;;  %v1326_v13 = vunpack.c.h.bf16 %v5260_v43  ;;  %v1441_v34 = vunpack.c.h.bf16 %v5267_v31 }
 0x1c7   : > { %v867_v6 = vadd.f32 %v6345_v0, %v796_v12  ;;  %v1882_v11 = vmul.f32 %v1850_v23, %v963_v30  ;;  %v1244_v63 = vmul.f32 %v4127_v33, %v1211_v49  ;;  %v1556_v17 = vunpack.c.h.bf16 %v5273_v35  ;;  %v5380_v23 = vld [vmem:[%s4036_s28 + $0x28] sm:$0xff] }
 0x1c8   : > { %v5366_v19 = vsel %vm2867_vm2, %v5232_v54, 0.0  ;;  %v1161_v14 = vadd.f32 %v1129_v2, %v1046_v47  ;;  %v1359_v48 = vmul.f32 %v4134_v41, %v1326_v13  ;;  %v1671_v43 = vunpack.c.h.bf16 %v5276_v42  ;;  %v3460_v47 = vld [vmem:[%s4036_s28 + $0x128] sm:$0xff] }
 0x1c9   : > { %v1994_v1 = vmul.f32 %v1962_v24, %v867_v6  ;;  %6346 = vst [vmem:[#allocation41_spill] sm:$0xff] %v5366_v19  ;;  %v5372_v31 = vsel %vm2867_vm2, %v5206_v46, 0.0  ;;  %v5376_v24 = vsel %vm2867_vm2, %v5245_v20, 0.0  ;;  %v836_v22 = vmax.f32 %v5288_v45, 0.0  ;;  %v5403_v30 = vld [vmem:[%s4036_s28 + $0x1a8] sm:$0xff] }
 0x1ca   : > { %6347 = vst [vmem:[#allocation42_spill] sm:$0xff] %v5372_v31  ;;  %v1276_v54 = vadd.f32 %v1244_v63, %v1161_v14  ;;  %v1474_v18 = vmul.f32 %v4146_v50, %v1441_v34  ;;  %v1786_v53 = vunpack.c.h.bf16 %v5281_v16  ;;  %v597_v42 = vand.u32 2147483647, %v5362_v52  ;;  %v5406_v49 = vld [vmem:[%s4036_s28 + $0x228] sm:$0xff] }
 0x1cb   : > { %6348 = vst [vmem:[#allocation43_spill] sm:$0xff] %v5376_v24  ;;  %v2026_v35 = vadd.f32 %v1994_v1, %v1882_v11  ;;  %v932_v20 = vmax.f32 %v900_v21, 0.0  ;;  %v1589_v25 = vmul.f32 %v4155_v60, %v1556_v17  ;;  %v1931_v36 = vunpack.c.h.bf16 %v5284_v29  ;;  %v5411_v1 = vld [vmem:[%s4036_s28 + $0x2a8] sm:$0xff] }
 0x1cc   : > { %v3729_v28 = vpop.eup %3728  ;;  %v1391_v62 = vadd.f32 %v1359_v48, %v1276_v54  ;;  %v1704_v51 = vmul.f32 %v4170_v5, %v1671_v43  ;;  %v629_v16 = vsub.f32 0.0, %v597_v42  ;;  %v998_v12 = vunpack.c.l.bf16 %v5380_v23  ;;  %v5414_v63 = vld [vmem:[%s4036_s28 + $0x328] sm:$0xff] }
 0x1cd   : > { %v2659_v46 = vrot.slane %v2026_v35, 4  ;;  %v798_v10 = vmul.f32 0.6931472, %v3729_v28  ;;  %v1081_v21 = vunpack.c.l.bf16 %v5386_v3  ;;  %v5399_v29 = vperm.slane %v2026_v35, %v4222_v58  ;;  %v5428_v28 = vld [vmem:[%s4165_s27 + $0x28] sm:$0xff] }
 0x1ce   : > { %v1506_v55 = vadd.f32 %v1474_v18, %v1391_v62  ;;  %v1819_v0 = vmul.f32 %v4179_v15, %v1786_v53  ;;  %v671_v6 = vmul.f32 1.442695, %v629_v16  ;;  %v1963_v13 = vmul.f32 8.0, %v1931_v36  ;;  %v5422_v18 = vld [vmem:[%s4036_s28 + $0x3a8] sm:$0xff] }
 0x1cf   : > { %v2660_v9 = vsel %vm2035_vm1, 0.0, %v2659_v46  ;;  %v868_v2 = vadd.f32 %v836_v22, %v798_v10  ;;  %v1031_v34 = vmul.f32 %v4117_v26, %v998_v12  ;;  %v1114_v11 = vmul.f32 %v4119_v27, %v1081_v21 }
 0x1d0   : > { %v5417_v17 = vperm.slane %v2660_v9, %v4222_v58  ;;  %v1621_v14 = vadd.f32 %v1589_v25, %v1506_v55  ;;  %3730 = vpow2.f32 %v671_v6  ;;  %v1196_v48 = vunpack.c.l.bf16 %v3460_v47  ;;  %v5430_v25 = vpop.f32.mrf.mxu1 }
 0x1d1   : > { %v964_v43 = vadd.f32 %v932_v20, %v798_v10  ;;  %v1146_v35 = vadd.f32 %v1114_v11, %v1031_v34  ;;  %v1311_v22 = vunpack.c.l.bf16 %v5403_v30  ;;  %v1426_v54 = vunpack.c.l.bf16 %v5406_v49 }
 0x1d2   : > { %v1736_v53 = vadd.f32 %v1704_v51, %v1621_v14  ;;  %v1229_v42 = vmul.f32 %v4127_v33, %v1196_v48  ;;  %v1541_v46 = vunpack.c.l.bf16 %v5411_v1  ;;  %v1656_v36 = vunpack.c.l.bf16 %v5414_v63 }
 0x1d3   : > { %v2681_v20 = vrot.slane %v5399_v29, 4  ;;  %v1995_v62 = vmul.f32 %v1963_v13, %v868_v2  ;;  %v885_v16 = vsub.f32 0.0, %v5362_v52  ;;  %v1344_v12 = vmul.f32 %v4134_v41, %v1311_v22 }
 0x1d4   : > { %v1851_v9 = vadd.f32 %v1819_v0, %v1736_v53  ;;  %v1261_v10 = vadd.f32 %v1229_v42, %v1146_v35  ;;  %v1459_v51 = vmul.f32 %v4146_v50, %v1426_v54  ;;  %v1771_v21 = vunpack.c.l.bf16 %v5422_v18 }
 0x1d5   : > { %v2693_v55 = vrot.slane %v5417_v17, 4  ;;  %v1574_v6 = vmul.f32 %v4155_v60, %v1541_v46  ;;  %v1916_v34 = vunpack.c.l.bf16 %v5428_v28  ;;  %v598_v11 = vand.u32 2147483647, %v5430_v25 }
 0x1d6   : > { %v3731_v14 = vpop.eup %3730  ;;  %v1883_v2 = vmul.f32 %v1851_v9, %v964_v43  ;;  %v1376_v13 = vadd.f32 %v1344_v12, %v1261_v10  ;;  %v1689_v48 = vmul.f32 %v4170_v5, %v1656_v36  ;;  %v999_v0 = vunpack.c.h.bf16 %v5380_v23 }
 0x1d7   : > { %v725_v35 = vadd.f32 1.0, %v3731_v14  ;;  %v630_v22 = vsub.f32 0.0, %v598_v11  ;;  %v1082_v54 = vunpack.c.h.bf16 %v5386_v3  ;;  %v1197_v53 = vunpack.c.h.bf16 %v3460_v47 }
 0x1d8   : > { %v2027_v42 = vadd.f32 %v1995_v62, %v1883_v2  ;;  %v1491_v45 = vadd.f32 %v1459_v51, %v1376_v13  ;;  %v1804_v46 = vmul.f32 %v4179_v15, %v1771_v21  ;;  %v1032_v24 = vmul.f32 %v4117_v26, %v999_v0 }
 0x1d9   : > { %3732 = vlog2.f32 %v725_v35  ;;  %v673_v31 = vmul.f32 1.442695, %v630_v22  ;;  %v1115_v43 = vmul.f32 %v4119_v27, %v1082_v54  ;;  %v1230_v12 = vmul.f32 %v4127_v33, %v1197_v53 }
 0x1da   : > { %v2669_v36 = vrot.slane %v2027_v42, 4  ;;  %v2674_v23 = vperm.slane %v2027_v42, %v4222_v58  ;;  %v1606_v9 = vadd.f32 %v1574_v6, %v1491_v45  ;;  %v1312_v10 = vunpack.c.h.bf16 %v5403_v30 }
 0x1db   : > { %3734 = vpow2.f32 %v673_v31  ;;  %v886_v3 = vsub.f32 0.0, %v5430_v25  ;;  %v1147_v47 = vadd.f32 %v1115_v43, %v1032_v24  ;;  %v1427_v62 = vunpack.c.h.bf16 %v5406_v49 }
 0x1dc   : > { %v2670_v51 = vsel %vm2035_vm1, 0.0, %v2669_v36  ;;  %v2679_v21 = vrot.slane %v2674_v23, 4  ;;  %v2682_v11 = vsel %vm2035_vm1, %v2674_v23, %v2681_v20  ;;  %v1721_v14 = vadd.f32 %v1689_v48, %v1606_v9 }
 0x1dd   : > { %v2678_v2 = vperm.slane %v2670_v51, %v4222_v58  ;;  %v2690_v13 = vperm.slane %v2682_v11, %v4254_v38  ;;  %v1262_v0 = vadd.f32 %v1230_v12, %v1147_v47  ;;  %v1345_v45 = vmul.f32 %v4134_v41, %v1312_v10  ;;  %v5484_v11 = vpop.f32.mrf.mxu2 }
 0x1de   : > { %v2680_v31 = vsel %vm2035_vm1, %v2679_v21, %v5399_v29  ;;  %v917_v30 = vmax.f32 %v885_v16, 0.0  ;;  %v1948_v24 = vmul.f32 8.0, %v1916_v34  ;;  %v1542_v49 = vunpack.c.h.bf16 %v5411_v1 }
 0x1df   : > { %v3733_v6 = vpop.eup %3732  ;;  %v2686_v35 = vperm.slane %v2680_v31, %v4254_v38  ;;  %v2691_v22 = vrot.slane %v2678_v2, 4  ;;  %v2694_v20 = vsel %vm2035_vm1, %v2678_v2, %v2693_v55  ;;  %v2705_v48 = vrot.slane %v2690_v13, 4 }
 0x1e0   : > { %v5463_v54 = vperm.slane %v2694_v20, %v4254_v38  ;;  %v768_v53 = vmul.f32 0.6931472, %v3733_v6  ;;  %v1377_v42 = vadd.f32 %v1345_v45, %v1262_v0  ;;  %v1460_v43 = vmul.f32 %v4146_v50, %v1427_v62 }
 0x1e1   : > { %v3735_v12 = vpop.eup %3734  ;;  %v2692_v29 = vsel %vm2035_vm1, %v2691_v22, %v5417_v17  ;;  %v1836_v16 = vadd.f32 %v1804_v46, %v1721_v14  ;;  %v822_v1 = vmax.f32 %v5430_v25, 0.0  ;;  %v918_v34 = vmax.f32 %v886_v3, 0.0  ;;  %v5505_v22 = vld [vmem:[%s4036_s28 + $0x168] sm:$0xff] }
 0x1e2   : > { %6349 = vst [vmem:[#allocation44_spill] sm:$0xff] %v5463_v54  ;;  %v5470_v36 = vperm.slane %v2692_v29, %v4254_v38  ;;  %v2703_v55 = vrot.slane %v2686_v35, 4  ;;  %v5473_v23 = vsel %vm2867_vm2, %v2690_v13, 0.0  ;;  %v1575_v9 = vmul.f32 %v4155_v60, %v1542_v49 }
 0x1e3   : > { %6350 = vst [vmem:[#allocation45_spill] sm:$0xff] %v5473_v23  ;;  %v2706_v10 = vsel %vm2035_vm1, 0.0, %v2705_v48  ;;  %v6351_v47 = vmax.f32 %v5362_v52, 0.0  ;;  %v949_v51 = vadd.f32 %v917_v30, %v768_v53  ;;  %v726_v17 = vadd.f32 1.0, %v3735_v12 }
 0x1e4   : > { %v2707_v46 = vrot.slane %v5470_v36, 4  ;;  %v5482_v3 = vsel %vm2867_vm2, %v2686_v35, 0.0  ;;  %v1492_v21 = vadd.f32 %v1460_v43, %v1377_v42  ;;  %v1657_v52 = vunpack.c.h.bf16 %v5414_v63  ;;  %v5499_v35 = vld [vmem:[%s4036_s28 + $0x68] sm:$0xff] }
 0x1e5   : > { %v853_v62 = vadd.f32 %v6351_v47, %v768_v53  ;;  %6352 = vst [vmem:[#allocation46_spill] sm:$0xff] %v5482_v3  ;;  %v1868_v14 = vmul.f32 %v1836_v16, %v949_v51  ;;  %3736 = vlog2.f32 %v726_v17  ;;  %v5488_v13 = vsel %vm2867_vm2, %v2706_v10, 0.0  ;;  %v5502_v63 = vld [vmem:[%s4036_s28 + $0xe8] sm:$0xff] }
 0x1e6   : > { %6353 = vst [vmem:[#allocation47_spill] sm:$0xff] %v5488_v13  ;;  %v1607_v0 = vadd.f32 %v1575_v9, %v1492_v21  ;;  %v1772_v45 = vunpack.c.h.bf16 %v5422_v18  ;;  %v1917_v31 = vunpack.c.h.bf16 %v5428_v28  ;;  %v5494_v30 = vsel %vm2867_vm2, %v5463_v54, 0.0  ;;  %v5520_v10 = vld [vmem:[%s4036_s28 + $0x1e8] sm:$0xff] }
 0x1e7   : > { %v1980_v2 = vmul.f32 %v1948_v24, %v853_v62  ;;  %6354 = vst [vmem:[#allocation48_spill] sm:$0xff] %v5494_v30  ;;  %v1690_v6 = vmul.f32 %v4170_v5, %v1657_v52  ;;  %v613_v24 = vand.u32 2147483647, %v5484_v11  ;;  %v5508_v18 = vsel %vm2035_vm1, 0.0, %v2703_v55  ;;  %v5523_v47 = vld [vmem:[%s4036_s28 + $0x268] sm:$0xff] }
 0x1e8   : > { %v5511_v28 = vsel %vm2035_vm1, 0.0, %v2707_v46  ;;  %v1805_v20 = vmul.f32 %v4179_v15, %v1772_v45  ;;  %v1949_v48 = vmul.f32 8.0, %v1917_v31  ;;  %v901_v29 = vsub.f32 0.0, %v5484_v11  ;;  %v5533_v45 = vld [vmem:[%s4036_s28 + $0x2e8] sm:$0xff] }
 0x1e9   : > { %v2012_v49 = vadd.f32 %v1980_v2, %v1868_v14  ;;  %v1722_v42 = vadd.f32 %v1690_v6, %v1607_v0  ;;  %v645_v43 = vsub.f32 0.0, %v613_v24  ;;  %v1014_v16 = vunpack.c.l.bf16 %v5499_v35  ;;  %v5536_v31 = vld [vmem:[%s4036_s28 + $0x368] sm:$0xff] }
 0x1ea   : > { %v1097_v55 = vunpack.c.l.bf16 %v5502_v63  ;;  %v1212_v9 = vunpack.c.l.bf16 %v5505_v22  ;;  %v1442_v24 = vunpack.c.l.bf16 %v5523_v47  ;;  %v1672_v25 = vunpack.c.l.bf16 %v5536_v31 }
 0x1eb   : > { %v2295_v53 = vrot.slane %v2012_v49, 4  ;;  %v3737_v62 = vpop.eup %3736  ;;  %v2300_v17 = vperm.slane %v2012_v49, %v4222_v58  ;;  %v1837_v46 = vadd.f32 %v1805_v20, %v1722_v42  ;;  %v703_v21 = vmul.f32 1.442695, %v645_v43  ;;  %v5542_v20 = vld [vmem:[%s4036_s28 + $0x3e8] sm:$0xff] }
 0x1ec   : > { %v770_v2 = vmul.f32 0.6931472, %v3737_v62  ;;  %v1047_v52 = vmul.f32 %v4117_v26, %v1014_v16  ;;  %v1130_v0 = vmul.f32 %v4119_v27, %v1097_v55  ;;  %v1245_v6 = vmul.f32 %v4127_v33, %v1212_v9  ;;  %v5547_v62 = vld [vmem:[%s4165_s27 + $0x68] sm:$0xff]  ;;  %v5549_v55 = vpop.f32.mrf.mxu3 }
 0x1ed   : > { %v2296_v51 = vsel %vm2035_vm1, 0.0, %v2295_v53  ;;  %3738 = vpow2.f32 %v703_v21  ;;  %v1327_v49 = vunpack.c.l.bf16 %v5520_v10  ;;  %v5544_v43 = vmax.f32 %v901_v29, 0.0 }
 0x1ee   : > { %v5528_v14 = vperm.slane %v2296_v51, %v4222_v58  ;;  %v854_v53 = vadd.f32 %v822_v1, %v770_v2  ;;  %v950_v42 = vadd.f32 %v918_v34, %v770_v2  ;;  %v1162_v16 = vadd.f32 %v1130_v0, %v1047_v52 }
 0x1ef   : > { %v1360_v51 = vmul.f32 %v4134_v41, %v1327_v49  ;;  %v1475_v21 = vmul.f32 %v4146_v50, %v1442_v24  ;;  %v1557_v9 = vunpack.c.l.bf16 %v5533_v45  ;;  %v1787_v1 = vunpack.c.l.bf16 %v5542_v20 }
 0x1f0   : > { %v1869_v12 = vmul.f32 %v1837_v46, %v950_v42  ;;  %v1981_v30 = vmul.f32 %v1949_v48, %v854_v53  ;;  %v1277_v54 = vadd.f32 %v1245_v6, %v1162_v16  ;;  %v2317_v34 = vrot.slane %v2300_v17, 4 }
 0x1f1   : > { %v2329_v29 = vrot.slane %v5528_v14, 4  ;;  %v1932_v2 = vunpack.c.l.bf16 %v5547_v62  ;;  %v614_v52 = vand.u32 2147483647, %v5549_v55  ;;  %v1590_v24 = vmul.f32 %v4155_v60, %v1557_v9 }
 0x1f2   : > { %v2013_v0 = vadd.f32 %v1981_v30, %v1869_v12  ;;  %v1392_v49 = vadd.f32 %v1360_v51, %v1277_v54  ;;  %v1705_v13 = vmul.f32 %v4170_v5, %v1672_v25  ;;  %v1820_v46 = vmul.f32 %v4179_v15, %v1787_v1 }
 0x1f3   : > { %v3739_v23 = vpop.eup %3738  ;;  %v1964_v48 = vmul.f32 8.0, %v1932_v2  ;;  %v646_v6 = vsub.f32 0.0, %v614_v52  ;;  %v1015_v53 = vunpack.c.h.bf16 %v5499_v35  ;;  %v902_v30 = vsub.f32 0.0, %v5549_v55 }
 0x1f4   : > { %v2305_v42 = vrot.slane %v2013_v0, 4  ;;  %v2310_v16 = vperm.slane %v2013_v0, %v4222_v58  ;;  %v741_v19 = vadd.f32 1.0, %v3739_v23  ;;  %v1507_v3 = vadd.f32 %v1475_v21, %v1392_v49 }
 0x1f5   : > { %v705_v44 = vmul.f32 1.442695, %v646_v6  ;;  %v1048_v54 = vmul.f32 %v4117_v26, %v1015_v53  ;;  %v1098_v12 = vunpack.c.h.bf16 %v5502_v63  ;;  %v1213_v52 = vunpack.c.h.bf16 %v5505_v22 }
 0x1f6   : > { %v2306_v25 = vsel %vm2035_vm1, 0.0, %v2305_v42  ;;  %v2315_v51 = vrot.slane %v2310_v16, 4  ;;  %v2318_v9 = vsel %vm2035_vm1, %v2310_v16, %v2317_v34  ;;  %3740 = vlog2.f32 %v741_v19 }
 0x1f7   : > { %v2314_v35 = vperm.slane %v2306_v25, %v4222_v58  ;;  %v2326_v1 = vperm.slane %v2318_v9, %v4254_v38  ;;  %v1622_v2 = vadd.f32 %v1590_v24, %v1507_v3  ;;  %3742 = vpow2.f32 %v705_v44 }
 0x1f8   : > { %v2316_v23 = vsel %vm2035_vm1, %v2315_v51, %v2300_v17  ;;  %v1131_v21 = vmul.f32 %v4119_v27, %v1098_v12  ;;  %v1328_v63 = vunpack.c.h.bf16 %v5520_v10 }
 0x1f9   : > { %v2322_v0 = vperm.slane %v2316_v23, %v4254_v38  ;;  %v2327_v49 = vrot.slane %v2314_v35, 4  ;;  %v2330_v34 = vsel %vm2035_vm1, %v2314_v35, %v2329_v29  ;;  %v2341_v19 = vrot.slane %v2326_v1, 4 }
 0x1fa   : > { %v2338_v6 = vperm.slane %v2330_v34, %v4254_v38  ;;  %v2939_v53 = vsel %vm2867_vm2, %v2326_v1, 0.0  ;;  %v1737_v3 = vadd.f32 %v1705_v13, %v1622_v2  ;;  %v1163_v44 = vadd.f32 %v1131_v21, %v1048_v54 }
 0x1fb   : > { %v2328_v17 = vsel %vm2035_vm1, %v2327_v49, %v5528_v14  ;;  %v2339_v24 = vrot.slane %v2322_v0, 4  ;;  %v2342_v22 = vsel %vm2035_vm1, 0.0, %v2341_v19  ;;  %v2877_v10 = vsel %vm2867_vm2, %v2322_v0, 0.0 }
 0x1fc   : > { %v3741_v42 = vpop.eup %3740  ;;  %v2334_v16 = vperm.slane %v2328_v17, %v4254_v38  ;;  %v2345_v12 = vrot.slane %v2338_v6, 4  ;;  %v5585_v29 = vadd.f32 %v2877_v10, %v5319_v59  ;;  %v5588_v25 = vadd.f32 %v2939_v53, %v5322_v4  ;;  %v5622_v10 = vpop.f32.mrf.mxu0 }
 0x1fd   : > { %v3743_v13 = vpop.eup %3742  ;;  %v2340_v54 = vsel %vm2035_vm1, 0.0, %v2339_v24  ;;  %v2970_v14 = vsel %vm2867_vm2, %v2342_v22, 0.0  ;;  %v3063_v51 = vsel %vm2867_vm2, %v2338_v6, 0.0  ;;  %v800_v9 = vmul.f32 0.6931472, %v3741_v42 }
 0x1fe   : > { %v2343_v35 = vrot.slane %v2334_v16, 4  ;;  %v2346_v1 = vsel %vm2035_vm1, 0.0, %v2345_v12  ;;  %v2908_v2 = vsel %vm2867_vm2, %v2340_v54, 0.0  ;;  %v5596_v23 = vadd.f32 %v2970_v14, %v5330_v39  ;;  %v5639_v12 = vld [vmem:[%s4036_s28 + $0x30] sm:$0xff] }
 0x1ff   : > { %v5599_v59 = vadd.f32 %v2908_v2, %v5333_v37  ;;  %v3001_v4 = vsel %vm2867_vm2, %v2334_v16, 0.0  ;;  %v5603_v21 = vadd.f32 %v3063_v51, %v5337_v57  ;;  %v3094_v0 = vsel %vm2867_vm2, %v2346_v1, 0.0 }
 0x200   : > { %v2344_v49 = vsel %vm2035_vm1, 0.0, %v2343_v35  ;;  %v5608_v34 = vadd.f32 %v3001_v4, %v5342_v32  ;;  %v5611_v19 = vadd.f32 %v3094_v0, %v5345_v8  ;;  %v6355_v39 = vmax.f32 %v5484_v11, 0.0 }
 0x201   : > { %v3032_v37 = vsel %vm2867_vm2, %v2344_v49, 0.0  ;;  %v965_v53 = vadd.f32 %v5544_v43, %v800_v9  ;;  %v1852_v17 = vadd.f32 %v1820_v46, %v1737_v3  ;;  %v742_v57 = vadd.f32 1.0, %v3743_v13  ;;  %v5651_v13 = vld [vmem:[%s4036_s28 + $0x130] sm:$0xff] }
 0x202   : > { %v869_v6 = vadd.f32 %v6355_v39, %v800_v9  ;;  %v5618_v24 = vadd.f32 %v3032_v37, %v5351_v7  ;;  %v1246_v32 = vmul.f32 %v4127_v33, %v1213_v52  ;;  %v1361_v8 = vmul.f32 %v4134_v41, %v1328_v63  ;;  %v5666_v37 = vld [vmem:[%s4036_s28 + $0x1b0] sm:$0xff] }
 0x203   : > { %v1884_v11 = vmul.f32 %v1852_v17, %v965_v53  ;;  %3744 = vlog2.f32 %v742_v57  ;;  %v1443_v42 = vunpack.c.h.bf16 %v5523_v47  ;;  %v1558_v43 = vunpack.c.h.bf16 %v5533_v45  ;;  %v5642_v45 = vld [vmem:[%s4036_s28 + $0xb0] sm:$0xff] }
 0x204   : > { %v1996_v22 = vmul.f32 %v1964_v48, %v869_v6  ;;  %v5628_v7 = vsel %vm2867_vm2, %v5508_v18, 0.0  ;;  %v5632_v46 = vsel %vm2867_vm2, %v5470_v36, 0.0  ;;  %v1278_v48 = vadd.f32 %v1246_v32, %v1163_v44  ;;  %v5669_v53 = vld [vmem:[%s4036_s28 + $0x230] sm:$0xff] }
 0x205   : > { %6356 = vst [vmem:[#allocation49_spill] sm:$0xff] %v5628_v7  ;;  %v1673_v52 = vunpack.c.h.bf16 %v5536_v31  ;;  %v1476_v3 = vmul.f32 %v4146_v50, %v1443_v42  ;;  %v1788_v16 = vunpack.c.h.bf16 %v5542_v20  ;;  %v599_v47 = vand.u32 2147483647, %v5622_v10  ;;  %v5672_v17 = vld [vmem:[%s4036_s28 + $0x2b0] sm:$0xff] }
 0x206   : > { %6357 = vst [vmem:[#allocation50_spill] sm:$0xff] %v5632_v46  ;;  %v2028_v63 = vadd.f32 %v1996_v22, %v1884_v11  ;;  %v5646_v18 = vsel %vm2867_vm2, %v5511_v28, 0.0  ;;  %v1393_v36 = vadd.f32 %v1361_v8, %v1278_v48  ;;  %v1591_v44 = vmul.f32 %v4155_v60, %v1558_v43  ;;  %v5678_v8 = vld [vmem:[%s4036_s28 + $0x330] sm:$0xff] }
 0x207   : > { %6358 = vst [vmem:[#allocation51_spill] sm:$0xff] %v5646_v18  ;;  %v1933_v31 = vunpack.c.h.bf16 %v5547_v62  ;;  %v838_v20 = vmax.f32 %v5549_v55, 0.0  ;;  %v934_v14 = vmax.f32 %v902_v30, 0.0  ;;  %v631_v51 = vsub.f32 0.0, %v599_v47  ;;  %v5681_v11 = vld [vmem:[%s4036_s28 + $0x3b0] sm:$0xff] }
 0x208   : > { %v2711_v54 = vrot.slane %v2028_v63, 4  ;;  %v1508_v9 = vadd.f32 %v1476_v3, %v1393_v36  ;;  %v1706_v28 = vmul.f32 %v4170_v5, %v1673_v52  ;;  %v1000_v35 = vunpack.c.l.bf16 %v5639_v12 }
 0x209   : > { %v1083_v1 = vunpack.c.l.bf16 %v5642_v45  ;;  %v3745_v62 = vpop.eup %3744  ;;  %v1821_v4 = vmul.f32 %v4179_v15, %v1788_v16  ;;  %v675_v55 = vmul.f32 1.442695, %v631_v51  ;;  %v1198_v30 = vunpack.c.l.bf16 %v5651_v13  ;;  %v5691_v51 = vpop.f32.mrf.mxu1 }
 0x20a   : > { %v2712_v2 = vsel %vm2035_vm1, 0.0, %v2711_v54  ;;  %v5663_v0 = vperm.slane %v2028_v63, %v4222_v58  ;;  %v802_v49 = vmul.f32 0.6931472, %v3745_v62  ;;  %v1623_v39 = vadd.f32 %v1591_v44, %v1508_v9 }
 0x20b   : > { %v1965_v6 = vmul.f32 8.0, %v1933_v31  ;;  %3746 = vpow2.f32 %v675_v55  ;;  %v1033_v57 = vmul.f32 %v4117_v26, %v1000_v35  ;;  %v1116_v22 = vmul.f32 %v4119_v27, %v1083_v1  ;;  %v5697_v35 = vld [vmem:[%s4165_s27 + $0x30] sm:$0xff] }
 0x20c   : > { %v1231_v32 = vmul.f32 %v4127_v33, %v1198_v30  ;;  %v5684_v42 = vperm.slane %v2712_v2, %v4222_v58  ;;  %v870_v43 = vadd.f32 %v838_v20, %v802_v49  ;;  %v966_v48 = vadd.f32 %v934_v14, %v802_v49 }
 0x20d   : > { %v1738_v52 = vadd.f32 %v1706_v28, %v1623_v39  ;;  %v1148_v63 = vadd.f32 %v1116_v22, %v1033_v57  ;;  %v1313_v3 = vunpack.c.l.bf16 %v5666_v37  ;;  %v1428_v16 = vunpack.c.l.bf16 %v5669_v53 }
 0x20e   : > { %v1543_v47 = vunpack.c.l.bf16 %v5672_v17  ;;  %v1997_v44 = vmul.f32 %v1965_v6, %v870_v43  ;;  %v1658_v31 = vunpack.c.l.bf16 %v5678_v8  ;;  %v1773_v54 = vunpack.c.l.bf16 %v5681_v11 }
 0x20f   : > { %v1853_v36 = vadd.f32 %v1821_v4, %v1738_v52  ;;  %v887_v20 = vsub.f32 0.0, %v5622_v10  ;;  %v1263_v9 = vadd.f32 %v1231_v32, %v1148_v63  ;;  %v1346_v14 = vmul.f32 %v4134_v41, %v1313_v3 }
 0x210   : > { %v1461_v28 = vmul.f32 %v4146_v50, %v1428_v16  ;;  %v2733_v1 = vrot.slane %v5663_v0, 4  ;;  %v2745_v62 = vrot.slane %v5684_v42, 4  ;;  %v1576_v4 = vmul.f32 %v4155_v60, %v1543_v47 }
 0x211   : > { %v1885_v2 = vmul.f32 %v1853_v36, %v966_v48  ;;  %v3747_v55 = vpop.eup %3746  ;;  %v1378_v30 = vadd.f32 %v1346_v14, %v1263_v9  ;;  %v1691_v49 = vmul.f32 %v4170_v5, %v1658_v31  ;;  %v1806_v39 = vmul.f32 %v4179_v15, %v1773_v54 }
 0x212   : > { %v600_v6 = vand.u32 2147483647, %v5691_v51  ;;  %v727_v22 = vadd.f32 1.0, %v3747_v55  ;;  %v1918_v32 = vunpack.c.l.bf16 %v5697_v35  ;;  %v1001_v43 = vunpack.c.h.bf16 %v5639_v12 }
 0x213   : > { %v2029_v57 = vadd.f32 %v1997_v44, %v1885_v2  ;;  %v1493_v52 = vadd.f32 %v1461_v28, %v1378_v30  ;;  %v888_v48 = vsub.f32 0.0, %v5691_v51  ;;  %v1084_v3 = vunpack.c.h.bf16 %v5642_v45 }
 0x214   : > { %v632_v63 = vsub.f32 0.0, %v600_v6  ;;  %3748 = vlog2.f32 %v727_v22  ;;  %v1034_v36 = vmul.f32 %v4117_v26, %v1001_v43  ;;  %v1199_v9 = vunpack.c.h.bf16 %v5651_v13 }
 0x215   : > { %v2721_v16 = vrot.slane %v2029_v57, 4  ;;  %v2726_v47 = vperm.slane %v2029_v57, %v4222_v58  ;;  %v1608_v31 = vadd.f32 %v1576_v4, %v1493_v52  ;;  %v1117_v44 = vmul.f32 %v4119_v27, %v1084_v3 }
 0x216   : > { %v677_v54 = vmul.f32 1.442695, %v632_v63  ;;  %v1314_v2 = vunpack.c.h.bf16 %v5666_v37  ;;  %v1232_v57 = vmul.f32 %v4127_v33, %v1199_v9  ;;  %v919_v3 = vmax.f32 %v887_v20, 0.0 }
 0x217   : > { %v2722_v12 = vsel %vm2035_vm1, 0.0, %v2721_v16  ;;  %v2731_v14 = vrot.slane %v2726_v47, 4  ;;  %v2734_v28 = vsel %vm2035_vm1, %v2726_v47, %v2733_v1  ;;  %v1723_v30 = vadd.f32 %v1691_v49, %v1608_v31 }
 0x218   : > { %v2730_v45 = vperm.slane %v2722_v12, %v4222_v58  ;;  %v2742_v55 = vperm.slane %v2734_v28, %v4254_v38  ;;  %3750 = vpow2.f32 %v677_v54  ;;  %v1149_v6 = vadd.f32 %v1117_v44, %v1034_v36 }
 0x219   : > { %v2732_v4 = vsel %vm2035_vm1, %v2731_v14, %v5663_v0  ;;  %v1347_v13 = vmul.f32 %v4134_v41, %v1314_v2  ;;  %v823_v49 = vmax.f32 %v5622_v10, 0.0  ;;  %v1950_v36 = vmul.f32 8.0, %v1918_v32 }
 0x21a   : > { %v2738_v22 = vperm.slane %v2732_v4, %v4254_v38  ;;  %v2743_v43 = vrot.slane %v2730_v45, 4  ;;  %v2746_v1 = vsel %vm2035_vm1, %v2730_v45, %v2745_v62  ;;  %v2757_v37 = vrot.slane %v2742_v55, 4  ;;  %v3749_v52 = vpop.eup %3748  ;;  %v5748_v4 = vpop.f32.mrf.mxu2 }
 0x21b   : > { %v5725_v63 = vperm.slane %v2746_v1, %v4254_v38  ;;  %v1264_v16 = vadd.f32 %v1232_v57, %v1149_v6  ;;  %v824_v31 = vmax.f32 %v5691_v51, 0.0  ;;  %v5733_v62 = vsel %vm2867_vm2, %v2742_v55, 0.0 }
 0x21c   : > { %v2744_v0 = vsel %vm2035_vm1, %v2743_v43, %v5684_v42  ;;  %v2758_v47 = vsel %vm2035_vm1, 0.0, %v2757_v37  ;;  %v2755_v54 = vrot.slane %v2738_v22, 4  ;;  %6360 = vst [vmem:[#allocation53_spill] sm:$0xff] %v5733_v62  ;;  %v1838_v44 = vadd.f32 %v1806_v39, %v1723_v30  ;;  %v5755_v37 = vld [vmem:[%s4036_s28 + $0x70] sm:$0xff] }
 0x21d   : > { %6359 = vst [vmem:[#allocation52_spill] sm:$0xff] %v5725_v63  ;;  %v920_v9 = vmax.f32 %v888_v48, 0.0  ;;  %v5736_v14 = vsel %vm2867_vm2, %v2738_v22, 0.0  ;;  %v772_v10 = vmul.f32 0.6931472, %v3749_v52  ;;  %v1379_v20 = vadd.f32 %v1347_v13, %v1264_v16  ;;  %v5758_v52 = vld [vmem:[%s4036_s28 + $0xf0] sm:$0xff] }
 0x21e   : > { %v3751_v12 = vpop.eup %3750  ;;  %v1429_v28 = vunpack.c.h.bf16 %v5669_v53  ;;  %v5740_v42 = vperm.slane %v2744_v0, %v4254_v38  ;;  %v5744_v2 = vsel %vm2867_vm2, %v2758_v47, 0.0  ;;  %v1544_v30 = vunpack.c.h.bf16 %v5672_v17 }
 0x21f   : > { %6361 = vst [vmem:[#allocation54_spill] sm:$0xff] %v5744_v2  ;;  %v728_v39 = vadd.f32 1.0, %v3751_v12  ;;  %v855_v48 = vadd.f32 %v823_v49, %v772_v10  ;;  %v951_v45 = vadd.f32 %v919_v3, %v772_v10  ;;  %v2756_v53 = vsel %vm2035_vm1, 0.0, %v2755_v54 }
 0x220   : > { %v1462_v55 = vmul.f32 %v4146_v50, %v1429_v28  ;;  %v1659_v6 = vunpack.c.h.bf16 %v5678_v8  ;;  %v1774_v57 = vunpack.c.h.bf16 %v5681_v11  ;;  %v1577_v1 = vmul.f32 %v4155_v60, %v1544_v30 }
 0x221   : > { %3752 = vlog2.f32 %v728_v39  ;;  %v1870_v13 = vmul.f32 %v1838_v44, %v951_v45  ;;  %v1982_v22 = vmul.f32 %v1950_v36, %v855_v48  ;;  %v5762_v17 = vsel %vm2867_vm2, %v5725_v63, 0.0  ;;  %v5770_v36 = vld [vmem:[%s4036_s28 + $0x170] sm:$0xff] }
 0x222   : > { %v1494_v43 = vadd.f32 %v1462_v55, %v1379_v20  ;;  %6362 = vst [vmem:[#allocation55_spill] sm:$0xff] %v5762_v17  ;;  %v1692_v49 = vmul.f32 %v4170_v5, %v1659_v6  ;;  %v1919_v8 = vunpack.c.h.bf16 %v5697_v35  ;;  %v615_v3 = vand.u32 2147483647, %v5748_v4  ;;  %v5782_v6 = vld [vmem:[%s4036_s28 + $0x1f0] sm:$0xff] }
 0x223   : > { %v2014_v16 = vadd.f32 %v1982_v22, %v1870_v13  ;;  %v1807_v47 = vmul.f32 %v4179_v15, %v1774_v57  ;;  %v5773_v54 = vsel %vm2867_vm2, %v2756_v53, 0.0  ;;  %v1016_v12 = vunpack.c.l.bf16 %v5755_v37  ;;  %v5785_v57 = vld [vmem:[%s4036_s28 + $0x270] sm:$0xff] }
 0x224   : > { %v1609_v0 = vadd.f32 %v1577_v1, %v1494_v43  ;;  %6363 = vst [vmem:[#allocation56_spill] sm:$0xff] %v5773_v54  ;;  %v647_v44 = vsub.f32 0.0, %v615_v3  ;;  %v1099_v35 = vunpack.c.l.bf16 %v5758_v52  ;;  %v1951_v28 = vmul.f32 8.0, %v1919_v8  ;;  %v5793_v8 = vld [vmem:[%s4036_s28 + $0x370] sm:$0xff] }
 0x225   : > { %v2347_v10 = vrot.slane %v2014_v16, 4  ;;  %v903_v39 = vsub.f32 0.0, %v5748_v4  ;;  %v1049_v55 = vmul.f32 %v4117_v26, %v1016_v12  ;;  %v1214_v53 = vunpack.c.l.bf16 %v5770_v36 }
 0x226   : > { %v1724_v20 = vadd.f32 %v1692_v49, %v1609_v0  ;;  %v707_v45 = vmul.f32 1.442695, %v647_v44  ;;  %v1132_v30 = vmul.f32 %v4119_v27, %v1099_v35  ;;  %v2352_v22 = vperm.slane %v2014_v16, %v4222_v58  ;;  %v5790_v49 = vld [vmem:[%s4036_s28 + $0x2f0] sm:$0xff] }
 0x227   : > { %v3753_v48 = vpop.eup %3752  ;;  %v2348_v13 = vsel %vm2035_vm1, 0.0, %v2347_v10  ;;  %v1247_v44 = vmul.f32 %v4127_v33, %v1214_v53  ;;  %v1329_v10 = vunpack.c.l.bf16 %v5782_v6  ;;  %v1444_v16 = vunpack.c.l.bf16 %v5785_v57 }
 0x228   : > { %v774_v43 = vmul.f32 0.6931472, %v3753_v48  ;;  %v1839_v1 = vadd.f32 %v1807_v47, %v1724_v20  ;;  %v2356_v3 = vperm.slane %v2348_v13, %v4222_v58  ;;  %3754 = vpow2.f32 %v707_v45  ;;  %v5802_v48 = vld [vmem:[%s4036_s28 + $0x3f0] sm:$0xff] }
 0x229   : > { %v1164_v0 = vadd.f32 %v1132_v30, %v1049_v55  ;;  %v5805_v47 = vld [vmem:[%s4165_s27 + $0x70] sm:$0xff]  ;;  %v1559_v45 = vunpack.c.l.bf16 %v5790_v49  ;;  %v1674_v55 = vunpack.c.l.bf16 %v5793_v8  ;;  %v5810_v30 = vpop.f32.mrf.mxu3  ;;  %v1477_v53 = vmul.f32 %v4146_v50, %v1444_v16 }
 0x22a   : > { %v856_v12 = vadd.f32 %v824_v31, %v774_v43  ;;  %v952_v35 = vadd.f32 %v920_v9, %v774_v43  ;;  %v1362_v9 = vmul.f32 %v4134_v41, %v1329_v10  ;;  %v2369_v13 = vrot.slane %v2352_v22, 4 }
 0x22b   : > { %v1279_v32 = vadd.f32 %v1247_v44, %v1164_v0  ;;  %v5814_v43 = vmax.f32 %v903_v39, 0.0  ;;  %v1789_v11 = vunpack.c.l.bf16 %v5802_v48  ;;  %v1934_v20 = vunpack.c.l.bf16 %v5805_v47 }
 0x22c   : > { %v1871_v51 = vmul.f32 %v1839_v1, %v952_v35  ;;  %v1983_v31 = vmul.f32 %v1951_v28, %v856_v12  ;;  %v2381_v0 = vrot.slane %v2356_v3, 4  ;;  %v616_v18 = vand.u32 2147483647, %v5810_v30 }
 0x22d   : > { %v1394_v17 = vadd.f32 %v1362_v9, %v1279_v32  ;;  %v1592_v1 = vmul.f32 %v4155_v60, %v1559_v45  ;;  %v1707_v28 = vmul.f32 %v4170_v5, %v1674_v55  ;;  %v1822_v12 = vmul.f32 %v4179_v15, %v1789_v11 }
 0x22e   : > { %v2015_v44 = vadd.f32 %v1983_v31, %v1871_v51  ;;  %v3755_v63 = vpop.eup %3754  ;;  %v1017_v35 = vunpack.c.h.bf16 %v5755_v37  ;;  %v1966_v2 = vmul.f32 8.0, %v1934_v20  ;;  %v648_v62 = vsub.f32 0.0, %v616_v18 }
 0x22f   : > { %v743_v16 = vadd.f32 1.0, %v3755_v63  ;;  %v1509_v46 = vadd.f32 %v1477_v53, %v1394_v17  ;;  %v1100_v51 = vunpack.c.h.bf16 %v5758_v52  ;;  %v1215_v17 = vunpack.c.h.bf16 %v5770_v36 }
 0x230   : > { %v2357_v39 = vrot.slane %v2015_v44, 4  ;;  %v2362_v10 = vperm.slane %v2015_v44, %v4222_v58  ;;  %v1050_v32 = vmul.f32 %v4117_v26, %v1017_v35  ;;  %v709_v44 = vmul.f32 1.442695, %v648_v62 }
 0x231   : > { %3756 = vlog2.f32 %v743_v16  ;;  %v1624_v9 = vadd.f32 %v1592_v1, %v1509_v46  ;;  %v1133_v18 = vmul.f32 %v4119_v27, %v1100_v51  ;;  %v1330_v52 = vunpack.c.h.bf16 %v5782_v6 }
 0x232   : > { %v2358_v31 = vsel %vm2035_vm1, 0.0, %v2357_v39  ;;  %v2367_v45 = vrot.slane %v2362_v10, 4  ;;  %v2370_v55 = vsel %vm2035_vm1, %v2362_v10, %v2369_v13  ;;  %3758 = vpow2.f32 %v709_v44 }
 0x233   : > { %v2366_v11 = vperm.slane %v2358_v31, %v4222_v58  ;;  %v2378_v37 = vperm.slane %v2370_v55, %v4254_v38  ;;  %v1739_v46 = vadd.f32 %v1707_v28, %v1624_v9 }
 0x234   : > { %v2368_v63 = vsel %vm2035_vm1, %v2367_v45, %v2352_v22 }
 0x235   : > { %v2374_v20 = vperm.slane %v2368_v63, %v4254_v38  ;;  %v2379_v53 = vrot.slane %v2366_v11, 4  ;;  %v2382_v13 = vsel %vm2035_vm1, %v2366_v11, %v2381_v0  ;;  %v2393_v35 = vrot.slane %v2378_v37, 4 }
 0x236   : > { %v2390_v39 = vperm.slane %v2382_v13, %v4254_v38  ;;  %v2941_v10 = vsel %vm2867_vm2, %v2378_v37, 0.0 }
 0x237   : > { %v2380_v62 = vsel %vm2035_vm1, %v2379_v53, %v2356_v3  ;;  %v2391_v22 = vrot.slane %v2374_v20, 4  ;;  %v2394_v1 = vsel %vm2035_vm1, 0.0, %v2393_v35  ;;  %v2879_v36 = vsel %vm2867_vm2, %v2374_v20, 0.0  ;;  %v3757_v6 = vpop.eup %3756 }
 0x238   : > { %v2386_v16 = vperm.slane %v2380_v62, %v4254_v38  ;;  %v2397_v51 = vrot.slane %v2390_v39, 4  ;;  %v5843_v0 = vadd.f32 %v2879_v36, %v5585_v29  ;;  %v5846_v31 = vadd.f32 %v2941_v10, %v5588_v25  ;;  %v3759_v53 = vpop.eup %3758 }
 0x239   : > { %v2392_v28 = vsel %vm2035_vm1, 0.0, %v2391_v22  ;;  %v2972_v45 = vsel %vm2867_vm2, %v2394_v1, 0.0  ;;  %v3065_v3 = vsel %vm2867_vm2, %v2390_v39, 0.0  ;;  %v804_v55 = vmul.f32 0.6931472, %v3757_v6 }
 0x23a   : > { %v2395_v11 = vrot.slane %v2386_v16, 4  ;;  %v2398_v37 = vsel %vm2035_vm1, 0.0, %v2397_v51  ;;  %v2910_v9 = vsel %vm2867_vm2, %v2392_v28, 0.0  ;;  %v5854_v44 = vadd.f32 %v2972_v45, %v5596_v23  ;;  %v5890_v28 = vld [vmem:[%s4036_s28 + $0x38] sm:$0xff] }
 0x23b   : > { %v5857_v29 = vadd.f32 %v2910_v9, %v5599_v59  ;;  %v3003_v25 = vsel %vm2867_vm2, %v2386_v16, 0.0  ;;  %v5861_v63 = vadd.f32 %v3065_v3, %v5603_v21  ;;  %v3096_v20 = vsel %vm2867_vm2, %v2398_v37, 0.0  ;;  %v5879_v16 = vpop.f32.mrf.mxu0 }
 0x23c   : > { %v2396_v13 = vsel %vm2035_vm1, 0.0, %v2395_v11  ;;  %v5866_v35 = vadd.f32 %v3003_v25, %v5608_v34  ;;  %v5869_v39 = vadd.f32 %v3096_v20, %v5611_v19  ;;  %v6364_v23 = vmax.f32 %v5748_v4, 0.0 }
 0x23d   : > { %v3034_v10 = vsel %vm2867_vm2, %v2396_v13, 0.0  ;;  %v967_v62 = vadd.f32 %v5814_v43, %v804_v55  ;;  %v1854_v21 = vadd.f32 %v1822_v12, %v1739_v46  ;;  %v744_v22 = vadd.f32 1.0, %v3759_v53 }
 0x23e   : > { %v871_v59 = vadd.f32 %v6364_v23, %v804_v55  ;;  %v5876_v1 = vadd.f32 %v3034_v10, %v5618_v24  ;;  %v1165_v6 = vadd.f32 %v1133_v18, %v1050_v32  ;;  %v1248_v34 = vmul.f32 %v4127_v33, %v1215_v17 }
 0x23f   : > { %v1886_v19 = vmul.f32 %v1854_v21, %v967_v62  ;;  %3760 = vlog2.f32 %v744_v22  ;;  %v1363_v4 = vmul.f32 %v4134_v41, %v1330_v52  ;;  %v1445_v51 = vunpack.c.h.bf16 %v5785_v57 }
 0x240   : > { %v1998_v36 = vmul.f32 %v1966_v2, %v871_v59  ;;  %v904_v43 = vsub.f32 0.0, %v5810_v30  ;;  %v1280_v12 = vadd.f32 %v1248_v34, %v1165_v6  ;;  %v1560_v24 = vunpack.c.h.bf16 %v5790_v49  ;;  %v5922_v6 = vld [vmem:[%s4036_s28 + $0x238] sm:$0xff] }
 0x241   : > { %v1675_v2 = vunpack.c.h.bf16 %v5793_v8  ;;  %v1478_v32 = vmul.f32 %v4146_v50, %v1445_v51  ;;  %v1790_v18 = vunpack.c.h.bf16 %v5802_v48  ;;  %v601_v17 = vand.u32 2147483647, %v5879_v16  ;;  %v5899_v8 = vld [vmem:[%s4036_s28 + $0xb8] sm:$0xff] }
 0x242   : > { %v2030_v46 = vadd.f32 %v1998_v36, %v1886_v19  ;;  %v5894_v57 = vsel %vm2867_vm2, %v5740_v42, 0.0  ;;  %v1395_v52 = vadd.f32 %v1363_v4, %v1280_v12  ;;  %v1593_v45 = vmul.f32 %v4155_v60, %v1560_v24  ;;  %v5919_v36 = vld [vmem:[%s4036_s28 + $0x1b8] sm:$0xff] }
 0x243   : > { %6365 = vst [vmem:[#allocation57_spill] sm:$0xff] %v5894_v57  ;;  %v1935_v49 = vunpack.c.h.bf16 %v5805_v47  ;;  %v6366_v3 = vrot.slane %v5740_v42, 4  ;;  %v840_v11 = vmax.f32 %v5810_v30, 0.0  ;;  %v633_v37 = vsub.f32 0.0, %v601_v17  ;;  %v5910_v47 = vld [vmem:[%s4036_s28 + $0x138] sm:$0xff] }
 0x244   : > { %v2763_v55 = vrot.slane %v2030_v46, 4  ;;  %v936_v9 = vmax.f32 %v904_v43, 0.0  ;;  %v1510_v25 = vadd.f32 %v1478_v32, %v1395_v52  ;;  %v1708_v20 = vmul.f32 %v4170_v5, %v1675_v2  ;;  %v5928_v51 = vld [vmem:[%s4036_s28 + $0x2b8] sm:$0xff] }
 0x245   : > { %v5904_v48 = vsel %vm2035_vm1, 0.0, %v6366_v3  ;;  %v1002_v53 = vunpack.c.l.bf16 %v5890_v28  ;;  %v3761_v13 = vpop.eup %3760  ;;  %v1823_v23 = vmul.f32 %v4179_v15, %v1790_v18  ;;  %v679_v59 = vmul.f32 1.442695, %v633_v37  ;;  %v5931_v43 = vld [vmem:[%s4036_s28 + $0x338] sm:$0xff] }
 0x246   : > { %6367 = vst [vmem:[#allocation58_spill] sm:$0xff] %v5904_v48  ;;  %v2764_v42 = vsel %vm2035_vm1, 0.0, %v2763_v55  ;;  %v1085_v30 = vunpack.c.l.bf16 %v5899_v8  ;;  %v5916_v10 = vperm.slane %v2030_v46, %v4222_v58  ;;  %v806_v62 = vmul.f32 0.6931472, %v3761_v13  ;;  %v5937_v32 = vld [vmem:[%s4036_s28 + $0x3b8] sm:$0xff] }
 0x247   : > { %v1625_v21 = vadd.f32 %v1593_v45, %v1510_v25  ;;  %v1967_v22 = vmul.f32 8.0, %v1935_v49  ;;  %3762 = vpow2.f32 %v679_v59  ;;  %v1035_v34 = vmul.f32 %v4117_v26, %v1002_v53  ;;  %v5944_v25 = vpop.f32.mrf.mxu1  ;;  %v5950_v13 = vld [vmem:[%s4165_s27 + $0x38] sm:$0xff] }
 0x248   : > { %v1118_v19 = vmul.f32 %v4119_v27, %v1085_v30  ;;  %v1200_v4 = vunpack.c.l.bf16 %v5910_v47  ;;  %v5934_v12 = vperm.slane %v2764_v42, %v4222_v58  ;;  %v872_v24 = vadd.f32 %v840_v11, %v806_v62 }
 0x249   : > { %v968_v2 = vadd.f32 %v936_v9, %v806_v62  ;;  %v1740_v46 = vadd.f32 %v1708_v20, %v1625_v21  ;;  %v1315_v52 = vunpack.c.l.bf16 %v5919_v36  ;;  %v1430_v45 = vunpack.c.l.bf16 %v5922_v6 }
 0x24a   : > { %v1150_v18 = vadd.f32 %v1118_v19, %v1035_v34  ;;  %v1233_v17 = vmul.f32 %v4127_v33, %v1200_v4  ;;  %v1999_v3 = vmul.f32 %v1967_v22, %v872_v24  ;;  %v1545_v55 = vunpack.c.l.bf16 %v5928_v51 }
 0x24b   : > { %v1855_v49 = vadd.f32 %v1823_v23, %v1740_v46  ;;  %v1660_v37 = vunpack.c.l.bf16 %v5931_v43  ;;  %v1348_v9 = vmul.f32 %v4134_v41, %v1315_v52  ;;  %v1463_v20 = vmul.f32 %v4146_v50, %v1430_v45 }
 0x24c   : > { %v1265_v11 = vadd.f32 %v1233_v17, %v1150_v18  ;;  %v1775_v53 = vunpack.c.l.bf16 %v5937_v32  ;;  %v2785_v42 = vrot.slane %v5916_v10, 4  ;;  %v2797_v23 = vrot.slane %v5934_v12, 4 }
 0x24d   : > { %v1887_v59 = vmul.f32 %v1855_v49, %v968_v2  ;;  %v889_v30 = vsub.f32 0.0, %v5879_v16  ;;  %v3763_v62 = vpop.eup %3762  ;;  %v1578_v22 = vmul.f32 %v4155_v60, %v1545_v55  ;;  %v1693_v34 = vmul.f32 %v4170_v5, %v1660_v37 }
 0x24e   : > { %v1380_v21 = vadd.f32 %v1348_v9, %v1265_v11  ;;  %v602_v19 = vand.u32 2147483647, %v5944_v25  ;;  %v729_v24 = vadd.f32 1.0, %v3763_v62  ;;  %v1808_v46 = vmul.f32 %v4179_v15, %v1775_v53 }
 0x24f   : > { %v2031_v4 = vadd.f32 %v1999_v3, %v1887_v59  ;;  %v1920_v18 = vunpack.c.l.bf16 %v5950_v13  ;;  %v1003_v2 = vunpack.c.h.bf16 %v5890_v28  ;;  %v1086_v45 = vunpack.c.h.bf16 %v5899_v8 }
 0x250   : > { %v1495_v17 = vadd.f32 %v1463_v20, %v1380_v21  ;;  %v634_v52 = vsub.f32 0.0, %v602_v19  ;;  %3764 = vlog2.f32 %v729_v24  ;;  %v890_v55 = vsub.f32 0.0, %v5944_v25 }
 0x251   : > { %v2773_v49 = vrot.slane %v2031_v4, 4  ;;  %v2778_v11 = vperm.slane %v2031_v4, %v4222_v58  ;;  %v1036_v3 = vmul.f32 %v4117_v26, %v1003_v2  ;;  %v1119_v53 = vmul.f32 %v4119_v27, %v1086_v45 }
 0x252   : > { %v1610_v37 = vadd.f32 %v1578_v22, %v1495_v17  ;;  %v681_v9 = vmul.f32 1.442695, %v634_v52  ;;  %v1201_v28 = vunpack.c.h.bf16 %v5910_v47  ;;  %v1316_v17 = vunpack.c.h.bf16 %v5919_v36 }
 0x253   : > { %v2774_v59 = vsel %vm2035_vm1, 0.0, %v2773_v49  ;;  %v2783_v20 = vrot.slane %v2778_v11, 4  ;;  %v2786_v62 = vsel %vm2035_vm1, %v2778_v11, %v2785_v42  ;;  %v1151_v4 = vadd.f32 %v1119_v53, %v1036_v3 }
 0x254   : > { %v2782_v8 = vperm.slane %v2774_v59, %v4222_v58  ;;  %v2794_v21 = vperm.slane %v2786_v62, %v4254_v38  ;;  %v1725_v19 = vadd.f32 %v1693_v34, %v1610_v37  ;;  %3766 = vpow2.f32 %v681_v9 }
 0x255   : > { %v2784_v22 = vsel %vm2035_vm1, %v2783_v20, %v5916_v10  ;;  %v1234_v24 = vmul.f32 %v4127_v33, %v1201_v28  ;;  %v825_v47 = vmax.f32 %v5879_v16, 0.0  ;;  %v921_v11 = vmax.f32 %v889_v30, 0.0 }
 0x256   : > { %v2795_v52 = vrot.slane %v2782_v8, 4  ;;  %v2798_v2 = vsel %vm2035_vm1, %v2782_v8, %v2797_v23  ;;  %v2809_v42 = vrot.slane %v2794_v21, 4  ;;  %v3765_v45 = vpop.eup %3764  ;;  %v2790_v49 = vperm.slane %v2784_v22, %v4254_v38 }
 0x257   : > { %v1952_v34 = vmul.f32 8.0, %v1920_v18  ;;  %v5982_v9 = vperm.slane %v2798_v2, %v4254_v38  ;;  %v5984_v36 = vmax.f32 %v890_v55, 0.0  ;;  %v1266_v3 = vadd.f32 %v1234_v24, %v1151_v4  ;;  %v6001_v4 = vpop.f32.mrf.mxu2 }
 0x258   : > { %v2796_v10 = vsel %vm2035_vm1, %v2795_v52, %v5934_v12  ;;  %v5987_v23 = vsel %vm2867_vm2, %v2794_v21, 0.0  ;;  %v776_v16 = vmul.f32 0.6931472, %v3765_v45  ;;  %v1840_v53 = vadd.f32 %v1808_v46, %v1725_v19  ;;  %v6009_v52 = vld [vmem:[%s4036_s28 + $0x78] sm:$0xff] }
 0x259   : > { %6368 = vst [vmem:[#allocation59_spill] sm:$0xff] %v5982_v9  ;;  %v1349_v59 = vmul.f32 %v4134_v41, %v1316_v17  ;;  %v2810_v18 = vsel %vm2035_vm1, 0.0, %v2809_v42  ;;  %v1431_v20 = vunpack.c.h.bf16 %v5922_v6  ;;  %v1546_v12 = vunpack.c.h.bf16 %v5928_v51  ;;  %v6013_v45 = vld [vmem:[%s4036_s28 + $0xf8] sm:$0xff] }
 0x25a   : > { %6369 = vst [vmem:[#allocation60_spill] sm:$0xff] %v5987_v23  ;;  %v3767_v30 = vpop.eup %3766  ;;  %v1661_v62 = vunpack.c.h.bf16 %v5931_v43  ;;  %v5995_v55 = vperm.slane %v2796_v10, %v4254_v38  ;;  %v2807_v28 = vrot.slane %v2790_v49, 4  ;;  %v5998_v8 = vsel %vm2867_vm2, %v2790_v49, 0.0  ;;  %v6016_v49 = vld [vmem:[%s4036_s28 + $0x178] sm:$0xff] }
 0x25b   : > { %6370 = vst [vmem:[#allocation61_spill] sm:$0xff] %v5998_v8  ;;  %v857_v46 = vadd.f32 %v825_v47, %v776_v16  ;;  %v953_v21 = vadd.f32 %v921_v11, %v776_v16  ;;  %v730_v19 = vadd.f32 1.0, %v3767_v30  ;;  %v1381_v22 = vadd.f32 %v1349_v59, %v1266_v3  ;;  %v6027_v30 = vld [vmem:[%s4036_s28 + $0x1f8] sm:$0xff] }
 0x25c   : > { %v1464_v6 = vmul.f32 %v4146_v50, %v1431_v20  ;;  %v6004_v51 = vsel %vm2867_vm2, %v2810_v18, 0.0  ;;  %v1579_v24 = vmul.f32 %v4155_v60, %v1546_v12  ;;  %v1776_v17 = vunpack.c.h.bf16 %v5937_v32  ;;  %v6050_v20 = vld [vmem:[%s4036_s28 + $0x3f8] sm:$0xff] }
 0x25d   : > { %6371 = vst [vmem:[#allocation62_spill] sm:$0xff] %v6004_v51  ;;  %v1984_v43 = vmul.f32 %v1952_v34, %v857_v46  ;;  %v1872_v2 = vmul.f32 %v1840_v53, %v953_v21  ;;  %3768 = vlog2.f32 %v730_v19  ;;  %v1694_v47 = vmul.f32 %v4170_v5, %v1661_v62 }
 0x25e   : > { %v1496_v42 = vadd.f32 %v1464_v6, %v1381_v22  ;;  %v6019_v11 = vsel %vm2035_vm1, 0.0, %v2807_v28  ;;  %v1921_v32 = vunpack.c.h.bf16 %v5950_v13  ;;  %v617_v10 = vand.u32 2147483647, %v6001_v4  ;;  %v6033_v13 = vld [vmem:[%s4036_s28 + $0x278] sm:$0xff] }
 0x25f   : > { %v2016_v3 = vadd.f32 %v1984_v43, %v1872_v2  ;;  %v1809_v53 = vmul.f32 %v4179_v15, %v1776_v17  ;;  %v1018_v59 = vunpack.c.l.bf16 %v6009_v52  ;;  %v1101_v12 = vunpack.c.l.bf16 %v6013_v45  ;;  %v6041_v17 = vld [vmem:[%s4036_s28 + $0x2f8] sm:$0xff] }
 0x260   : > { %v1611_v16 = vadd.f32 %v1579_v24, %v1496_v42  ;;  %v649_v18 = vsub.f32 0.0, %v617_v10  ;;  %v1216_v62 = vunpack.c.l.bf16 %v6016_v49  ;;  %v905_v21 = vsub.f32 0.0, %v6001_v4  ;;  %v6044_v2 = vld [vmem:[%s4036_s28 + $0x378] sm:$0xff]  ;;  %s3399_s28 = sshll.u32 %s4032_s0, 3 }
 0x261   : > { %v2399_v28 = vrot.slane %v2016_v3, 4  ;;  %v1051_v19 = vmul.f32 %v4117_v26, %v1018_v59  ;;  %v1134_v6 = vmul.f32 %v4119_v27, %v1101_v12  ;;  %v1331_v24 = vunpack.c.l.bf16 %v6027_v30  ;;  %s361_s21 = scalar_lea.vmem [#allocation7], %s3399_s28 }
 0x262   : > { %v1726_v46 = vadd.f32 %v1694_v47, %v1611_v16  ;;  %v711_v22 = vmul.f32 1.442695, %v649_v18  ;;  %v1249_v43 = vmul.f32 %v4127_v33, %v1216_v62  ;;  %v2404_v10 = vperm.slane %v2016_v3, %v4222_v58  ;;  %v6053_v62 = vld [vmem:[%s4165_s27 + $0x78] sm:$0xff]  ;;  %v6059_v3 = vpop.f32.mrf.mxu3  ;;  %s3243_s26 = sshll.u32 %s361_s21, 4  ;;  %s3244_s26 = int_to_ptr.vmem [resolvable:$true] %s3243_s26 }
 0x263   : > { %v3769_v42 = vpop.eup %3768  ;;  %v2400_v47 = vsel %vm2035_vm1, 0.0, %v2399_v28  ;;  %v1953_v16 = vmul.f32 8.0, %v1921_v32  ;;  %v1446_v59 = vunpack.c.l.bf16 %v6033_v13  ;;  %v1166_v12 = vadd.f32 %v1134_v6, %v1051_v19 }
 0x264   : > { %v778_v18 = vmul.f32 0.6931472, %v3769_v42  ;;  %v1841_v34 = vadd.f32 %v1809_v53, %v1726_v46  ;;  %3770 = vpow2.f32 %v711_v22  ;;  %v2408_v37 = vperm.slane %v2400_v47, %v4222_v58 }
 0x265   : > { %v1364_v48 = vmul.f32 %v4134_v41, %v1331_v24  ;;  %v1561_v57 = vunpack.c.l.bf16 %v6041_v17  ;;  %v1676_v28 = vunpack.c.l.bf16 %v6044_v2  ;;  %v6372_v32 = vmax.f32 %v5944_v25, 0.0 }
 0x266   : > { %v954_v53 = vadd.f32 %v5984_v36, %v778_v18  ;;  %v1281_v46 = vadd.f32 %v1249_v43, %v1166_v12  ;;  %v1479_v19 = vmul.f32 %v4146_v50, %v1446_v59  ;;  %v6065_v22 = vmax.f32 %v905_v21, 0.0 }
 0x267   : > { %v858_v42 = vadd.f32 %v6372_v32, %v778_v18  ;;  %v1594_v6 = vmul.f32 %v4155_v60, %v1561_v57  ;;  %v1791_v24 = vunpack.c.l.bf16 %v6050_v20  ;;  %v1936_v47 = vunpack.c.l.bf16 %v6053_v62 }
 0x268   : > { %v1873_v9 = vmul.f32 %v1841_v34, %v954_v53  ;;  %v1396_v23 = vadd.f32 %v1364_v48, %v1281_v46  ;;  %v618_v54 = vand.u32 2147483647, %v6059_v3  ;;  %v2421_v25 = vrot.slane %v2404_v10, 4 }
 0x269   : > { %v1985_v51 = vmul.f32 %v1953_v16, %v858_v42  ;;  %v2433_v32 = vrot.slane %v2408_v37, 4  ;;  %v1709_v36 = vmul.f32 %v4170_v5, %v1676_v28  ;;  %v1824_v43 = vmul.f32 %v4179_v15, %v1791_v24 }
 0x26a   : > { %v3771_v59 = vpop.eup %3770  ;;  %v1511_v18 = vadd.f32 %v1479_v19, %v1396_v23  ;;  %v650_v12 = vsub.f32 0.0, %v618_v54  ;;  %v1019_v57 = vunpack.c.h.bf16 %v6009_v52  ;;  %v6074_v7 = vmul.f32 8.0, %v1936_v47 }
 0x26b   : > { %v2017_v21 = vadd.f32 %v1985_v51, %v1873_v9  ;;  %v745_v8 = vadd.f32 1.0, %v3771_v59  ;;  %v1102_v34 = vunpack.c.h.bf16 %v6013_v45  ;;  %v1217_v48 = vunpack.c.h.bf16 %v6016_v49 }
 0x26c   : > { %v1626_v53 = vadd.f32 %v1594_v6, %v1511_v18  ;;  %v713_v28 = vmul.f32 1.442695, %v650_v12  ;;  %v1052_v46 = vmul.f32 %v4117_v26, %v1019_v57  ;;  %v1332_v26 = vunpack.c.h.bf16 %v6027_v30 }
 0x26d   : > { %v2409_v16 = vrot.slane %v2017_v21, 4  ;;  %v2414_v42 = vperm.slane %v2017_v21, %v4222_v58  ;;  %3772 = vlog2.f32 %v745_v8  ;;  %v1135_v9 = vmul.f32 %v4119_v27, %v1102_v34 }
 0x26e   : > { %v1250_v54 = vmul.f32 %v4127_v33, %v1217_v48  ;;  %v1741_v45 = vadd.f32 %v1709_v36, %v1626_v53  ;;  %3774 = vpow2.f32 %v713_v28  ;;  %v1447_v27 = vunpack.c.h.bf16 %v6033_v13 }
 0x26f   : > { %v2410_v23 = vsel %vm2035_vm1, 0.0, %v2409_v16  ;;  %v2419_v51 = vrot.slane %v2414_v42, 4  ;;  %v2422_v52 = vsel %vm2035_vm1, %v2414_v42, %v2421_v25  ;;  %v1167_v6 = vadd.f32 %v1135_v9, %v1052_v46 }
 0x270   : > { %v2418_v49 = vperm.slane %v2410_v23, %v4222_v58  ;;  %v2430_v19 = vperm.slane %v2422_v52, %v4254_v38  ;;  %v1856_v24 = vadd.f32 %v1824_v43, %v1741_v45  ;;  %v1365_v12 = vmul.f32 %v4134_v41, %v1332_v26  ;;  %v6373_v26 = vld [vmem:[#allocation17_spill] sm:$0xff] }
 0x271   : > { %v2420_v8 = vsel %vm2035_vm1, %v2419_v51, %v2404_v10  ;;  %v1282_v18 = vadd.f32 %v1250_v54, %v1167_v6  ;;  %v1937_v13 = vunpack.c.h.bf16 %v6053_v62  ;;  %v842_v62 = vmax.f32 %v6059_v3, 0.0 }
 0x272   : > { %v2426_v33 = vperm.slane %v2420_v8, %v4254_v38  ;;  %v2431_v47 = vrot.slane %v2418_v49, 4  ;;  %v2434_v59 = vsel %vm2035_vm1, %v2418_v49, %v2433_v32  ;;  %v2445_v25 = vrot.slane %v2430_v19, 4 }
 0x273   : > { %v2442_v36 = vperm.slane %v2434_v59, %v4254_v38  ;;  %v2943_v21 = vsel %vm2867_vm2, %v2430_v19, 0.0  ;;  %v3773_v57 = vpop.eup %3772  ;;  %v6375_v59 = vld [vmem:[#allocation15_spill] sm:$0xff] }
 0x274   : > { %v2432_v10 = vsel %vm2035_vm1, %v2431_v47, %v2408_v37  ;;  %v2443_v43 = vrot.slane %v2426_v33, 4  ;;  %v2446_v30 = vsel %vm2035_vm1, 0.0, %v2445_v25  ;;  %v2881_v34 = vsel %vm2867_vm2, %v2426_v33, 0.0  ;;  %v3775_v53 = vpop.eup %3774  ;;  %v6374_v33 = vld [vmem:[#allocation21_spill] sm:$0xff] }
 0x275   : > { %v2438_v48 = vperm.slane %v2432_v10, %v4254_v38  ;;  %v2449_v16 = vrot.slane %v2442_v36, 4  ;;  %v2882_v32 = vadd.f32 %v2881_v34, %v5843_v0  ;;  %v2944_v42 = vadd.f32 %v2943_v21, %v5846_v31  ;;  %v6376_v25 = vld [vmem:[#allocation29_spill] sm:$0xff]  ;;  %v6378_v10 = vld [vmem:[#allocation16_spill] sm:$0xff]  ;;  %v6381_v34 = vld [vmem:[#allocation22_spill] sm:$0xff] }
 0x276   : > { %v2444_v28 = vsel %vm2035_vm1, 0.0, %v2443_v43  ;;  %v2974_v41 = vsel %vm2867_vm2, %v2446_v30, 0.0  ;;  %v3067_v46 = vsel %vm2867_vm2, %v2442_v36, 0.0  ;;  %v808_v37 = vmul.f32 0.6931472, %v3773_v57  ;;  %v6377_v36 = vld [vmem:[#allocation18_spill] sm:$0xff] }
 0x277   : > { %v2447_v9 = vrot.slane %v2438_v48, 4  ;;  %v2450_v54 = vsel %vm2035_vm1, 0.0, %v2449_v16  ;;  %v2884_v23 = vadd.f32 %v4433_v61, %v2882_v32  ;;  %v2912_v51 = vsel %vm2867_vm2, %v2444_v28, 0.0  ;;  %v6379_v43 = vld [vmem:[#allocation24_spill] sm:$0xff]  ;;  %v6382_v32 = vld [vmem:[#allocation25_spill] sm:$0xff] }
 0x278   : > { %v2913_v52 = vadd.f32 %v2912_v51, %v5857_v29  ;;  %v2946_v0 = vadd.f32 %v4428_v40, %v2944_v42  ;;  %v2975_v31 = vadd.f32 %v2974_v41, %v5854_v44  ;;  %v3005_v45 = vsel %vm2867_vm2, %v2438_v48, 0.0  ;;  %v6380_v30 = vld [vmem:[#allocation28_spill] sm:$0xff] }
 0x279   : > { %v2448_v49 = vsel %vm2035_vm1, 0.0, %v2447_v9  ;;  %v2886_v19 = vadd.f32 %v4683_v56, %v2884_v23  ;;  %v3006_v6 = vadd.f32 %v3005_v45, %v5866_v35  ;;  %v3068_v8 = vadd.f32 %v3067_v46, %v5861_v63  ;;  %v6383_v28 = vld [vmem:[#allocation20_spill] sm:$0xff]  ;;  %v6384_v46 = vld [vmem:[#allocation23_spill] sm:$0xff] }
 0x27a   : > { %v2915_v61 = vadd.f32 %v6373_v26, %v2913_v52  ;;  %v2948_v47 = vadd.f32 %v6374_v33, %v2946_v0  ;;  %v2977_v29 = vadd.f32 %v6375_v59, %v2975_v31  ;;  %v3036_v40 = vsel %vm2867_vm2, %v2448_v49, 0.0  ;;  %v6385_v51 = vld [vmem:[#allocation32_spill] sm:$0xff]  ;;  %v6386_v52 = vld [vmem:[#allocation30_spill] sm:$0xff]  ;;  %v6390_v26 = vld [vmem:[#allocation31_spill] sm:$0xff] }
 0x27b   : > { %v2888_v44 = vadd.f32 %v6376_v25, %v2886_v19  ;;  %v3008_v21 = vadd.f32 %v6377_v36, %v3006_v6  ;;  %v3037_v57 = vadd.f32 %v3036_v40, %v5876_v1  ;;  %v3070_v56 = vadd.f32 %v6378_v10, %v3068_v8  ;;  %v6388_v19 = vld [vmem:[#allocation33_spill] sm:$0xff]  ;;  %v6391_v33 = vld [vmem:[#allocation19_spill] sm:$0xff] }
 0x27c   : > { %v2917_v35 = vadd.f32 %v6379_v43, %v2915_v61  ;;  %v2950_v63 = vadd.f32 %v6380_v30, %v2948_v47  ;;  %v2979_v48 = vadd.f32 %v6381_v34, %v2977_v29  ;;  %v3098_v16 = vsel %vm2867_vm2, %v2450_v54, 0.0  ;;  %v6389_v54 = vld [vmem:[#allocation26_spill] sm:$0xff]  ;;  %v6395_v43 = vld [vmem:[#allocation36_spill] sm:$0xff] }
 0x27d   : > { %v3010_v42 = vadd.f32 %v6382_v32, %v3008_v21  ;;  %v3039_v41 = vadd.f32 %v6383_v28, %v3037_v57  ;;  %v3072_v9 = vadd.f32 %v6384_v46, %v3070_v56  ;;  %v3099_v23 = vadd.f32 %v3098_v16, %v5869_v39  ;;  %v6392_v57 = vld [vmem:[#allocation37_spill] sm:$0xff] }
 0x27e   : > { %v2919_v1 = vadd.f32 %v6385_v51, %v2917_v35  ;;  %v2981_v0 = vadd.f32 %v6386_v52, %v2979_v48  ;;  %v6387_v31 = vmax.f32 %v6001_v4, 0.0  ;;  %v969_v49 = vadd.f32 %v6065_v22, %v808_v37  ;;  %v6396_v35 = vld [vmem:[#allocation38_spill] sm:$0xff]  ;;  %v6397_v16 = vld [vmem:[#allocation49_spill] sm:$0xff] }
 0x27f   : > { %v3012_v6 = vadd.f32 %v6388_v19, %v3010_v42  ;;  %v3041_v8 = vadd.f32 %v6389_v54, %v3039_v41  ;;  %v3074_v61 = vadd.f32 %v6390_v26, %v3072_v9  ;;  %v6139_v47 = vadd.f32 %v6391_v33, %v3099_v23  ;;  %v6398_v42 = vld [vmem:[#allocation45_spill] sm:$0xff]  ;;  %v6403_v19 = vld [vmem:[#allocation54_spill] sm:$0xff] }
 0x280   : > { %v873_v45 = vadd.f32 %v6387_v31, %v808_v37  ;;  %v1888_v59 = vmul.f32 %v1856_v24, %v969_v49  ;;  %v746_v29 = vadd.f32 1.0, %v3775_v53  ;;  %v1397_v40 = vadd.f32 %v1365_v12, %v1282_v18  ;;  %v6394_v53 = vld [vmem:[#allocation41_spill] sm:$0xff]  ;;  %v6404_v26 = vld [vmem:[#allocation42_spill] sm:$0xff] }
 0x281   : > { %v1480_v4 = vmul.f32 %v4146_v50, %v1447_v27  ;;  %v1562_v22 = vunpack.c.h.bf16 %v6041_v17  ;;  %v1677_v37 = vunpack.c.h.bf16 %v6044_v2  ;;  %v1792_v25 = vunpack.c.h.bf16 %v6050_v20  ;;  %v6393_v20 = vld [vmem:[#allocation46_spill] sm:$0xff]  ;;  %v6399_v9 = vld [vmem:[#allocation61_spill] sm:$0xff] }
 0x282   : > { %v2000_v39 = vmul.f32 %v6074_v7, %v873_v45  ;;  %3776 = vlog2.f32 %v746_v29  ;;  %v906_v21 = vsub.f32 0.0, %v6059_v3  ;;  %v2890_v24 = vadd.f32 %v6392_v57, %v2888_v44  ;;  %v6402_v45 = vld [vmem:[#allocation53_spill] sm:$0xff] }
 0x283   : > { %v1512_v10 = vadd.f32 %v1480_v4, %v1397_v40  ;;  %v1595_v7 = vmul.f32 %v4155_v60, %v1562_v22  ;;  %v1710_v18 = vmul.f32 %v4170_v5, %v1677_v37  ;;  %v1825_v2 = vmul.f32 %v4179_v15, %v1792_v25  ;;  %v6405_v40 = vld [vmem:[#allocation35_spill] sm:$0xff]  ;;  %v6406_v22 = vld [vmem:[#allocation60_spill] sm:$0xff]  ;;  %v6407_v25 = vld [vmem:[#allocation62_spill] sm:$0xff] }
 0x284   : > { %v2032_v36 = vadd.f32 %v2000_v39, %v1888_v59  ;;  %v2892_v27 = vadd.f32 %v6393_v20, %v2890_v24  ;;  %v2921_v56 = vadd.f32 %v6394_v53, %v2919_v1  ;;  %v2952_v44 = vadd.f32 %v6395_v43, %v2950_v63  ;;  %v6409_v24 = vld [vmem:[#allocation50_spill] sm:$0xff]  ;;  %v6416_v43 = vld [vmem:[#allocation57_spill] sm:$0xff] }
 0x285   : > { %v1627_v12 = vadd.f32 %v1595_v7, %v1512_v10  ;;  %v2983_v30 = vadd.f32 %v6396_v35, %v2981_v0  ;;  %v2926_v60 = vsel %vm2867_vm2, %v6019_v11, 0.0  ;;  %v3019_v5 = vsel %vm2867_vm2, %v5995_v55, 0.0  ;;  %v6400_v11 = vld [vmem:[#allocation47_spill] sm:$0xff] }
 0x286   : > { %v2815_v50 = vrot.slane %v2032_v36, 4  ;;  %v6154_v17 = vperm.slane %v2032_v36, %v4222_v58  ;;  %v2894_v34 = vadd.f32 %v5736_v14, %v2892_v27  ;;  %v2923_v32 = vadd.f32 %v6397_v16, %v2921_v56  ;;  %v6401_v14 = vld [vmem:[#allocation56_spill] sm:$0xff]  ;;  %v6417_v35 = vld [vmem:[#allocation39_spill] sm:$0xff] }
 0x287   : > { %v1742_v48 = vadd.f32 %v1710_v18, %v1627_v12  ;;  %v2954_v28 = vadd.f32 %v6398_v42, %v2952_v44  ;;  %v938_v41 = vmax.f32 %v906_v21, 0.0  ;;  %v1969_v46 = vmul.f32 8.0, %v1937_v13  ;;  %v6408_v21 = vld [vmem:[#allocation59_spill] sm:$0xff]  ;;  %v6410_v13 = vld [vmem:[#allocation44_spill] sm:$0xff] }
 0x288   : > { %v2816_v15 = vsel %vm2035_vm1, 0.0, %v2815_v50  ;;  %v3777_v63 = vpop.eup %3776  ;;  %v6171_v23 = vadd.f32 %v6399_v9, %v2894_v34  ;;  %v2985_v51 = vadd.f32 %v6400_v11, %v2983_v30  ;;  %v2837_v1 = vrot.slane %v6154_v17, 4  ;;  %v6413_v27 = vld [vmem:[#allocation52_spill] sm:$0xff]  ;;  %v6418_v34 = vld [vmem:[#allocation51_spill] sm:$0xff] }
 0x289   : > { %v810_v3 = vmul.f32 0.6931472, %v3777_v63  ;;  %v1857_v52 = vadd.f32 %v1825_v2, %v1742_v48  ;;  %v2925_v0 = vadd.f32 %v6401_v14, %v2923_v32  ;;  %v2824_v31 = vperm.slane %v2816_v15, %v4222_v58  ;;  %v6412_v2 = vld [vmem:[#allocation43_spill] sm:$0xff] }
 0x28a   : > { %v2956_v49 = vadd.f32 %v6402_v45, %v2954_v28  ;;  %v2987_v54 = vadd.f32 %v6403_v19, %v2985_v51  ;;  %v3014_v33 = vadd.f32 %v6404_v26, %v3012_v6  ;;  %v3043_v4 = vadd.f32 %v6405_v40, %v3041_v8  ;;  %v6419_v48 = vld [vmem:[#allocation27_spill] sm:$0xff]  ;;  %v6420_v28 = vld [vmem:[#allocation58_spill] sm:$0xff] }
 0x28b   : > { %v874_v59 = vadd.f32 %v842_v62, %v810_v3  ;;  %v970_v39 = vadd.f32 %v938_v41, %v810_v3  ;;  %v6180_v29 = vadd.f32 %v2926_v60, %v2925_v0  ;;  %v2813_v57 = vrot.slane %v6408_v21, 4  ;;  %v6424_v0 = vld [vmem:[#allocation40_spill] sm:$0xff] }
 0x28c   : > { %v2958_v37 = vadd.f32 %v6406_v22, %v2956_v49  ;;  %v2989_v36 = vadd.f32 %v6407_v25, %v2987_v54  ;;  %v3016_v10 = vadd.f32 %v6409_v24, %v3014_v33  ;;  %v6411_v50 = vrot.slane %v6410_v13, 4 }
 0x28d   : > { %v1889_v7 = vmul.f32 %v1857_v52, %v970_v39  ;;  %v2001_v18 = vmul.f32 %v1969_v46, %v874_v59  ;;  %v3045_v20 = vadd.f32 %v6412_v2, %v3043_v4  ;;  %v6414_v12 = vrot.slane %v6413_v27, 4  ;;  %v6423_v52 = vld [vmem:[#allocation55_spill] sm:$0xff] }
 0x28e   : > { %v2710_v6 = vsel %vm2035_vm1, 0.0, %v6411_v50  ;;  %v6415_v53 = vrot.slane %v5995_v55, 4  ;;  %v3018_v44 = vadd.f32 %v6416_v43, %v3016_v10  ;;  %v3076_v30 = vadd.f32 %v6417_v35, %v3074_v61  ;;  %v6421_v55 = vld [vmem:[#allocation48_spill] sm:$0xff]  ;;  %v6422_v61 = vld [vmem:[#allocation34_spill] sm:$0xff] }
 0x28f   : > { %v2762_v8 = vsel %vm2035_vm1, 0.0, %v6414_v12  ;;  %v2849_v60 = vrot.slane %v2824_v31, 4  ;;  %v2033_v62 = vadd.f32 %v2001_v18, %v1889_v7  ;;  %v3047_v15 = vadd.f32 %v6418_v34, %v3045_v20 }
 0x290   : > { %v2812_v56 = vsel %vm2035_vm1, 0.0, %v6415_v53  ;;  %v3103_v16 = vadd.f32 %v6419_v48, %v6139_v47  ;;  %v2814_v32 = vsel %vm2035_vm1, 0.0, %v2813_v57  ;;  %v3020_v42 = vadd.f32 %v3019_v5, %v3018_v44 }
 0x291   : > { %v3048_v63 = vsel %vm2867_vm2, %v6420_v28, 0.0  ;;  %v3078_v41 = vadd.f32 %v6421_v55, %v3076_v30  ;;  %v2825_v46 = vrot.slane %v2033_v62, 4  ;;  %v2830_v9 = vperm.slane %v2033_v62, %v4222_v58 }
 0x292   : > { %v3049_v11 = vadd.f32 %v3048_v63, %v3047_v15  ;;  %v3105_v51 = vadd.f32 %v6422_v61, %v3103_v16  ;;  %v3050_v3 = vsel %vm2867_vm2, %v2812_v56, 0.0  ;;  %v3081_v47 = vsel %vm2867_vm2, %v6408_v21, 0.0 }
 0x293   : > { %v3080_v14 = vadd.f32 %v6423_v52, %v3078_v41  ;;  %v3106_v5 = vsel %vm2867_vm2, %v6424_v0, 0.0  ;;  %v2826_v45 = vsel %vm2035_vm1, 0.0, %v2825_v46  ;;  %v2835_v49 = vrot.slane %v2830_v9, 4 }
 0x294   : > { %v2838_v19 = vsel %vm2035_vm1, %v2830_v9, %v2837_v1  ;;  %v3051_v54 = vadd.f32 %v3050_v3, %v3049_v11  ;;  %v2834_v26 = vperm.slane %v2826_v45, %v4222_v58  ;;  %v3107_v39 = vadd.f32 %v3106_v5, %v3105_v51 }
 0x295   : > { %v2846_v33 = vperm.slane %v2838_v19, %v4254_v38  ;;  %v3082_v59 = vadd.f32 %v3081_v47, %v3080_v14  ;;  %v2836_v40 = vsel %vm2035_vm1, %v2835_v49, %v6154_v17  ;;  %v3108_v4 = vsel %vm2867_vm2, %v2710_v6, 0.0 }
 0x296   : > { %v3110_v22 = vsel %vm2867_vm2, %v2762_v8, 0.0  ;;  %v2842_v25 = vperm.slane %v2836_v40, %v4254_v38  ;;  %v2847_v21 = vrot.slane %v2834_v26, 4  ;;  %v2850_v57 = vsel %vm2035_vm1, %v2834_v26, %v2849_v60 }
 0x297   : > { %v2861_v1 = vrot.slane %v2846_v33, 4  ;;  %v2858_v24 = vperm.slane %v2850_v57, %v4254_v38  ;;  %v2959_v58 = vsel %vm2867_vm2, %v2846_v33, 0.0  ;;  %v3109_v10 = vadd.f32 %v3108_v4, %v3107_v39 }
 0x298   : > { %v3112_v7 = vsel %vm2867_vm2, %v2814_v32, 0.0  ;;  %v2848_v18 = vsel %vm2035_vm1, %v2847_v21, %v2824_v31  ;;  %v2859_v17 = vrot.slane %v2842_v25, 4  ;;  %v2897_v50 = vsel %vm2867_vm2, %v2842_v25, 0.0 }
 0x299   : > { %v2862_v13 = vsel %vm2035_vm1, 0.0, %v2861_v1  ;;  %v2854_v6 = vperm.slane %v2848_v18, %v4254_v38  ;;  %v2898_v2 = vadd.f32 %v2897_v50, %v6171_v23  ;;  %v2960_v20 = vadd.f32 %v2959_v58, %v2958_v37 }
 0x29a   : > { %v2990_v27 = vsel %vm2867_vm2, %v2862_v13, 0.0  ;;  %v2860_v12 = vsel %vm2035_vm1, 0.0, %v2859_v17  ;;  %v2865_v53 = vrot.slane %v2858_v24, 4  ;;  %v3083_v56 = vsel %vm2867_vm2, %v2858_v24, 0.0 }
 0x29b   : > { %v2991_v8 = vadd.f32 %v2990_v27, %v2989_v36  ;;  %v2863_v43 = vrot.slane %v2854_v6, 4  ;;  %v2928_v31 = vsel %vm2867_vm2, %v2860_v12, 0.0  ;;  %v3021_v44 = vsel %vm2867_vm2, %v2854_v6, 0.0 }
 0x29c   : > { %v3116_v35 = vsel %vm2867_vm2, %v2898_v2, 0.0  ;;  %v2929_v38 = vadd.f32 %v2928_v31, %v6180_v29  ;;  %v3130_v23 = vsel %vm2867_vm2, %v2960_v20, 0.0  ;;  %v2866_v37 = vsel %vm2035_vm1, 0.0, %v2865_v53 }
 0x29d   : > { %v3117_v30 = vrot.slane %v3116_v35, 4  ;;  %v3131_v60 = vrot.slane %v3130_v23, 4  ;;  %v2864_v36 = vsel %vm2035_vm1, 0.0, %v2863_v43  ;;  %v3022_v62 = vadd.f32 %v3021_v44, %v3020_v42 }
 0x29e   : > { %v3084_v34 = vadd.f32 %v3083_v56, %v3082_v59  ;;  %v3123_v48 = vsel %vm2867_vm2, %v2929_v38, 0.0  ;;  %v3052_v16 = vsel %vm2867_vm2, %v2864_v36, 0.0  ;;  %v3111_v32 = vadd.f32 %v3110_v22, %v3109_v10 }
 0x29f   : > { %v3118_v15 = vadd.f32 %v3117_v30, %v3116_v35  ;;  %v3124_v28 = vrot.slane %v3123_v48, 4  ;;  %v3132_v63 = vadd.f32 %v3131_v60, %v3130_v23  ;;  %v3053_v55 = vadd.f32 %v3052_v16, %v3051_v54 }
 0x2a0   : > { %v3114_v29 = vsel %vm2867_vm2, %v2866_v37, 0.0  ;;  %v3113_v46 = vadd.f32 %v3112_v7, %v3111_v32  ;;  %v3137_v9 = vsel %vm2867_vm2, %v2991_v8, 0.0  ;;  %v3144_v11 = vsel %vm2867_vm2, %v3022_v62, 0.0 }
 0x2a1   : > { %v3119_v41 = vrot.slane %v3118_v15, 2  ;;  %v3125_v61 = vadd.f32 %v3124_v28, %v3123_v48  ;;  %v3133_v42 = vrot.slane %v3132_v63, 2  ;;  %v3138_v51 = vrot.slane %v3137_v9, 4 }
 0x2a2   : > { %v3145_v3 = vrot.slane %v3144_v11, 4  ;;  %v3115_v52 = vadd.f32 %v3114_v29, %v3113_v46  ;;  %v3151_v47 = vsel %vm2867_vm2, %v3053_v55, 0.0  ;;  %v3158_v0 = vsel %vm2867_vm2, %v3084_v34, 0.0 }
 0x2a3   : > { %v3120_v14 = vadd.f32 %v3119_v41, %v3118_v15  ;;  %v3126_v5 = vrot.slane %v3125_v61, 2  ;;  %v3134_v45 = vadd.f32 %v3133_v42, %v3132_v63  ;;  %v3139_v49 = vadd.f32 %v3138_v51, %v3137_v9 }
 0x2a4   : > { %v3146_v19 = vadd.f32 %v3145_v3, %v3144_v11  ;;  %v3152_v54 = vrot.slane %v3151_v47, 4  ;;  %v3159_v26 = vrot.slane %v3158_v0, 4  ;;  %v3165_v33 = vsel %vm2867_vm2, %v3115_v52, 0.0 }
 0x2a5   : > { %v3121_v59 = vrot.slane %v3120_v14, 1  ;;  %v3127_v39 = vadd.f32 %v3126_v5, %v3125_v61  ;;  %v3140_v40 = vrot.slane %v3139_v49, 2  ;;  %v3135_v22 = vrot.slane %v3134_v45, 1 }
 0x2a6   : > { %v3147_v4 = vrot.slane %v3146_v19, 2  ;;  %v3153_v25 = vadd.f32 %v3152_v54, %v3151_v47  ;;  %v3160_v21 = vadd.f32 %v3159_v26, %v3158_v0  ;;  %v3166_v57 = vrot.slane %v3165_v33, 4 }
 0x2a7   : > { %v3128_v1 = vrot.slane %v3127_v39, 1  ;;  %v3141_v24 = vadd.f32 %v3140_v40, %v3139_v49  ;;  %v3122_v17 = vadd.f32 %v3121_v59, %v3120_v14  ;;  %v3136_v2 = vadd.f32 %v3135_v22, %v3134_v45 }
 0x2a8   : > { %v3148_v58 = vadd.f32 %v3147_v4, %v3146_v19  ;;  %v3154_v10 = vrot.slane %v3153_v25, 2  ;;  %v3161_v7 = vrot.slane %v3160_v21, 2  ;;  %v3167_v18 = vadd.f32 %v3166_v57, %v3165_v33 }
 0x2a9   : > { %v3129_v13 = vadd.f32 %v3128_v1, %v3127_v39  ;;  %v3142_v50 = vrot.slane %v3141_v24, 1 }
 0x2aa   : > { %v3149_v6 = vrot.slane %v3148_v58, 1  ;;  %v3155_v20 = vadd.f32 %v3154_v10, %v3153_v25  ;;  %v3162_v27 = vadd.f32 %v3161_v7, %v3160_v21  ;;  %v3168_v12 = vrot.slane %v3167_v18, 2 }
 0x2ab   : > { %v3143_v8 = vadd.f32 %v3142_v50, %v3141_v24  ;;  %v3185_v56 = vsel %vm3184_vm3, %v3129_v13, %v3122_v17 }
 0x2ac   : > { %v3150_v53 = vadd.f32 %v3149_v6, %v3148_v58  ;;  %v3156_v43 = vrot.slane %v3155_v20, 1  ;;  %v3163_v31 = vrot.slane %v3162_v27, 1  ;;  %v3169_v44 = vadd.f32 %v3168_v12, %v3167_v18 }
 0x2ad   : > { %v3187_v35 = vsel %vm3186_vm4, %v3136_v2, %v3185_v56 }
 0x2ae   : > { %v3189_v38 = vsel %vm3188_vm5, %v3143_v8, %v3187_v35  ;;  %v3157_v30 = vadd.f32 %v3156_v43, %v3155_v20  ;;  %v3170_v23 = vrot.slane %v3169_v44, 1  ;;  %v3164_v60 = vadd.f32 %v3163_v31, %v3162_v27 }
 0x2af   : > { %v3191_v37 = vsel %vm3190_vm6, %v3150_v53, %v3189_v38 }
 0x2b0   : > { %v3171_v36 = vadd.f32 %v3170_v23, %v3169_v44  ;;  %v3193_v62 = vsel %vm3192_vm7, %v3157_v30, %v3191_v37 }
 0x2b1   : > { %v3195_v34 = vsel %vm3194_vm8, %v3164_v60, %v3193_v62 }
 0x2b2   : > { %v3197_v15 = vsel %vm3196_vm9, %v3171_v36, %v3195_v34 }
 0x2b3   : > { %3199 = vst [vmem:[%s361_s21] sm:$0xff] %v3197_v15 }
 0x2b4   : > { %3820 = shalt.err (!%p3817_p13)
}
 0x2b5   : > { %3580 = dma.vmem_to_hbm [thread:$0]  (%p3977_p9), %s3244_s26, 128, %s3246_s15, %s3231_s10  }
 0x2b6 PF: > { %s3257_s0 = sand.u32 1, %s3859_s18   ;;  %p3587_p0 = pnand %p3389_p3, %p3984_p11 }
 0x2b7   : > { %s3258_s27 = scalar_lea.sflag [#allocation4], %s3257_s0 }
 0x2b8   : > { %p3588_p1 = pneg %p3587_p0 }
 0x2ba   : > { %3854 = dma.done.wait (%p3588_p1), %s3258_s27, 128  }
 0x2bb   : > { %3856 = vsyncadd (%p3588_p1), %s3258_s27, 4294967168  ;;  %s22_s23 = sadd.s32 1, %s3879_s23   ;;  %s6425_s7 = sld [smem:[#allocation14_spill]] }
 0x2bc   : > { %p19_p2 = scmp.ge.s32.totalorder %s22_s23, 4   ;;  %s6426_s18 = smov %s3863_s19 }
 0x2bd   : > { %s6427_s19 = smov %s3867_s20  ;;  %s6428_s20 = smov %s3982_s8 }
 0x2be   : > { %s6429_s21 = smov %s3875_s22  ;;  %21 = sbr.rel (!%p19_p2) target bundleno = 9 (0x9), region = 119 }
 0x2c1   : > { %s6430_s22 = smov %s6425_s7 }
 0x2c3   :  { %3264 = vsyncpa [#allocation3], 1 }
 0x2c4   :  { %3266 = vsyncpa [#allocation3 + $0x1], 1 }
 0x2c5   :  { %3267 = vsyncpa [#allocation4], 1 }
 0x2c6   :  { %3269 = vsyncpa [#allocation4 + $0x1], 1 }
 0x2c7   :  { %3270 = vsyncpa [#allocation5], 1 }
 0x2c8   :  { %3272 = vsyncpa [#allocation5 + $0x1], 1 }

</bundles_post_ra>
